<compile_context>
chip_gen: v7x
topology: tpu7x:2x2x1
jax: 0.10.0
libtpu: 0.0.40
codegen_flags: <defaults>
</compile_context>

<pallas_src>
import jax
import jax.numpy as jnp
import numpy as np
from jax import lax
from jax.experimental import pallas as pl
from jax.experimental.pallas import tpu as pltpu

EPS = 1e-5
LANE = 128


def _round_up(x, m):
    return ((x + m - 1) // m) * m


# ----------------------------------------------------------------------------- kernel
def double_conv_kernel(x_ref, w1_ref, b1_ref, w2_ref, b2_ref, o_ref,
                       slab_ref, acc_ref):
    """Fused (Conv3x3 + folded-BN + ReLU) x2 for one batch item, all in VMEM.

    x_ref   : (1, H, W, Cp)   lane-padded NHWC input (f32)
    w*_ref  : (3, 3*Cp, Cp)   bf16 weights, BN scale folded; [dy, dx*Cp+ci, co]
    b*_ref  : (1, Cp)         f32 folded BN bias (beta - mean * scale)
    o_ref   : (1, H, W, Cp)   lane-dense f32 output
    slab_ref: (H+2, W, 3*Cp)  f32 scratch: dx-concatenated, dy-padded activation
    acc_ref : (H*W, Cp)       f32 accumulator
    """
    _, H, W, Cp = o_ref.shape
    C3 = 3 * Cp

    # Zero only the halo strips (never touched by the data stores below).  Done
    # unconditionally every grid step: with "parallel" batch sharding each core
    # owns its own scratch, so gating this on program_id would be unsafe.
    slab_ref[0:1, :, :] = jnp.zeros((1, W, C3), slab_ref.dtype)                    # dy=-1 row
    slab_ref[H + 1:H + 2, :, :] = jnp.zeros((1, W, C3), slab_ref.dtype)            # dy=+1 row
    slab_ref[1:H + 1, 0:1, 0:Cp] = jnp.zeros((H, 1, Cp), slab_ref.dtype)           # dx=-1 wrap col
    slab_ref[1:H + 1, W - 1:W, 2 * Cp:C3] = jnp.zeros((H, 1, Cp), slab_ref.dtype)  # dx=+1 wrap col

    def build_slab(a):
        # slab[r, x, dx*Cp + ci] = a_pad[r, x + dx, ci]  (a_pad = 1-px zero-padded a)
        slab_ref[1:H + 1, :, Cp:2 * Cp] = a                     # dx= 0, fully aligned store
        slab_ref[1:H + 1, 1:W, 0:Cp] = a[:, 0:W - 1, :]         # dx=-1 (left tap)
        slab_ref[1:H + 1, 0:W - 1, 2 * Cp:C3] = a[:, 1:W, :]    # dx=+1 (right tap)

    def conv_bn_relu(w_ref, b_ref):
        # 3 matmuls with K = 3*Cp; dy taps are leading-dim slices of the slab
        # (layout-preserving since W is a sublane multiple).  MXU operands bf16,
        # accumulation + epilogue in f32.  (On v7x the same chain could target
        # the MRB via a single dot-sum expression; VMEM accumulate kept here.)
        def tap(dy):
            lhs = slab_ref[dy:dy + H, :, :].reshape(H * W, C3).astype(jnp.bfloat16)
            return jnp.dot(lhs, w_ref[dy], preferred_element_type=jnp.float32)

        acc_ref[...] = b_ref[...] + tap(0)      # bias folded into the init store
        acc_ref[...] += tap(1)
        acc_ref[...] += tap(2)
        return jnp.maximum(acc_ref[...], 0.0).reshape(H, W, Cp)

    # Stage 1: input -> slab -> conv1; result stays on-chip and is re-slab'ed.
    build_slab(x_ref[0])
    build_slab(conv_bn_relu(w1_ref, b1_ref))
    # Stage 2: final activation to the lane-dense output block.
    o_ref[0] = conv_bn_relu(w2_ref, b2_ref).astype(o_ref.dtype)


# ----------------------------------------------------------------------------- wrapper
def double_conv(x_nchw, prep):
    """Forward pass equivalent to the PyTorch DoubleConv module (eval-mode BN)."""
    N, Cin, H, W = x_nchw.shape
    cp, cout = prep["cp"], prep["cout"]

    # NCHW -> NHWC (channels on the lane axis), channels zero-padded to the lane
    # width so every kernel load/store is full-lane.  In a full UNet these
    # transposes/pads should live outside the per-layer path (activations kept
    # NHWC end-to-end); kept here so the entry point matches the PyTorch module.
    x = jnp.transpose(x_nchw, (0, 2, 3, 1))
    x = jnp.pad(x, ((0, 0), (0, 0), (0, 0), (0, cp - Cin)))

    out = pl.pallas_call(
        double_conv_kernel,
        out_shape=jax.ShapeDtypeStruct((N, H, W, cp), jnp.float32),
        grid_spec=pltpu.PrefetchScalarGridSpec(
            num_scalar_prefetch=0,
            grid=(N,),
            in_specs=[
                pl.BlockSpec((1, H, W, cp), lambda n: (n, 0, 0, 0)),
                # Constant index_maps: the pipeline keeps the resident weight
                # copy instead of re-DMA'ing it every grid step.
                pl.BlockSpec((3, 3 * cp, cp), lambda n: (0, 0, 0)),
                pl.BlockSpec((1, cp), lambda n: (0, 0)),
                pl.BlockSpec((3, 3 * cp, cp), lambda n: (0, 0, 0)),
                pl.BlockSpec((1, cp), lambda n: (0, 0)),
            ],
            out_specs=pl.BlockSpec((1, H, W, cp), lambda n: (n, 0, 0, 0)),
            scratch_shapes=[
                pltpu.VMEM((H + 2, W, 3 * cp), jnp.float32),  # dx-concat activation slab
                pltpu.VMEM((H * W, cp), jnp.float32),         # f32 accumulator
            ],
        ),
        compiler_params=pltpu.CompilerParams(
            dimension_semantics=("parallel",),                # shard batch over TCs (v7x)
        ),
    )(x, prep["w1"], prep["b1"], prep["w2"], prep["b2"])

    # Strip channel padding, back to NCHW.
    return jnp.transpose(out[..., :cout], (0, 3, 1, 2))


# ----------------------------------------------------------------------------- params
def fold_bn(gamma, beta, mean, var):
    scale = gamma / jnp.sqrt(var + EPS)
    return scale, beta - mean * scale


def prepare_params(raw, cin, cout):
    """Fold eval-mode BN into conv weights, lane-pad channels, reshape weights to
    the (dy, dx*Cp+ci, co) layout used by the kernel, and ship them as bf16."""
    cp = _round_up(max(cin, cout), LANE)

    s1, b1 = fold_bn(raw["gamma1"], raw["beta1"], raw["mean1"], raw["var1"])
    s2, b2 = fold_bn(raw["gamma2"], raw["beta2"], raw["mean2"], raw["var2"])

    # PyTorch OIHW -> HWIO, BN scale folded along Cout.
    w1 = jnp.transpose(raw["w1"], (2, 3, 1, 0)) * s1            # (3, 3, cin,  cout)
    w2 = jnp.transpose(raw["w2"], (2, 3, 1, 0)) * s2            # (3, 3, cout, cout)

    w1p = jnp.zeros((3, 3, cp, cp), jnp.float32).at[:, :, :cin, :cout].set(w1)
    w2p = jnp.zeros((3, 3, cp, cp), jnp.float32).at[:, :, :cout, :cout].set(w2)

    # (3, 3, Cp, Cp) -> (3, 3*Cp, Cp): row dy, column (dx*Cp + ci) matches the
    # dx-concatenated activation slab -> each stage is 3 matmuls with K = 3*Cp.
    w1c = w1p.reshape(3, 3 * cp, cp).astype(jnp.bfloat16)
    w2c = w2p.reshape(3, 3 * cp, cp).astype(jnp.bfloat16)

    b1p = jnp.zeros((1, cp), jnp.float32).at[0, :cout].set(b1)
    b2p = jnp.zeros((1, cp), jnp.float32).at[0, :cout].set(b2)

    return {"w1": w1c, "b1": b1p, "w2": w2c, "b2": b2p, "cp": cp, "cout": cout}


def make_params(key, cin, cout):
    ks = jax.random.split(key, 10)
    return {
        "w1": jax.random.normal(ks[0], (cout, cin, 3, 3), jnp.float32) * 0.1,
        "w2": jax.random.normal(ks[1], (cout, cout, 3, 3), jnp.float32) * 0.1,
        "gamma1": jax.random.normal(ks[2], (cout,), jnp.float32) * 0.1 + 1.0,
        "beta1":  jax.random.normal(ks[3], (cout,), jnp.float32) * 0.1,
        "mean1":  jax.random.normal(ks[4], (cout,), jnp.float32) * 0.1,
        "var1":   jnp.abs(jax.random.normal(ks[5], (cout,), jnp.float32)) * 0.1 + 0.5,
        "gamma2": jax.random.normal(ks[6], (cout,), jnp.float32) * 0.1 + 1.0,
        "beta2":  jax.random.normal(ks[7], (cout,), jnp.float32) * 0.1,
        "mean2":  jax.random.normal(ks[8], (cout,), jnp.float32) * 0.1,
        "var2":   jnp.abs(jax.random.normal(ks[9], (cout,), jnp.float32)) * 0.1 + 0.5,
    }


# ----------------------------------------------------------------------------- reference
def double_conv_ref(x_nchw, raw):
    """Pure-JAX reference of the PyTorch module math (eval-mode BN, f32)."""
    def step(x, w_oihw, g, b, m, v):
        w = jnp.transpose(w_oihw, (2, 3, 1, 0))
        y = lax.conv_general_dilated(x, w, window_strides=(1, 1), padding="SAME",
                                     dimension_numbers=("NHWC", "HWIO", "NHWC"))
        y = g * (y - m) / jnp.sqrt(v + EPS) + b
        return jnp.maximum(y, 0.0)

    x = jnp.transpose(x_nchw, (0, 2, 3, 1))
    x = step(x, raw["w1"], raw["gamma1"], raw["beta1"], raw["mean1"], raw["var1"])
    x = step(x, raw["w2"], raw["gamma2"], raw["beta2"], raw["mean2"], raw["var2"])
    return jnp.transpose(x, (0, 3, 1, 2))


if __name__ == "__main__":
    N, CIN, COUT, H, W = 2, 4, 8, 16, 16

    key = jax.random.PRNGKey(0)
    kx, kp = jax.random.split(key)
    x = jax.random.normal(kx, (N, CIN, H, W), jnp.float32)      # PyTorch NCHW input
    raw = make_params(kp, CIN, COUT)
    prep = prepare_params(raw, CIN, COUT)

    out = jax.block_until_ready(double_conv(x, prep))
    ref = jax.block_until_ready(double_conv_ref(x, raw))

    # bf16 MXU operands (f32 accumulation) vs a pure-f32 reference -> bf16-level tolerance.
    np.testing.assert_allclose(np.asarray(out), np.asarray(ref), atol=3e-2, rtol=3e-2)
    assert out.shape == (N, COUT, H, W)

    print("KERNEL_OK")
</pallas_src>

<mosaic_0001>
module attributes {stable_mosaic.version = 11 : i64} {
  func.func @double_conv_kernel(%arg0: i32, %arg1: memref<1x16x16x128xf32, #tpu.memory_space<vmem>>, %arg2: memref<3x384x128xbf16, #tpu.memory_space<vmem>>, %arg3: memref<1x128xf32, #tpu.memory_space<vmem>>, %arg4: memref<3x384x128xbf16, #tpu.memory_space<vmem>>, %arg5: memref<1x128xf32, #tpu.memory_space<vmem>>, %arg6: memref<1x16x16x128xf32, #tpu.memory_space<vmem>>, %arg7: memref<18x16x384xf32, #tpu.memory_space<vmem>>, %arg8: memref<256x128xf32, #tpu.memory_space<vmem>>) attributes {dimension_semantics = [#tpu.dimension_semantics<parallel>], iteration_bounds = array<i64: 2>, scalar_prefetch = 0 : i64, scratch_operands = 2 : i64, tpu.core_type = #tpu.core_type<tc>, window_params = [{transform_indices = @transform_0, window_bounds = array<i64: 1, 16, 16, 128>}, {pipeline_mode = #tpu.pipeline_mode<synchronous>, transform_indices = @transform_1, window_bounds = array<i64: 3, 384, 128>}, {pipeline_mode = #tpu.pipeline_mode<synchronous>, transform_indices = @transform_2, window_bounds = array<i64: 1, 128>}, {pipeline_mode = #tpu.pipeline_mode<synchronous>, transform_indices = @transform_3, window_bounds = array<i64: 3, 384, 128>}, {pipeline_mode = #tpu.pipeline_mode<synchronous>, transform_indices = @transform_4, window_bounds = array<i64: 1, 128>}, {transform_indices = @transform_5, window_bounds = array<i64: 1, 16, 16, 128>}]} {
    %cst = arith.constant 0.000000e+00 : f32
    %0 = vector.broadcast %cst : f32 to vector<1x16x384xf32>
    %c0 = arith.constant 0 : index
    %c0_0 = arith.constant 0 : index
    %c0_1 = arith.constant 0 : index
    %1 = vector.load %arg7[%c0, %c0_0, %c0_1] : memref<18x16x384xf32, #tpu.memory_space<vmem>>, vector<1x16x384xf32>
    tpu.vector_store %arg7[%c0, %c0_0, %c0_1], %0 {strides = array<i32>} : memref<18x16x384xf32, #tpu.memory_space<vmem>>, vector<1x16x384xf32>,
    %cst_2 = arith.constant 0.000000e+00 : f32
    %2 = vector.broadcast %cst_2 : f32 to vector<1x16x384xf32>
    %c17 = arith.constant 17 : index
    %c0_3 = arith.constant 0 : index
    %c0_4 = arith.constant 0 : index
    %3 = vector.load %arg7[%c17, %c0_3, %c0_4] : memref<18x16x384xf32, #tpu.memory_space<vmem>>, vector<1x16x384xf32>
    tpu.vector_store %arg7[%c17, %c0_3, %c0_4], %2 {strides = array<i32>} : memref<18x16x384xf32, #tpu.memory_space<vmem>>, vector<1x16x384xf32>,
    %cst_5 = arith.constant 0.000000e+00 : f32
    %4 = vector.broadcast %cst_5 : f32 to vector<16x1x128xf32>
    %c1 = arith.constant 1 : index
    %c0_6 = arith.constant 0 : index
    %c0_7 = arith.constant 0 : index
    %5 = vector.load %arg7[%c1, %c0_6, %c0_7] : memref<18x16x384xf32, #tpu.memory_space<vmem>>, vector<16x1x128xf32>
    tpu.vector_store %arg7[%c1, %c0_6, %c0_7], %4 {strides = array<i32>} : memref<18x16x384xf32, #tpu.memory_space<vmem>>, vector<16x1x128xf32>,
    %cst_8 = arith.constant 0.000000e+00 : f32
    %6 = vector.broadcast %cst_8 : f32 to vector<16x1x128xf32>
    %c1_9 = arith.constant 1 : index
    %c15 = arith.constant 15 : index
    %c256 = arith.constant 256 : index
    %7 = vector.load %arg7[%c1_9, %c15, %c256] : memref<18x16x384xf32, #tpu.memory_space<vmem>>, vector<16x1x128xf32>
    tpu.vector_store %arg7[%c1_9, %c15, %c256], %6 {strides = array<i32>} : memref<18x16x384xf32, #tpu.memory_space<vmem>>, vector<16x1x128xf32>,
    %c0_10 = arith.constant 0 : index
    %c0_11 = arith.constant 0 : index
    %c0_12 = arith.constant 0 : index
    %c0_13 = arith.constant 0 : index
    %8 = vector.load %arg1[%c0_10, %c0_11, %c0_12, %c0_13] : memref<1x16x16x128xf32, #tpu.memory_space<vmem>>, vector<1x16x16x128xf32>
    %9 = vector.shape_cast %8 : vector<1x16x16x128xf32> to vector<16x16x128xf32>
    %c1_14 = arith.constant 1 : index
    %c0_15 = arith.constant 0 : index
    %c128 = arith.constant 128 : index
    %10 = vector.load %arg7[%c1_14, %c0_15, %c128] : memref<18x16x384xf32, #tpu.memory_space<vmem>>, vector<16x16x128xf32>
    tpu.vector_store %arg7[%c1_14, %c0_15, %c128], %9 {strides = array<i32>} : memref<18x16x384xf32, #tpu.memory_space<vmem>>, vector<16x16x128xf32>,
    %11 = vector.extract_strided_slice %9 {offsets = [0, 0, 0], sizes = [16, 15, 128], strides = [1, 1, 1]} : vector<16x16x128xf32> to vector<16x15x128xf32>
    %c1_16 = arith.constant 1 : index
    %c1_17 = arith.constant 1 : index
    %c0_18 = arith.constant 0 : index
    %12 = vector.load %arg7[%c1_16, %c1_17, %c0_18] : memref<18x16x384xf32, #tpu.memory_space<vmem>>, vector<16x15x128xf32>
    tpu.vector_store %arg7[%c1_16, %c1_17, %c0_18], %11 {strides = array<i32>} : memref<18x16x384xf32, #tpu.memory_space<vmem>>, vector<16x15x128xf32>,
    %13 = vector.extract_strided_slice %9 {offsets = [0, 1, 0], sizes = [16, 15, 128], strides = [1, 1, 1]} : vector<16x16x128xf32> to vector<16x15x128xf32>
    %c1_19 = arith.constant 1 : index
    %c0_20 = arith.constant 0 : index
    %c256_21 = arith.constant 256 : index
    %14 = vector.load %arg7[%c1_19, %c0_20, %c256_21] : memref<18x16x384xf32, #tpu.memory_space<vmem>>, vector<16x15x128xf32>
    tpu.vector_store %arg7[%c1_19, %c0_20, %c256_21], %13 {strides = array<i32>} : memref<18x16x384xf32, #tpu.memory_space<vmem>>, vector<16x15x128xf32>,
    %c0_22 = arith.constant 0 : index
    %c0_23 = arith.constant 0 : index
    %15 = vector.load %arg3[%c0_22, %c0_23] : memref<1x128xf32, #tpu.memory_space<vmem>>, vector<1x128xf32>
    %c0_24 = arith.constant 0 : index
    %c0_25 = arith.constant 0 : index
    %c0_26 = arith.constant 0 : index
    %16 = vector.load %arg7[%c0_24, %c0_25, %c0_26] : memref<18x16x384xf32, #tpu.memory_space<vmem>>, vector<16x16x384xf32>
    %17 = vector.shape_cast %16 : vector<16x16x384xf32> to vector<256x384xf32>
    %18 = arith.truncf %17 : vector<256x384xf32> to vector<256x384xbf16>
    %c0_27 = arith.constant 0 : index
    %c0_28 = arith.constant 0 : index
    %c0_29 = arith.constant 0 : index
    %19 = vector.load %arg2[%c0_27, %c0_28, %c0_29] : memref<3x384x128xbf16, #tpu.memory_space<vmem>>, vector<1x384x128xbf16>
    %20 = vector.shape_cast %19 : vector<1x384x128xbf16> to vector<384x128xbf16>
    %cst_30 = arith.constant dense<0.000000e+00> : vector<256x128xf32>
    %21 = tpu.matmul %18, %20, %cst_30 {dimension_numbers = #tpu.dot_dimension_numbers<[1], [0], [0], [1], [0, 0, 1, 1], [], []>} : vector<256x384xbf16>, vector<384x128xbf16>, vector<256x128xf32> -> vector<256x128xf32>
    %22 = vector.broadcast %15 : vector<1x128xf32> to vector<256x128xf32>
    %23 = arith.addf %22, %21 : vector<256x128xf32>
    %c0_31 = arith.constant 0 : index
    %c0_32 = arith.constant 0 : index
    %24 = vector.load %arg8[%c0_31, %c0_32] : memref<256x128xf32, #tpu.memory_space<vmem>>, vector<256x128xf32>
    tpu.vector_store %arg8[%c0_31, %c0_32], %23 {strides = array<i32>} : memref<256x128xf32, #tpu.memory_space<vmem>>, vector<256x128xf32>,
    %c0_33 = arith.constant 0 : index
    %c0_34 = arith.constant 0 : index
    %25 = vector.load %arg8[%c0_33, %c0_34] : memref<256x128xf32, #tpu.memory_space<vmem>>, vector<256x128xf32>
    %c1_35 = arith.constant 1 : index
    %c0_36 = arith.constant 0 : index
    %c0_37 = arith.constant 0 : index
    %26 = vector.load %arg7[%c1_35, %c0_36, %c0_37] : memref<18x16x384xf32, #tpu.memory_space<vmem>>, vector<16x16x384xf32>
    %27 = vector.shape_cast %26 : vector<16x16x384xf32> to vector<256x384xf32>
    %28 = arith.truncf %27 : vector<256x384xf32> to vector<256x384xbf16>
    %c1_38 = arith.constant 1 : index
    %c0_39 = arith.constant 0 : index
    %c0_40 = arith.constant 0 : index
    %29 = vector.load %arg2[%c1_38, %c0_39, %c0_40] : memref<3x384x128xbf16, #tpu.memory_space<vmem>>, vector<1x384x128xbf16>
    %30 = vector.shape_cast %29 : vector<1x384x128xbf16> to vector<384x128xbf16>
    %cst_41 = arith.constant dense<0.000000e+00> : vector<256x128xf32>
    %31 = tpu.matmul %28, %30, %cst_41 {dimension_numbers = #tpu.dot_dimension_numbers<[1], [0], [0], [1], [0, 0, 1, 1], [], []>} : vector<256x384xbf16>, vector<384x128xbf16>, vector<256x128xf32> -> vector<256x128xf32>
    %32 = arith.addf %25, %31 : vector<256x128xf32>
    %c0_42 = arith.constant 0 : index
    %c0_43 = arith.constant 0 : index
    %33 = vector.load %arg8[%c0_42, %c0_43] : memref<256x128xf32, #tpu.memory_space<vmem>>, vector<256x128xf32>
    tpu.vector_store %arg8[%c0_42, %c0_43], %32 {strides = array<i32>} : memref<256x128xf32, #tpu.memory_space<vmem>>, vector<256x128xf32>,
    %c0_44 = arith.constant 0 : index
    %c0_45 = arith.constant 0 : index
    %34 = vector.load %arg8[%c0_44, %c0_45] : memref<256x128xf32, #tpu.memory_space<vmem>>, vector<256x128xf32>
    %c2 = arith.constant 2 : index
    %c0_46 = arith.constant 0 : index
    %c0_47 = arith.constant 0 : index
    %35 = vector.load %arg7[%c2, %c0_46, %c0_47] : memref<18x16x384xf32, #tpu.memory_space<vmem>>, vector<16x16x384xf32>
    %36 = vector.shape_cast %35 : vector<16x16x384xf32> to vector<256x384xf32>
    %37 = arith.truncf %36 : vector<256x384xf32> to vector<256x384xbf16>
    %c2_48 = arith.constant 2 : index
    %c0_49 = arith.constant 0 : index
    %c0_50 = arith.constant 0 : index
    %38 = vector.load %arg2[%c2_48, %c0_49, %c0_50] : memref<3x384x128xbf16, #tpu.memory_space<vmem>>, vector<1x384x128xbf16>
    %39 = vector.shape_cast %38 : vector<1x384x128xbf16> to vector<384x128xbf16>
    %cst_51 = arith.constant dense<0.000000e+00> : vector<256x128xf32>
    %40 = tpu.matmul %37, %39, %cst_51 {dimension_numbers = #tpu.dot_dimension_numbers<[1], [0], [0], [1], [0, 0, 1, 1], [], []>} : vector<256x384xbf16>, vector<384x128xbf16>, vector<256x128xf32> -> vector<256x128xf32>
    %41 = arith.addf %34, %40 : vector<256x128xf32>
    %c0_52 = arith.constant 0 : index
    %c0_53 = arith.constant 0 : index
    %42 = vector.load %arg8[%c0_52, %c0_53] : memref<256x128xf32, #tpu.memory_space<vmem>>, vector<256x128xf32>
    tpu.vector_store %arg8[%c0_52, %c0_53], %41 {strides = array<i32>} : memref<256x128xf32, #tpu.memory_space<vmem>>, vector<256x128xf32>,
    %c0_54 = arith.constant 0 : index
    %c0_55 = arith.constant 0 : index
    %43 = vector.load %arg8[%c0_54, %c0_55] : memref<256x128xf32, #tpu.memory_space<vmem>>, vector<256x128xf32>
    %cst_56 = arith.constant 0.000000e+00 : f32
    %44 = vector.broadcast %cst_56 : f32 to vector<256x128xf32>
    %45 = arith.maximumf %43, %44 : vector<256x128xf32>
    %46 = vector.shape_cast %45 : vector<256x128xf32> to vector<16x16x128xf32>
    %c1_57 = arith.constant 1 : index
    %c0_58 = arith.constant 0 : index
    %c128_59 = arith.constant 128 : index
    %47 = vector.load %arg7[%c1_57, %c0_58, %c128_59] : memref<18x16x384xf32, #tpu.memory_space<vmem>>, vector<16x16x128xf32>
    tpu.vector_store %arg7[%c1_57, %c0_58, %c128_59], %46 {strides = array<i32>} : memref<18x16x384xf32, #tpu.memory_space<vmem>>, vector<16x16x128xf32>,
    %48 = vector.extract_strided_slice %46 {offsets = [0, 0, 0], sizes = [16, 15, 128], strides = [1, 1, 1]} : vector<16x16x128xf32> to vector<16x15x128xf32>
    %c1_60 = arith.constant 1 : index
    %c1_61 = arith.constant 1 : index
    %c0_62 = arith.constant 0 : index
    %49 = vector.load %arg7[%c1_60, %c1_61, %c0_62] : memref<18x16x384xf32, #tpu.memory_space<vmem>>, vector<16x15x128xf32>
    tpu.vector_store %arg7[%c1_60, %c1_61, %c0_62], %48 {strides = array<i32>} : memref<18x16x384xf32, #tpu.memory_space<vmem>>, vector<16x15x128xf32>,
    %50 = vector.extract_strided_slice %46 {offsets = [0, 1, 0], sizes = [16, 15, 128], strides = [1, 1, 1]} : vector<16x16x128xf32> to vector<16x15x128xf32>
    %c1_63 = arith.constant 1 : index
    %c0_64 = arith.constant 0 : index
    %c256_65 = arith.constant 256 : index
    %51 = vector.load %arg7[%c1_63, %c0_64, %c256_65] : memref<18x16x384xf32, #tpu.memory_space<vmem>>, vector<16x15x128xf32>
    tpu.vector_store %arg7[%c1_63, %c0_64, %c256_65], %50 {strides = array<i32>} : memref<18x16x384xf32, #tpu.memory_space<vmem>>, vector<16x15x128xf32>,
    %c0_66 = arith.constant 0 : index
    %c0_67 = arith.constant 0 : index
    %52 = vector.load %arg5[%c0_66, %c0_67] : memref<1x128xf32, #tpu.memory_space<vmem>>, vector<1x128xf32>
    %c0_68 = arith.constant 0 : index
    %c0_69 = arith.constant 0 : index
    %c0_70 = arith.constant 0 : index
    %53 = vector.load %arg7[%c0_68, %c0_69, %c0_70] : memref<18x16x384xf32, #tpu.memory_space<vmem>>, vector<16x16x384xf32>
    %54 = vector.shape_cast %53 : vector<16x16x384xf32> to vector<256x384xf32>
    %55 = arith.truncf %54 : vector<256x384xf32> to vector<256x384xbf16>
    %c0_71 = arith.constant 0 : index
    %c0_72 = arith.constant 0 : index
    %c0_73 = arith.constant 0 : index
    %56 = vector.load %arg4[%c0_71, %c0_72, %c0_73] : memref<3x384x128xbf16, #tpu.memory_space<vmem>>, vector<1x384x128xbf16>
    %57 = vector.shape_cast %56 : vector<1x384x128xbf16> to vector<384x128xbf16>
    %cst_74 = arith.constant dense<0.000000e+00> : vector<256x128xf32>
    %58 = tpu.matmul %55, %57, %cst_74 {dimension_numbers = #tpu.dot_dimension_numbers<[1], [0], [0], [1], [0, 0, 1, 1], [], []>} : vector<256x384xbf16>, vector<384x128xbf16>, vector<256x128xf32> -> vector<256x128xf32>
    %59 = vector.broadcast %52 : vector<1x128xf32> to vector<256x128xf32>
    %60 = arith.addf %59, %58 : vector<256x128xf32>
    %c0_75 = arith.constant 0 : index
    %c0_76 = arith.constant 0 : index
    %61 = vector.load %arg8[%c0_75, %c0_76] : memref<256x128xf32, #tpu.memory_space<vmem>>, vector<256x128xf32>
    tpu.vector_store %arg8[%c0_75, %c0_76], %60 {strides = array<i32>} : memref<256x128xf32, #tpu.memory_space<vmem>>, vector<256x128xf32>,
    %c0_77 = arith.constant 0 : index
    %c0_78 = arith.constant 0 : index
    %62 = vector.load %arg8[%c0_77, %c0_78] : memref<256x128xf32, #tpu.memory_space<vmem>>, vector<256x128xf32>
    %c1_79 = arith.constant 1 : index
    %c0_80 = arith.constant 0 : index
    %c0_81 = arith.constant 0 : index
    %63 = vector.load %arg7[%c1_79, %c0_80, %c0_81] : memref<18x16x384xf32, #tpu.memory_space<vmem>>, vector<16x16x384xf32>
    %64 = vector.shape_cast %63 : vector<16x16x384xf32> to vector<256x384xf32>
    %65 = arith.truncf %64 : vector<256x384xf32> to vector<256x384xbf16>
    %c1_82 = arith.constant 1 : index
    %c0_83 = arith.constant 0 : index
    %c0_84 = arith.constant 0 : index
    %66 = vector.load %arg4[%c1_82, %c0_83, %c0_84] : memref<3x384x128xbf16, #tpu.memory_space<vmem>>, vector<1x384x128xbf16>
    %67 = vector.shape_cast %66 : vector<1x384x128xbf16> to vector<384x128xbf16>
    %cst_85 = arith.constant dense<0.000000e+00> : vector<256x128xf32>
    %68 = tpu.matmul %65, %67, %cst_85 {dimension_numbers = #tpu.dot_dimension_numbers<[1], [0], [0], [1], [0, 0, 1, 1], [], []>} : vector<256x384xbf16>, vector<384x128xbf16>, vector<256x128xf32> -> vector<256x128xf32>
    %69 = arith.addf %62, %68 : vector<256x128xf32>
    %c0_86 = arith.constant 0 : index
    %c0_87 = arith.constant 0 : index
    %70 = vector.load %arg8[%c0_86, %c0_87] : memref<256x128xf32, #tpu.memory_space<vmem>>, vector<256x128xf32>
    tpu.vector_store %arg8[%c0_86, %c0_87], %69 {strides = array<i32>} : memref<256x128xf32, #tpu.memory_space<vmem>>, vector<256x128xf32>,
    %c0_88 = arith.constant 0 : index
    %c0_89 = arith.constant 0 : index
    %71 = vector.load %arg8[%c0_88, %c0_89] : memref<256x128xf32, #tpu.memory_space<vmem>>, vector<256x128xf32>
    %c2_90 = arith.constant 2 : index
    %c0_91 = arith.constant 0 : index
    %c0_92 = arith.constant 0 : index
    %72 = vector.load %arg7[%c2_90, %c0_91, %c0_92] : memref<18x16x384xf32, #tpu.memory_space<vmem>>, vector<16x16x384xf32>
    %73 = vector.shape_cast %72 : vector<16x16x384xf32> to vector<256x384xf32>
    %74 = arith.truncf %73 : vector<256x384xf32> to vector<256x384xbf16>
    %c2_93 = arith.constant 2 : index
    %c0_94 = arith.constant 0 : index
    %c0_95 = arith.constant 0 : index
    %75 = vector.load %arg4[%c2_93, %c0_94, %c0_95] : memref<3x384x128xbf16, #tpu.memory_space<vmem>>, vector<1x384x128xbf16>
    %76 = vector.shape_cast %75 : vector<1x384x128xbf16> to vector<384x128xbf16>
    %cst_96 = arith.constant dense<0.000000e+00> : vector<256x128xf32>
    %77 = tpu.matmul %74, %76, %cst_96 {dimension_numbers = #tpu.dot_dimension_numbers<[1], [0], [0], [1], [0, 0, 1, 1], [], []>} : vector<256x384xbf16>, vector<384x128xbf16>, vector<256x128xf32> -> vector<256x128xf32>
    %78 = arith.addf %71, %77 : vector<256x128xf32>
    %c0_97 = arith.constant 0 : index
    %c0_98 = arith.constant 0 : index
    %79 = vector.load %arg8[%c0_97, %c0_98] : memref<256x128xf32, #tpu.memory_space<vmem>>, vector<256x128xf32>
    tpu.vector_store %arg8[%c0_97, %c0_98], %78 {strides = array<i32>} : memref<256x128xf32, #tpu.memory_space<vmem>>, vector<256x128xf32>,
    %c0_99 = arith.constant 0 : index
    %c0_100 = arith.constant 0 : index
    %80 = vector.load %arg8[%c0_99, %c0_100] : memref<256x128xf32, #tpu.memory_space<vmem>>, vector<256x128xf32>
    %cst_101 = arith.constant 0.000000e+00 : f32
    %81 = vector.broadcast %cst_101 : f32 to vector<256x128xf32>
    %82 = arith.maximumf %80, %81 : vector<256x128xf32>
    %83 = vector.shape_cast %82 : vector<256x128xf32> to vector<16x16x128xf32>
    %c0_102 = arith.constant 0 : index
    %c0_103 = arith.constant 0 : index
    %c0_104 = arith.constant 0 : index
    %c0_105 = arith.constant 0 : index
    %84 = vector.load %arg6[%c0_102, %c0_103, %c0_104, %c0_105] : memref<1x16x16x128xf32, #tpu.memory_space<vmem>>, vector<1x16x16x128xf32>
    %85 = vector.shape_cast %84 : vector<1x16x16x128xf32> to vector<16x16x128xf32>
    %86 = vector.shape_cast %83 : vector<16x16x128xf32> to vector<1x16x16x128xf32>
    tpu.vector_store %arg6[%c0_102, %c0_103, %c0_104, %c0_105], %86 {strides = array<i32>} : memref<1x16x16x128xf32, #tpu.memory_space<vmem>>, vector<1x16x16x128xf32>,
    return
  }
  func.func @transform_0(%arg0: i32) -> (i32, i32, i32, i32) {
    %c0_i32 = arith.constant 0 : i32
    %c0_i32_0 = arith.constant 0 : i32
    %c0_i32_1 = arith.constant 0 : i32
    %c0_i32_2 = arith.constant 0 : i32
    return %arg0, %c0_i32, %c0_i32_0, %c0_i32_1 : i32, i32, i32, i32
  }
  func.func @transform_1(%arg0: i32) -> (i32, i32, i32) {
    %c0_i32 = arith.constant 0 : i32
    %c0_i32_0 = arith.constant 0 : i32
    %c0_i32_1 = arith.constant 0 : i32
    %c0_i32_2 = arith.constant 0 : i32
    return %c0_i32, %c0_i32_0, %c0_i32_1 : i32, i32, i32
  }
  func.func @transform_2(%arg0: i32) -> (i32, i32) {
    %c0_i32 = arith.constant 0 : i32
    %c0_i32_0 = arith.constant 0 : i32
    %c0_i32_1 = arith.constant 0 : i32
    return %c0_i32, %c0_i32_0 : i32, i32
  }
  func.func @transform_3(%arg0: i32) -> (i32, i32, i32) {
    %c0_i32 = arith.constant 0 : i32
    %c0_i32_0 = arith.constant 0 : i32
    %c0_i32_1 = arith.constant 0 : i32
    %c0_i32_2 = arith.constant 0 : i32
    return %c0_i32, %c0_i32_0, %c0_i32_1 : i32, i32, i32
  }
  func.func @transform_4(%arg0: i32) -> (i32, i32) {
    %c0_i32 = arith.constant 0 : i32
    %c0_i32_0 = arith.constant 0 : i32
    %c0_i32_1 = arith.constant 0 : i32
    return %c0_i32, %c0_i32_0 : i32, i32
  }
  func.func @transform_5(%arg0: i32) -> (i32, i32, i32, i32) {
    %c0_i32 = arith.constant 0 : i32
    %c0_i32_0 = arith.constant 0 : i32
    %c0_i32_1 = arith.constant 0 : i32
    %c0_i32_2 = arith.constant 0 : i32
    return %arg0, %c0_i32, %c0_i32_0, %c0_i32_1 : i32, i32, i32, i32
  }
}

</mosaic_0001>

<bundles_post_ra>
// kernel: tpu_custom_call.1
= control target key start
LH: loop header
LB: loop body
LE: loop exit
PB: predicated region body
PF: predicated region fallthrough
CT: control target
= control target key end

     0   :  { %10 = vsyncpa [#allocation5], 0  ;;  %s9543_s0 = inlined_call_operand.hbm [shape: f32[2,16,16,128], index: 0, kind: input, shape index: {}]   ;;  %s9544_s1 = inlined_call_operand.hbm [shape: bf16[3,384,128], index: 1, kind: input, shape index: {}]   ;;  %s9545_s2 = inlined_call_operand.vmem [shape: f32[1,128], index: 2, kind: input, shape index: {}]   ;;  %s9546_s3 = inlined_call_operand.hbm [shape: bf16[3,384,128], index: 3, kind: input, shape index: {}]   ;;  %s9547_s4 = inlined_call_operand.vmem [shape: f32[1,128], index: 4, kind: input, shape index: {}]   ;;  %s9548_s5 = inlined_call_operand.hbm [shape: f32[2,16,16,128], index: 5, kind: output, shape index: {}]  }
   0x1   :  { %12 = vsyncpa [#allocation5 + $0x1], 0 }
   0x2   :  { %13 = vsyncpa [#allocation8], 0 }
   0x3   :  { %14 = vsyncpa [#allocation6], 0 }
   0x4   :  { %16 = vsyncpa [#allocation6 + $0x1], 0  ;;  %s7748_s18 = smov 0   ;;  %s7750_s19 = smov 0  }
   0x5   :  { %s7752_s20 = smov 0   ;;  %s7754_s21 = smov 0  }
   0x6 LB: > { %s7769_s22 = sadd.s32 4294967295, %s7704_s21   ;;  %s5674_s23 = sadd.s32 4294967294, %s7704_s21   ;;  %s7704_s21 = sphi %s7754_s21, %s9596_s21   ;;  %s7700_s20 = sphi %s7752_s20, %s9595_s20   ;;  %s7696_s19 = sphi %s7750_s19, %s9594_s19   ;;  %s7692_s18 = sphi %s7748_s18, %s9593_s18  }
   0x7   : > { %p42_p0 = scmp.ne.s32.totalorder %s7696_s19, %s7692_s18  ;;  %p9549_p1 = scmp.eq.s32.totalorder %s7769_s22, 0 }
   0x8   : > { %p156_p3 = scmp.eq.s32.totalorder %s5674_s23, 1  ;;  %p5675_p5 = scmp.ge.s32.totalorder %s7704_s21, 1 }
   0x9   : > { %p7778_p4 = por %p9549_p1, %p42_p0  ;;  %p163_p7 = scmp.lt.s32.totalorder %s7704_s21, 3 }
   0xa   : > { %p7783_p6 = por %p156_p3, %p42_p0  ;;  %s7706_s27 = smov [#allocation7]  }
   0xb   : > { %s9552_s24 = scalar_select %p7778_p4, 1, 0 }
   0xc   : > { %s9553_s25 = scalar_select %p7783_p6, 1, 0 }
   0xd   : > { %p7788_p8 = pnand %p5675_p5, %p163_p7  ;;  %s175_s28 = sshll.u32 %s7706_s27, 4  ;;  %s7792_s28 = int_to_ptr.vmem [resolvable:$true] %s175_s28 }
   0xe   : > { %s7707_s30 = smov [#allocation9]   ;;  %s7548_s9 = scalar_lea.hbm %s9544_s1, 9216 }
   0xf   : > { %p7340_p9 = pneg %p7788_p8  ;;  %s191_s6 = sshll.u32 %s7707_s30, 4  ;;  %s7803_s6 = int_to_ptr.vmem [resolvable:$true] %s191_s6 }
  0x10   : > { %p7549_p12 = scmp.ne.s32.totalorder %s9544_s1, %s7548_s9  ;;  %p7555_p5 = scmp.lt.u32.totalorder %s7548_s9, %s9544_s1 }
  0x11   : > { %p7799_p11 = pnand %p7340_p9, %p9549_p1 }
  0x13   : > { %p7550_p13 = pneg %p7799_p11 }
  0x15   : > { %p7551_p0 = pnand %p7550_p13, %p7549_p12 }
  0x17   : > { %p7552_p3 = pneg %p7551_p0 }
  0x19   : > { %p7557_p7 = pnand %p7555_p5, %p7552_p3 }
  0x1b   : > { %7560 = shalt.err (!%p7557_p7)
}
  0x1c   : > { %s7561_s14 = scalar_lea.vmem %s7792_s28, 9216  ;;  %p7569_p2 = scmp.lt.s32.totalorder %s7792_s28, %s7792_s28 }
  0x1d   : > { %p7562_p9 = scmp.ne.s32.totalorder %s7792_s28, %s7561_s14  ;;  %p7570_p12 = scmp.lt.s32.totalorder %s7561_s14, %s7561_s14 }
  0x1f   : > { %p7564_p10 = pnand %p7562_p9, %p7550_p13  ;;  %p7571_p0 = por %p7570_p12, %p7569_p2 }
  0x21   : > { %p7565_p1 = pneg %p7564_p10 }
  0x23   : > { %p7572_p6 = pnand %p7571_p0, %p7565_p1 }
  0x25   : > { %7575 = shalt.err (!%p7572_p6)
}
  0x26   : > { %s7708_s15 = smov 64   ;;  %s7709_s16 = smov 4  }
  0x27   : > { %7343 = dma.hbm_to_vmem [thread:$0]  (!%p7799_p11), %s9544_s1, 9216, %s7792_s28, [#allocation8], %s7708_s15, %s7708_s15, %s7709_s16  }
  0x28   : > { %s7576_s7 = scalar_lea.hbm %s9546_s3, 9216 }
  0x29   : > { %p7577_p2 = scmp.ne.s32.totalorder %s9546_s3, %s7576_s7  ;;  %p7583_p10 = scmp.lt.u32.totalorder %s7576_s7, %s9546_s3 }
  0x2b   : > { %p7579_p1 = pnand %p7577_p2, %p7550_p13 }
  0x2d   : > { %p7580_p6 = pneg %p7579_p1 }
  0x2f   : > { %p7585_p3 = pnand %p7583_p10, %p7580_p6 }
  0x31   : > { %7588 = shalt.err (!%p7585_p3)
}
  0x32   : > { %s7589_s28 = scalar_lea.vmem %s7803_s6, 9216  ;;  %p7597_p12 = scmp.lt.s32.totalorder %s7803_s6, %s7803_s6 }
  0x33   : > { %p7590_p5 = scmp.ne.s32.totalorder %s7803_s6, %s7589_s28  ;;  %p7598_p0 = scmp.lt.s32.totalorder %s7589_s28, %s7589_s28 }
  0x35   : > { %p7592_p7 = pnand %p7590_p5, %p7550_p13  ;;  %p7599_p2 = por %p7598_p0, %p7597_p12 }
  0x37   : > { %p7593_p9 = pneg %p7592_p7 }
  0x39   : > { %p7600_p1 = pnand %p7599_p2, %p7593_p9 }
  0x3b   : > { %7603 = shalt.err (!%p7600_p1)
}
  0x3c   : > { %7346 = dma.hbm_to_vmem [thread:$0]  (!%p7799_p11), %s9546_s3, 9216, %s7803_s6, [#allocation8], %s7708_s15, %s7708_s15, %s7709_s16  }
  0x3d   : > { %s7858_s14 = sadd.s32 1, %s7704_s21   ;;  %s29_s29 = sadd.s32 1, %s7700_s20 }
  0x3e   : > { %s26_s17 = ssub.s32 %s7704_s21, %s7858_s14  ;;  %p36_p13 = scmp.ne.s32.totalorder %s7700_s20, %s7696_s19 }
  0x3f   : > { %p27_p6 = scmp.eq.s32.totalorder %s26_s17, 0  ;;  %p37_p10 = scmp.eq.s32.totalorder %s7704_s21, 0 }
  0x40   : > { %p9556_p3 = scmp.eq.s32.totalorder %s7769_s22, 1  ;;  %p7357_p7 = scmp.lt.s32.totalorder %s7704_s21, 2 }
  0x41   : > { %s7874_s27 = scalar_select %p27_p6, %s7700_s20, %s29_s29  }
  0x42   : > { %p7868_p5 = por %p9556_p3, %p36_p13  ;;  %p38_p9 = por %p37_p10, %p36_p13 }
  0x43   : > { %s208_s30 = sand.u32 1, %s7700_s20   ;;  %s5838_s6 = sshll.u32 %s7704_s21, 12 }
  0x44   : > { %s9557_s23 = scalar_select %p7868_p5, 1, 0 }
  0x45   : > { %s5679_s7 = sshll.u32 %s208_s30, 8  ;;  %s7881_s8 = scalar_lea.hbm %s9543_s0, %s5838_s6 }
  0x46   : > { %s212_s9 = scalar_lea.vmem [#allocation4], %s5679_s7  ;;  %p7885_p11 = pnand %p7357_p7, %p38_p9 }
  0x47   : > { %s219_s10 = sshll.u32 %s212_s9, 4  ;;  %s7889_s28 = scalar_lea.sflag [#allocation5], %s208_s30  ;;  %s7883_s10 = int_to_ptr.vmem [resolvable:$true] %s219_s10 }
  0x48   : > { %s7604_s12 = scalar_lea.hbm %s7881_s8, 4096  ;;  %p7606_p0 = pneg %p7885_p11 }
  0x49   : > { %p7605_p12 = scmp.ne.s32.totalorder %s7881_s8, %s7604_s12  ;;  %s7609_s17 = scalar_lea.hbm %s9543_s0, 8192 }
  0x4a   : > { %p7610_p13 = scmp.lt.u32.totalorder %s7881_s8, %s9543_s0  ;;  %p7611_p6 = scmp.lt.u32.totalorder %s7609_s17, %s7604_s12 }
  0x4b   : > { %p7607_p2 = pnand %p7606_p0, %p7605_p12  ;;  %p7613_p3 = scmp.lt.u32.totalorder %s7604_s12, %s7881_s8 }
  0x4c   : > { %p7612_p10 = por %p7611_p6, %p7610_p13 }
  0x4d   : > { %p7608_p1 = pneg %p7607_p2 }
  0x4e   : > { %p7614_p7 = por %p7613_p3, %p7612_p10 }
  0x50   : > { %p7615_p9 = pnand %p7614_p7, %p7608_p1 }
  0x52   : > { %7618 = shalt.err (!%p7615_p9)
}
  0x53   : > { %s7619_s30 = scalar_lea.vmem %s7883_s10, 4096  ;;  %s7710_s15 = smov [#allocation4]  }
  0x54   : > { %p7620_p12 = scmp.ne.s32.totalorder %s7883_s10, %s7619_s30  ;;  %s7624_s16 = sshll.u32 %s7710_s15, 4  ;;  %s7625_s16 = int_to_ptr.vmem [resolvable:$false] %s7624_s16 }
  0x55   : > { %s7626_s9 = scalar_lea.vmem %s7625_s16, 8192  ;;  %p7627_p4 = scmp.lt.s32.totalorder %s7883_s10, %s7625_s16 }
  0x56   : > { %p7622_p2 = pnand %p7620_p12, %p7606_p0  ;;  %p7628_p13 = scmp.lt.s32.totalorder %s7626_s9, %s7619_s30 }
  0x58   : > { %p7623_p5 = pneg %p7622_p2  ;;  %p7629_p6 = por %p7628_p13, %p7627_p4 }
  0x5a   : > { %p7630_p10 = pnand %p7629_p6, %p7623_p5 }
  0x5c   : > { %7633 = shalt.err (!%p7630_p10)
}
  0x5d   : > { %s7711_s12 = smov 128   ;;  %s7712_s13 = smov 8  }
  0x5e   : > { %7350 = dma.hbm_to_vmem [thread:$0]  (!%p7885_p11), %s7881_s8, 4096, %s7883_s10, %s7889_s28, %s7711_s12, %s7711_s12, %s7712_s13  }
  0x5f   : > { %231 = sbr.rel (%p7788_p8) target bundleno = 1172 (0x494), region = 40 }
  0x66   : > { %s7920_s29 = sand.u32 1, %s7696_s19   ;;  %p9559_p4 = scmp.ne.s32.totalorder %s9552_s24, 0 }
  0x67   : > { %s5683_s17 = sshll.u32 %s7920_s29, 8  ;;  %s234_s7 = scalar_lea.sflag [#allocation5], %s7920_s29 }
  0x68   : > { %s7926_s6 = scalar_lea.vmem [#allocation4], %s5683_s17 }
  0x69   : > { %7679 = dma.done.wait (%p9559_p4), %s234_s7, 4096  }
  0x6a   : > { %7681 = vsyncadd (%p9559_p4), %s234_s7, 4294963200  ;;  %p9560_p5 = scmp.eq.s32.totalorder %s7769_s22, 0 }
  0x6c   : > { %7683 = dma.done.wait (%p9560_p5), [#allocation8], 18432   ;;  %p9561_p8 = pmov %p9560_p5 }
  0x6d   : > { %v7713_v0 = vmov 0.0   ;;  %v7714_v1 = vmov 0.0|0.0   ;;  %v7402_v2 = vld [vmem:[#allocation7 + $0x40] sm:$0xff]   ;;  %v7406_v6 = vld [vmem:[#allocation7 + $0x48] sm:$0xff]   ;;  %v7410_v10 = vld [vmem:[#allocation7 + $0x50] sm:$0xff]   ;;  %vm415_vm0 = vcmask 1040384  }
  0x6e   : > { %7685 = vsyncadd (%p9561_p8), [#allocation8], 4294948864  ;;  %274 = vst [vmem:[#allocation2 + $0x8] sm:$0xff] %v7713_v0  ;;  %1010 = vmatprep.mubr.bf16.mxu0 %v7714_v1  ;;  %v7403_v3 = vld [vmem:[#allocation7 + $0x100] sm:$0xff]   ;;  %5840 = vmatprep.subr.bf16.mxu0 %v7402_v2  ;;  %v7407_v7 = vld [vmem:[#allocation7 + $0x108] sm:$0xff]   ;;  %vm528_vm1 = vcmask 1046528  }
  0x6f   : > { %287 = vst [vmem:[#allocation2 + $0x30] sm:$0x1] %v7713_v0  ;;  %288 = vst [vmem:[#allocation2 + $0x60] sm:$0x1] %v7713_v0  ;;  %v7404_v4 = vld [vmem:[#allocation7] sm:$0xff]   ;;  %5976 = vmatprep.subr.bf16.mxu1 %v7403_v3  ;;  %v7408_v8 = vld [vmem:[#allocation7 + $0x8] sm:$0xff]  }
  0x70   : > { %289 = vst [vmem:[#allocation2 + $0x90] sm:$0x1] %v7713_v0  ;;  %290 = vst [vmem:[#allocation2 + $0xc0] sm:$0x1] %v7713_v0  ;;  %v7405_v5 = vld [vmem:[#allocation7 + $0xc0] sm:$0xff]   ;;  %5841 = vmatpush3.bf16.msra.mxu0 %v7404_v4  ;;  %v7409_v9 = vld [vmem:[#allocation7 + $0xc8] sm:$0xff]  }
  0x71   : > { %291 = vst [vmem:[#allocation2 + $0xf0] sm:$0x1] %v7713_v0  ;;  %292 = vst [vmem:[#allocation2 + $0x120] sm:$0x1] %v7713_v0  ;;  %5977 = vmatpush3.bf16.msra.mxu1 %v7405_v5  ;;  %5842 = vmatprep.subr.bf16.mxu0 %v7406_v6  ;;  %v7411_v11 = vld [vmem:[#allocation7 + $0x110] sm:$0xff]   ;;  %v7414_v14 = vld [vmem:[#allocation7 + $0x58] sm:$0xff]  }
  0x72   : > { %293 = vst [vmem:[#allocation2 + $0x150] sm:$0x1] %v7713_v0  ;;  %294 = vst [vmem:[#allocation2 + $0x180] sm:$0x1] %v7713_v0  ;;  %5978 = vmatprep.subr.bf16.mxu1 %v7407_v7  ;;  %v7412_v12 = vld [vmem:[#allocation7 + $0x10] sm:$0xff]   ;;  %v7415_v15 = vld [vmem:[#allocation7 + $0x118] sm:$0xff]  }
  0x73   : > { %295 = vst [vmem:[#allocation2 + $0x1b0] sm:$0x1] %v7713_v0  ;;  %296 = vst [vmem:[#allocation2 + $0x1e0] sm:$0x1] %v7713_v0  ;;  %v7413_v13 = vld [vmem:[#allocation7 + $0xd0] sm:$0xff]   ;;  %v7416_v16 = vld [vmem:[#allocation7 + $0x18] sm:$0xff]  }
  0x74   : > { %297 = vst [vmem:[#allocation2 + $0x210] sm:$0x1] %v7713_v0  ;;  %298 = vst [vmem:[#allocation2 + $0x240] sm:$0x1] %v7713_v0  ;;  %5843 = vmatpush3.bf16.msra.mxu0 %v7408_v8  ;;  %v7417_v17 = vld [vmem:[#allocation7 + $0xd8] sm:$0xff]   ;;  %v7418_v18 = vld [vmem:[#allocation7 + $0x60] sm:$0xff]  }
  0x75   : > { %299 = vst [vmem:[#allocation2 + $0x270] sm:$0x1] %v7713_v0  ;;  %300 = vst [vmem:[#allocation2 + $0x2a0] sm:$0x1] %v7713_v0  ;;  %5979 = vmatpush3.bf16.msra.mxu1 %v7409_v9  ;;  %5844 = vmatprep.subr.bf16.mxu0 %v7410_v10  ;;  %v7419_v19 = vld [vmem:[#allocation7 + $0x120] sm:$0xff]   ;;  %v7422_v22 = vld [vmem:[#allocation7 + $0x68] sm:$0xff]  }
  0x76   : > { %301 = vst [vmem:[#allocation2 + $0x2d0] sm:$0x1] %v7713_v0  ;;  %302 = vst [vmem:[#allocation2 + $0x300] sm:$0x1] %v7713_v0  ;;  %5980 = vmatprep.subr.bf16.mxu1 %v7411_v11  ;;  %v7420_v20 = vld [vmem:[#allocation7 + $0x20] sm:$0xff]   ;;  %v7423_v23 = vld [vmem:[#allocation7 + $0x128] sm:$0xff]  }
  0x77   : > { %303 = vst [vmem:[#allocation2 + $0x5f] sm:$0x1] %v7713_v0  ;;  %304 = vst [vmem:[#allocation2 + $0x8f] sm:$0x1] %v7713_v0  ;;  %v7421_v21 = vld [vmem:[#allocation7 + $0xe0] sm:$0xff]   ;;  %v7424_v24 = vld [vmem:[#allocation7 + $0x28] sm:$0xff]  }
  0x78   : > { %305 = vst [vmem:[#allocation2 + $0xbf] sm:$0x1] %v7713_v0  ;;  %306 = vst [vmem:[#allocation2 + $0xef] sm:$0x1] %v7713_v0  ;;  %5845 = vmatpush3.bf16.msra.mxu0 %v7412_v12  ;;  %v7425_v25 = vld [vmem:[#allocation7 + $0xe8] sm:$0xff]   ;;  %v7426_v26 = vld [vmem:[#allocation7 + $0x70] sm:$0xff]  }
  0x79   : > { %307 = vst [vmem:[#allocation2 + $0x11f] sm:$0x1] %v7713_v0  ;;  %308 = vst [vmem:[#allocation2 + $0x14f] sm:$0x1] %v7713_v0  ;;  %5981 = vmatpush3.bf16.msra.mxu1 %v7413_v13  ;;  %5846 = vmatprep.subr.bf16.mxu0 %v7414_v14  ;;  %v7427_v27 = vld [vmem:[#allocation7 + $0x130] sm:$0xff]   ;;  %v7430_v30 = vld [vmem:[#allocation7 + $0x78] sm:$0xff]  }
  0x7a   : > { %309 = vst [vmem:[#allocation2 + $0x17f] sm:$0x1] %v7713_v0  ;;  %310 = vst [vmem:[#allocation2 + $0x1af] sm:$0x1] %v7713_v0  ;;  %5982 = vmatprep.subr.bf16.mxu1 %v7415_v15  ;;  %v7428_v28 = vld [vmem:[#allocation7 + $0x30] sm:$0xff]   ;;  %v7431_v31 = vld [vmem:[#allocation7 + $0x138] sm:$0xff]  }
  0x7b   : > { %311 = vst [vmem:[#allocation2 + $0x1df] sm:$0x1] %v7713_v0  ;;  %312 = vst [vmem:[#allocation2 + $0x20f] sm:$0x1] %v7713_v0  ;;  %v7429_v29 = vld [vmem:[#allocation7 + $0xf0] sm:$0xff]   ;;  %v7432_v32 = vld [vmem:[#allocation7 + $0x38] sm:$0xff]  }
  0x7c   : > { %313 = vst [vmem:[#allocation2 + $0x23f] sm:$0x1] %v7713_v0  ;;  %314 = vst [vmem:[#allocation2 + $0x26f] sm:$0x1] %v7713_v0  ;;  %5847 = vmatpush3.bf16.msra.mxu0 %v7416_v16  ;;  %v7433_v33 = vld [vmem:[#allocation7 + $0xf8] sm:$0xff]   ;;  %v7938_v34 = vld [vmem:[%s7926_s6] sm:$0xff] }
  0x7d   : > { %315 = vst [vmem:[#allocation2 + $0x29f] sm:$0x1] %v7713_v0  ;;  %316 = vst [vmem:[#allocation2 + $0x2cf] sm:$0x1] %v7713_v0  ;;  %5983 = vmatpush3.bf16.msra.mxu1 %v7417_v17  ;;  %5848 = vmatprep.subr.bf16.mxu0 %v7418_v18  ;;  %v7941_v35 = vld [vmem:[%s7926_s6 + $0x8] sm:$0xff]  ;;  %v416_v36 = vrot.slane %v7938_v34, 7 }
  0x7e   : > { %317 = vst [vmem:[#allocation2 + $0x2ff] sm:$0x1] %v7713_v0  ;;  %318 = vst [vmem:[#allocation2 + $0x32f] sm:$0x1] %v7713_v0  ;;  %5984 = vmatprep.subr.bf16.mxu1 %v7419_v19  ;;  %v530_v37 = vrot.slane %v7941_v35, 1  ;;  %v1499_v38 = vpack.c.bf16 %v7941_v35, %v7938_v34  ;;  %v7434_v39 = vld [vmem:[#allocation7 + $0x80] sm:$0xff]  }
  0x7f   : > { %v7948_v40 = vld [vmem:[%s7926_s6 + $0x10] sm:$0xff]  ;;  %v7951_v41 = vld [vmem:[%s7926_s6 + $0x18] sm:$0xff]  ;;  %496 = vst [vmem:[#allocation2 + $0x30] sm:$0xfe] %v416_v36  ;;  %v7961_v44 = vld [vmem:[%s7926_s6 + $0x20] sm:$0xff]  ;;  %v417_v47 = vrot.slane %v7941_v35, 7 }
  0x80   : > { %5849 = vmatpush3.bf16.msra.mxu0 %v7420_v20  ;;  %610 = vst [vmem:[#allocation2 + $0x58] sm:$0x7f] %v530_v37  ;;  %353 = vst [vmem:[#allocation2 + $0x68] sm:$0xff] %v7948_v40  ;;  %v420_v42 = vrot.slane %v7951_v41, 7  ;;  %v533_v43 = vrot.slane %v7951_v41, 1  ;;  %v7964_v45 = vld [vmem:[%s7926_s6 + $0x28] sm:$0xff]  ;;  %1771 = vmatprep.mubr.bf16.mxu1 %v1499_v38  ;;  %v1502_v10 = vpack.c.bf16 %v7951_v41, %v7948_v40 }
  0x81   : > { %5985 = vmatpush3.bf16.msra.mxu1 %v7421_v21  ;;  %5850 = vmatprep.subr.bf16.mxu0 %v7422_v22  ;;  %354 = vst [vmem:[#allocation2 + $0x80] sm:$0xff] %v7951_v41  ;;  %v7435_v46 = vld [vmem:[#allocation7 + $0x88] sm:$0xff]   ;;  %v419_v48 = vrot.slane %v7948_v40, 7  ;;  %355 = vst [vmem:[#allocation2 + $0x98] sm:$0xff] %v7961_v44  ;;  %v423_v49 = vrot.slane %v7964_v45, 7  ;;  %v7972_v50 = vld [vmem:[%s7926_s6 + $0x30] sm:$0xff]  ;;  %v418_v63 = vsel %vm415_vm0, %v416_v36, %v417_v47 }
  0x82   : > { %5986 = vmatprep.subr.bf16.mxu1 %v7423_v23  ;;  %356 = vst [vmem:[#allocation2 + $0xb0] sm:$0xff] %v7964_v45  ;;  %612 = vst [vmem:[#allocation2 + $0x88] sm:$0x7f] %v533_v43  ;;  %v422_v51 = vrot.slane %v7961_v44, 7  ;;  %v7978_v52 = vld [vmem:[%s7926_s6 + $0x38] sm:$0xff]  ;;  %v425_v53 = vrot.slane %v7972_v50, 7 }
  0x83   : > { %357 = vst [vmem:[#allocation2 + $0xc8] sm:$0xff] %v7972_v50  ;;  %v7983_v54 = vsel %vm415_vm0, %v419_v48, %v420_v42  ;;  %498 = vst [vmem:[#allocation2 + $0x60] sm:$0xfe] %v419_v48  ;;  %v426_v55 = vrot.slane %v7978_v52, 7  ;;  %v7988_v56 = vld [vmem:[%s7926_s6 + $0x40] sm:$0xff]  ;;  %v7991_v57 = vld [vmem:[%s7926_s6 + $0x48] sm:$0xff] }
  0x84   : > { %5851 = vmatpush3.bf16.msra.mxu0 %v7424_v24  ;;  %358 = vst [vmem:[#allocation2 + $0xe0] sm:$0xff] %v7978_v52  ;;  %v529_v58 = vrot.slane %v7938_v34, 1  ;;  %499 = vst [vmem:[#allocation2 + $0x78] sm:$0xff] %v7983_v54  ;;  %v7996_v59 = vsel %vm415_vm0, %v422_v51, %v423_v49  ;;  %v429_v60 = vrot.slane %v7991_v57, 7  ;;  %v7436_v61 = vld [vmem:[#allocation7 + $0x90] sm:$0xff]   ;;  %v8011_v2 = vld [vmem:[%s7926_s6 + $0x58] sm:$0xff]  ;;  %v1505_v49 = vpack.c.bf16 %v7964_v45, %v7961_v44 }
  0x85   : > { %5987 = vmatpush3.bf16.msra.mxu1 %v7425_v25  ;;  %5852 = vmatprep.subr.bf16.mxu0 %v7426_v26  ;;  %500 = vst [vmem:[#allocation2 + $0x90] sm:$0xfe] %v422_v51  ;;  %502 = vst [vmem:[#allocation2 + $0xc0] sm:$0xfe] %v425_v53  ;;  %v8002_v62 = vld [vmem:[%s7926_s6 + $0x50] sm:$0xff]  ;;  %v8007_v0 = vsel %vm415_vm0, %v425_v53, %v426_v55  ;;  %v8016_v4 = vld [vmem:[%s7926_s6 + $0x60] sm:$0xff] }
  0x86   : > { %5988 = vmatprep.subr.bf16.mxu1 %v7427_v27  ;;  %359 = vst [vmem:[#allocation2 + $0xf8] sm:$0xff] %v7988_v56  ;;  %360 = vst [vmem:[#allocation2 + $0x110] sm:$0xff] %v7991_v57  ;;  %v431_v3 = vrot.slane %v8002_v62, 7  ;;  %v8019_v5 = vld [vmem:[%s7926_s6 + $0x68] sm:$0xff]  ;;  %v532_v6 = vrot.slane %v7948_v40, 1  ;;  %v432_v7 = vrot.slane %v8011_v2, 7  ;;  %v8063_v24 = vsel %vm528_vm1, %v529_v58, %v530_v37 }
  0x87   : > { %501 = vst [vmem:[#allocation2 + $0xa8] sm:$0xff] %v7996_v59  ;;  %361 = vst [vmem:[#allocation2 + $0x128] sm:$0xff] %v8002_v62  ;;  %v435_v8 = vrot.slane %v8019_v5, 7  ;;  %v1402_v9 = vld [vmem:[#allocation2 + $0x30] sm:$0xff]  ;;  %v8033_v12 = vld [vmem:[#allocation7 + $0x98] sm:$0xff]   ;;  %v434_v13 = vrot.slane %v8016_v4, 7 }
  0x88   : > { %5853 = vmatpush3.bf16.msra.mxu0 %v7428_v28  ;;  %503 = vst [vmem:[#allocation2 + $0xd8] sm:$0xff] %v8007_v0  ;;  %362 = vst [vmem:[#allocation2 + $0x140] sm:$0xff] %v8011_v2  ;;  %v8037_v14 = vld [vmem:[%s7926_s6 + $0x70] sm:$0xff]  ;;  %v1498_v15 = vpack.c.bf16 %v418_v63, %v1402_v9  ;;  %v8041_v16 = vsel %vm415_vm0, %v431_v3, %v432_v7  ;;  %v8044_v17 = vld [vmem:[%s7926_s6 + $0x78] sm:$0xff]  ;;  %v535_v25 = vrot.slane %v7961_v44, 1  ;;  %v539_v36 = vrot.slane %v7978_v52, 1 }
  0x89   : > { %5989 = vmatpush3.bf16.msra.mxu1 %v7429_v29  ;;  %5854 = vmatprep.subr.bf16.mxu0 %v7430_v30  ;;  %363 = vst [vmem:[#allocation2 + $0x158] sm:$0xff] %v8016_v4  ;;  %364 = vst [vmem:[#allocation2 + $0x170] sm:$0xff] %v8019_v5  ;;  %v437_v18 = vrot.slane %v8037_v14, 7  ;;  %v7438_v19 = vld [vmem:[#allocation7 + $0x140] sm:$0xff]   ;;  %v8050_v20 = vsel %vm415_vm0, %v434_v13, %v435_v8  ;;  %v438_v21 = vrot.slane %v8044_v17, 7  ;;  %v8058_v23 = vld [vmem:[%s7926_s6 + $0x88] sm:$0xff] }
  0x8a   : > { %5990 = vmatprep.subr.bf16.mxu1 %v7431_v31  ;;  %506 = vst [vmem:[#allocation2 + $0x120] sm:$0xfe] %v431_v3  ;;  %365 = vst [vmem:[#allocation2 + $0x188] sm:$0xff] %v8037_v14  ;;  %v8055_v22 = vld [vmem:[%s7926_s6 + $0x80] sm:$0xff]  ;;  %v441_v26 = vrot.slane %v8058_v23, 7  ;;  %v8073_v27 = vsel %vm528_vm1, %v532_v6, %v533_v43  ;;  %v8085_v34 = vld [vmem:[%s7926_s6 + $0x90] sm:$0xff] }
  0x8b   : > { %507 = vst [vmem:[#allocation2 + $0x138] sm:$0xff] %v8041_v16  ;;  %508 = vst [vmem:[#allocation2 + $0x150] sm:$0xfe] %v434_v13  ;;  %v1408_v28 = vld [vmem:[#allocation2 + $0x60] sm:$0xff]  ;;  %v8076_v29 = vsel %vm415_vm0, %v437_v18, %v438_v21  ;;  %v440_v31 = vrot.slane %v8055_v22, 7  ;;  %v8088_v35 = vld [vmem:[%s7926_s6 + $0x98] sm:$0xff] }
  0x8c   : > { %5855 = vmatpush3.bf16.msra.mxu0 %v7432_v32  ;;  %366 = vst [vmem:[#allocation2 + $0x1a0] sm:$0xff] %v8044_v17  ;;  %509 = vst [vmem:[#allocation2 + $0x168] sm:$0xff] %v8050_v20  ;;  %v8078_v30 = vld [vmem:[#allocation7 + $0xa0] sm:$0xff]   ;;  %v536_v32 = vrot.slane %v7964_v45, 1  ;;  %v541_v37 = vrot.slane %v7988_v56, 1  ;;  %v7440_v40 = vld [vmem:[#allocation7 + $0x148] sm:$0xff]   ;;  %v1501_v42 = vpack.c.bf16 %v7983_v54, %v1408_v28 }
  0x8d   : > { %5991 = vmatpush3.bf16.msra.mxu1 %v7433_v33  ;;  %6656 = vmatprep.subr.bf16.mxu0 %v7434_v39  ;;  %510 = vst [vmem:[#allocation2 + $0x180] sm:$0xfe] %v437_v18  ;;  %367 = vst [vmem:[#allocation2 + $0x1b8] sm:$0xff] %v8055_v22  ;;  %v538_v33 = vrot.slane %v7972_v50, 1  ;;  %v8100_v41 = vld [vmem:[%s7926_s6 + $0xa0] sm:$0xff]  ;;  %v443_v43 = vrot.slane %v8085_v34, 7 }
  0x8e   : > { %368 = vst [vmem:[#allocation2 + $0x1d0] sm:$0xff] %v8058_v23  ;;  %511 = vst [vmem:[#allocation2 + $0x198] sm:$0xff] %v8076_v29  ;;  %6704 = vmatprep.subr.bf16.mxu1 %v7438_v19  ;;  %v446_v47 = vrot.slane %v8100_v41, 7  ;;  %v8111_v48 = vsel %vm528_vm1, %v535_v25, %v536_v32  ;;  %v544_v51 = vrot.slane %v8002_v62, 1  ;;  %v1414_v55 = vld [vmem:[#allocation2 + $0x90] sm:$0xff]  ;;  %v8130_v45 = vld [vmem:[%s7926_s6 + $0xb8] sm:$0xff] }
  0x8f   : > { %1011 = vmatmul.mubr.bf16.vlgmr.msra.gmra.mrb[0].mxu0 %v7714_v1  ;;  %v428_v1 = vrot.slane %v7988_v56, 7  ;;  %512 = vst [vmem:[#allocation2 + $0x1b0] sm:$0xfe] %v440_v31  ;;  %369 = vst [vmem:[#allocation2 + $0x1e8] sm:$0xff] %v8085_v34  ;;  %v8127_v44 = vld [vmem:[%s7926_s6 + $0xb0] sm:$0xff]  ;;  %v545_v63 = vrot.slane %v8011_v2, 1 }
  0x90   : > { %6657 = vmatpush3.bf16.msra.mxu0 %v7434_v39  ;;  %1018 = vmatprep.mubr.bf16.mxu0 %v1499_v38  ;;  %v8094_v38 = vsel %vm415_vm0, %v440_v31, %v441_v26  ;;  %370 = vst [vmem:[#allocation2 + $0x200] sm:$0xff] %v8088_v35  ;;  %v444_v39 = vrot.slane %v8088_v35, 7  ;;  %614 = vst [vmem:[#allocation2 + $0xb8] sm:$0x7f] %v536_v32  ;;  %v450_v6 = vrot.slane %v8130_v45, 7  ;;  %v7442_v7 = vld [vmem:[#allocation7 + $0x150] sm:$0xff]  }
  0x91   : > { %6658 = vmatprep.subr.bf16.mxu0 %v7435_v46  ;;  %v8031_v11 = vsel %vm415_vm0, %v428_v1, %v429_v60  ;;  %504 = vst [vmem:[#allocation2 + $0xf0] sm:$0xfe] %v428_v1  ;;  %1772 = vmatmul.mubr.bf16.vlgmr.msra.gmra.mrb[0].mxu1 %v1498_v15  ;;  %513 = vst [vmem:[#allocation2 + $0x1c8] sm:$0xff] %v8094_v38  ;;  %v8133_v60 = vsel %vm528_vm1, %v538_v33, %v539_v36  ;;  %v7441_v1 = vld [vmem:[#allocation7 + $0xa8] sm:$0xff]   ;;  %v449_v9 = vrot.slane %v8127_v44, 7  ;;  %v7443_v25 = vld [vmem:[#allocation7 + $0xb0] sm:$0xff]  }
  0x92   : > { %505 = vst [vmem:[#allocation2 + $0x108] sm:$0xff] %v8031_v11  ;;  %1779 = vmatprep.mubr.bf16.mxu1 %v1502_v10  ;;  %6705 = vmatpush3.bf16.msra.mxu1 %v7438_v19  ;;  %371 = vst [vmem:[#allocation2 + $0x218] sm:$0xff] %v8100_v41  ;;  %v8124_v58 = vsel %vm415_vm0, %v443_v43, %v444_v39  ;;  %v8148_v8 = vpack.c.bf16 %v8130_v45, %v8127_v44  ;;  %v8176_v28 = vld [vmem:[%s7926_s6 + $0xd0] sm:$0xff]  ;;  %v547_v32 = vrot.slane %v8016_v4, 1  ;;  %s9430_s11 = scalar_lea.vmem [#allocation10], %s5683_s17  ;;  %s5839_s28 = sshll.u32 %s7769_s22, 12 }
  0x93   : > { %616 = vst [vmem:[#allocation2 + $0xe8] sm:$0x7f] %v539_v36  ;;  %6706 = vmatprep.subr.bf16.mxu1 %v7440_v40  ;;  %514 = vst [vmem:[#allocation2 + $0x1e0] sm:$0xfe] %v443_v43  ;;  %v8168_v19 = vsel %vm528_vm1, %v544_v51, %v545_v63  ;;  %v8172_v21 = vsel %vm415_vm0, %v449_v9, %v450_v6  ;;  %v1504_v31 = vpack.c.bf16 %v7996_v59, %v1414_v55  ;;  %v7444_v36 = vld [vmem:[#allocation7 + $0x158] sm:$0xff]   ;;  %s5582_s30 = sshll.u32 %s9430_s11, 4  ;;  %s9494_s9 = scalar_lea.hbm %s9548_s5, %s5839_s28  ;;  %s9496_s30 = int_to_ptr.vmem [resolvable:$true] %s5582_s30 }
  0x94   : > { %6659 = vmatpush3.bf16.msra.mxu0 %v7435_v46  ;;  %v8106_v46 = vld [vmem:[%s7926_s6 + $0xa8] sm:$0xff]  ;;  %516 = vst [vmem:[#allocation2 + $0x210] sm:$0xfe] %v446_v47  ;;  %515 = vst [vmem:[#allocation2 + $0x1f8] sm:$0xff] %v8124_v58  ;;  %v455_v33 = vrot.slane %v8176_v28, 7  ;;  %v548_v43 = vrot.slane %v8019_v5, 1 }
  0x95   : > { %6660 = vmatprep.subr.bf16.mxu0 %v7436_v61  ;;  %372 = vst [vmem:[#allocation2 + $0x230] sm:$0xff] %v8106_v46  ;;  %v447_v53 = vrot.slane %v8106_v46, 7  ;;  %v8120_v54 = vpack.c.bf16 %v8106_v46, %v8100_v41  ;;  %373 = vst [vmem:[#allocation2 + $0x248] sm:$0xff] %v8127_v44  ;;  %s5569_s22 = scalar_lea.sflag [#allocation6], %s7920_s29  ;;  %s7634_s12 = scalar_lea.vmem %s9496_s30, 4096 }
  0x96   : > { %6707 = vmatpush3.bf16.msra.mxu1 %v7440_v40  ;;  %374 = vst [vmem:[#allocation2 + $0x260] sm:$0xff] %v8130_v45  ;;  %620 = vst [vmem:[#allocation2 + $0x148] sm:$0x7f] %v545_v63  ;;  %v8196_v40 = vld [vmem:[%s7926_s6 + $0xe0] sm:$0xff]  ;;  %v551_v63 = vrot.slane %v8044_v17, 1  ;;  %p7635_p11 = scmp.ne.s32.totalorder %s9496_s30, %s7634_s12  ;;  %p9590_p0 = scmp.ne.s32.totalorder %s9557_s23, 0 }
  0x97   : > { %1019 = vmatmul.mubr.bf16.gmra.mrb[4].mxu0 %v1498_v15  ;;  %v8140_v3 = vsel %vm415_vm0, %v446_v47, %v447_v53  ;;  %518 = vst [vmem:[#allocation2 + $0x240] sm:$0xfe] %v449_v9  ;;  %6708 = vmatprep.subr.bf16.mxu1 %v7442_v7  ;;  %519 = vst [vmem:[#allocation2 + $0x258] sm:$0xff] %v8172_v21  ;;  %v1508_v47 = vpack.c.bf16 %v7978_v52, %v7972_v50  ;;  %v7445_v52 = vld [vmem:[#allocation7 + $0xb8] sm:$0xff]   ;;  %v458_v55 = vrot.slane %v8196_v40, 7  ;;  %s7715_s13 = smov [#allocation10]  }
  0x98   : > { %1026 = vmatprep.mubr.bf16.mxu0 %v1502_v10  ;;  %6661 = vmatpush3.bf16.msra.mxu0 %v7436_v61  ;;  %v542_v61 = vrot.slane %v7991_v57, 1  ;;  %517 = vst [vmem:[#allocation2 + $0x228] sm:$0xff] %v8140_v3  ;;  %v8152_v10 = vld [vmem:[%s7926_s6 + $0xc0] sm:$0xff]  ;;  %377 = vst [vmem:[#allocation2 + $0x2a8] sm:$0xff] %v8176_v28  ;;  %v8226_v9 = vsel %vm528_vm1, %v547_v32, %v548_v43  ;;  %p7636_p1 = pnand %p7635_p11, %p9590_p0  ;;  %s7638_s17 = sshll.u32 %s7715_s13, 4  ;;  %s7639_s17 = int_to_ptr.vmem [resolvable:$false] %s7638_s17 }
  0x99   : > { %6662 = vmatprep.subr.bf16.mxu0 %v8033_v12  ;;  %1780 = vmatmul.mubr.bf16.gmra.mrb[4].mxu1 %v1501_v42  ;;  %375 = vst [vmem:[#allocation2 + $0x278] sm:$0xff] %v8152_v10  ;;  %v452_v26 = vrot.slane %v8152_v10, 7  ;;  %522 = vst [vmem:[#allocation2 + $0x2a0] sm:$0xfe] %v455_v33  ;;  %s7640_s7 = scalar_lea.vmem %s7639_s17, 8192  ;;  %p7641_p7 = scmp.lt.s32.totalorder %s9496_s30, %s7639_s17 }
  0x9a   : > { %v8158_v13 = vsel %vm528_vm1, %v541_v37, %v542_v61  ;;  %618 = vst [vmem:[#allocation2 + $0x118] sm:$0x7f] %v542_v61  ;;  %1787 = vmatprep.mubr.bf16.mxu1 %v1505_v49  ;;  %6709 = vmatpush3.bf16.msra.mxu1 %v7442_v7  ;;  %379 = vst [vmem:[#allocation2 + $0x2d8] sm:$0xff] %v8196_v40  ;;  %v7446_v61 = vld [vmem:[#allocation7 + $0x160] sm:$0xff]   ;;  %v8223_v7 = vld [vmem:[%s7926_s6 + $0xf0] sm:$0xff]  ;;  %p7637_p3 = pneg %p7636_p1  ;;  %p7642_p9 = scmp.lt.s32.totalorder %s7640_s7, %s7634_s12 }
  0x9b   : > { %520 = vst [vmem:[#allocation2 + $0x270] sm:$0xfe] %v452_v26  ;;  %6710 = vmatprep.subr.bf16.mxu1 %v7444_v36  ;;  %622 = vst [vmem:[#allocation2 + $0x178] sm:$0x7f] %v548_v43 }
  0x9c   : > { %6663 = vmatpush3.bf16.msra.mxu0 %v8033_v12  ;;  %v8155_v12 = vld [vmem:[%s7926_s6 + $0xc8] sm:$0xff]  ;;  %524 = vst [vmem:[#allocation2 + $0x2d0] sm:$0xfe] %v458_v55  ;;  %381 = vst [vmem:[#allocation2 + $0x308] sm:$0xff] %v8223_v7  ;;  %p7643_p12 = por %p7642_p9, %p7641_p7 }
  0x9d   : > { %6664 = vmatprep.subr.bf16.mxu0 %v8078_v30  ;;  %376 = vst [vmem:[#allocation2 + $0x290] sm:$0xff] %v8155_v12  ;;  %v453_v15 = vrot.slane %v8155_v12, 7  ;;  %v8165_v18 = vpack.c.bf16 %v8155_v12, %v8152_v10  ;;  %624 = vst [vmem:[#allocation2 + $0x1a8] sm:$0x7f] %v551_v63 }
  0x9e   : > { %6711 = vmatpush3.bf16.msra.mxu1 %v7444_v36  ;;  %p7644_p2 = pnand %p7643_p12, %p7637_p3 }
  0x9f   : > { %1027 = vmatmul.mubr.bf16.gmra.mrb[8].mxu0 %v1501_v42  ;;  %v8187_v37 = vsel %vm415_vm0, %v452_v26, %v453_v15  ;;  %v8199_v42 = vld [vmem:[%s7926_s6 + $0xe8] sm:$0xff]  ;;  %v1420_v15 = vld [vmem:[#allocation2 + $0xc0] sm:$0xff]  ;;  %v8230_v26 = vld [vmem:[%s7926_s6 + $0xf8] sm:$0xff]  ;;  %6712 = vmatprep.subr.bf16.mxu1 %v7446_v61 }
  0xa0   : > { %1034 = vmatprep.mubr.bf16.mxu0 %v1505_v49  ;;  %6665 = vmatpush3.bf16.msra.mxu0 %v8078_v30  ;;  %v8182_v30 = vld [vmem:[%s7926_s6 + $0xd8] sm:$0xff]  ;;  %v550_v49 = vrot.slane %v8037_v14, 1  ;;  %521 = vst [vmem:[#allocation2 + $0x288] sm:$0xff] %v8187_v37  ;;  %380 = vst [vmem:[#allocation2 + $0x2f0] sm:$0xff] %v8199_v42  ;;  %v459_v51 = vrot.slane %v8199_v42, 7  ;;  %v8211_v53 = vpack.c.bf16 %v8199_v42, %v8196_v40  ;;  %v462_v32 = vrot.slane %v8230_v26, 7 }
  0xa1   : > { %6666 = vmatprep.subr.bf16.mxu0 %v7441_v1  ;;  %378 = vst [vmem:[#allocation2 + $0x2c0] sm:$0xff] %v8182_v30  ;;  %v456_v59 = vrot.slane %v8182_v30, 7  ;;  %v8193_v39 = vpack.c.bf16 %v8182_v30, %v8176_v28  ;;  %1788 = vmatmul.mubr.bf16.gmra.mrb[8].mxu1 %v1504_v31  ;;  %382 = vst [vmem:[#allocation2 + $0x320] sm:$0xff] %v8230_v26  ;;  %v1544_v36 = vpack.c.bf16 %v8230_v26, %v8223_v7 }
  0xa2   : > { %v8220_v6 = vsel %vm415_vm0, %v458_v55, %v459_v51  ;;  %1795 = vmatprep.mubr.bf16.mxu1 %v1508_v47  ;;  %6713 = vmatpush3.bf16.msra.mxu1 %v7446_v61  ;;  %v1507_v43 = vpack.c.bf16 %v8007_v0, %v1420_v15  ;;  %v1511_v51 = vpack.c.bf16 %v7991_v57, %v7988_v56  ;;  %v556_v55 = vrot.slane %v8085_v34, 1  ;;  %v7450_v61 = vld [vmem:[#allocation7 + $0x1c0] sm:$0xff]   ;;  %v7449_v0 = vld [vmem:[#allocation7 + $0x178] sm:$0xff]   ;;  %v1426_v15 = vld [vmem:[#allocation2 + $0xf0] sm:$0xff] }
  0xa3   : > { %v8214_v50 = vsel %vm415_vm0, %v455_v33, %v456_v59  ;;  %525 = vst [vmem:[#allocation2 + $0x2e8] sm:$0xff] %v8220_v6  ;;  %v8235_v33 = vsel %vm528_vm1, %v550_v49, %v551_v63  ;;  %v554_v59 = vrot.slane %v8058_v23, 1  ;;  %v557_v49 = vrot.slane %v8088_v35, 1  ;;  %v7448_v63 = vld [vmem:[#allocation7 + $0x170] sm:$0xff]  }
  0xa4   : > { %6667 = vmatpush3.bf16.msra.mxu0 %v7441_v1  ;;  %523 = vst [vmem:[#allocation2 + $0x2b8] sm:$0xff] %v8214_v50  ;;  %v7447_v1 = vld [vmem:[#allocation7 + $0x168] sm:$0xff]   ;;  %v560_v57 = vrot.slane %v8106_v46, 1  ;;  %v8271_v46 = vld [vmem:[#allocation7 + $0x200] sm:$0xff]  }
  0xa5   : > { %6668 = vmatprep.subr.bf16.mxu0 %v7443_v25  ;;  %6714 = vmatprep.subr.bf16.mxu1 %v7447_v1  ;;  %626 = vst [vmem:[#allocation2 + $0x1d8] sm:$0x7f] %v554_v59  ;;  %628 = vst [vmem:[#allocation2 + $0x208] sm:$0x7f] %v557_v49  ;;  %v8256_v56 = vsel %vm528_vm1, %v556_v55, %v557_v49  ;;  %v1517_v49 = vpack.c.bf16 %v8019_v5, %v8016_v4  ;;  %v1438_v55 = vld [vmem:[#allocation2 + $0x150] sm:$0xff]  ;;  %v571_v4 = vrot.slane %v8196_v40, 1 }
  0xa6   : > { %6715 = vmatpush3.bf16.msra.mxu1 %v7447_v1  ;;  %v559_v1 = vrot.slane %v8100_v41, 1  ;;  %630 = vst [vmem:[#allocation2 + $0x238] sm:$0x7f] %v560_v57  ;;  %v575_v5 = vrot.slane %v8230_v26, 1  ;;  %v7453_v26 = vld [vmem:[#allocation7 + $0x188] sm:$0xff]  }
  0xa7   : > { %1035 = vmatmul.mubr.bf16.gmra.mrb[12].mxu0 %v1504_v31  ;;  %v461_v31 = vrot.slane %v8223_v7, 7  ;;  %6716 = vmatprep.subr.bf16.mxu1 %v7448_v63 }
  0xa8   : > { %1042 = vmatprep.mubr.bf16.mxu0 %v1508_v47  ;;  %6669 = vmatpush3.bf16.msra.mxu0 %v7443_v25  ;;  %v553_v47 = vrot.slane %v8055_v22, 1  ;;  %640 = vst [vmem:[#allocation2 + $0x328] sm:$0x7f] %v575_v5 }
  0xa9   : > { %6670 = vmatprep.subr.bf16.mxu0 %v7445_v52  ;;  %526 = vst [vmem:[#allocation2 + $0x300] sm:$0xfe] %v461_v31  ;;  %v8245_v25 = vsel %vm415_vm0, %v461_v31, %v462_v32  ;;  %1796 = vmatmul.mubr.bf16.gmra.mrb[12].mxu1 %v1507_v43  ;;  %v563_v32 = vrot.slane %v8130_v45, 1  ;;  %v569_v45 = vrot.slane %v8182_v30, 1  ;;  %v1516_v30 = vpack.c.bf16 %v8050_v20, %v1438_v55 }
  0xaa   : > { %527 = vst [vmem:[#allocation2 + $0x318] sm:$0xff] %v8245_v25  ;;  %1803 = vmatprep.mubr.bf16.mxu1 %v1511_v51  ;;  %v8253_v31 = vsel %vm528_vm1, %v553_v47, %v554_v59  ;;  %6717 = vmatpush3.bf16.msra.mxu1 %v7448_v63  ;;  %v562_v59 = vrot.slane %v8127_v44, 1  ;;  %v8266_v47 = vsel %vm528_vm1, %v559_v1, %v560_v57  ;;  %v565_v44 = vrot.slane %v8152_v10, 1  ;;  %v1444_v63 = vld [vmem:[#allocation2 + $0x180] sm:$0xff] }
  0xab   : > { %6718 = vmatprep.subr.bf16.mxu1 %v7449_v0  ;;  %632 = vst [vmem:[#allocation2 + $0x268] sm:$0x7f] %v563_v32  ;;  %636 = vst [vmem:[#allocation2 + $0x2c8] sm:$0x7f] %v569_v45  ;;  %v572_v10 = vrot.slane %v8199_v42, 1  ;;  %v1519_v40 = vpack.c.bf16 %v8076_v29, %v1444_v63  ;;  %v1456_v57 = vld [vmem:[#allocation2 + $0x1e0] sm:$0xff] }
  0xac   : > { %6671 = vmatpush3.bf16.msra.mxu0 %v7445_v52  ;;  %v1510_v52 = vpack.c.bf16 %v8031_v11, %v1426_v15  ;;  %v1432_v11 = vld [vmem:[#allocation2 + $0x120] sm:$0xff]  ;;  %v8269_v41 = vsel %vm528_vm1, %v562_v59, %v563_v32  ;;  %v1526_v15 = vpack.c.bf16 %v8088_v35, %v8085_v34  ;;  %v1525_v29 = vpack.c.bf16 %v8124_v58, %v1456_v57  ;;  %v7455_v59 = vld [vmem:[#allocation7 + $0x190] sm:$0xff]  }
  0xad   : > { %6112 = vmatprep.subr.bf16.mxu0 %v7450_v61  ;;  %v574_v61 = vrot.slane %v8223_v7, 1  ;;  %638 = vst [vmem:[#allocation2 + $0x2f8] sm:$0x7f] %v572_v10  ;;  %v1468_v34 = vld [vmem:[#allocation2 + $0x240] sm:$0xff]  ;;  %v1419_v7 = vld [vmem:[#allocation2 + $0xb8] sm:$0xff] }
  0xae   : > { %6719 = vmatpush3.bf16.msra.mxu1 %v7449_v0  ;;  %v8295_v0 = vsel %vm528_vm1, %v571_v4, %v572_v10  ;;  %v1531_v35 = vpack.c.bf16 %v8172_v21, %v1468_v34  ;;  %v1480_v58 = vld [vmem:[#allocation2 + $0x2a0] sm:$0xff]  ;;  %v7546_v21 = vld [vmem:[#allocation2 + $0x8] sm:$0xff] }
  0xaf   : > { %1043 = vmatmul.mubr.bf16.gmra.mrb[16].mxu0 %v1507_v43  ;;  %v1514_v43 = vpack.c.bf16 %v8011_v2, %v8002_v62  ;;  %v566_v62 = vrot.slane %v8155_v12, 1  ;;  %v1513_v2 = vpack.c.bf16 %v8041_v16, %v1432_v11  ;;  %6752 = vmatprep.subr.bf16.mxu1 %v8271_v46  ;;  %v8298_v20 = vsel %vm528_vm1, %v574_v61, %v575_v5  ;;  %v7451_v32 = vld [vmem:[#allocation7 + $0x180] sm:$0xff]   ;;  %v7462_v10 = vld [vmem:[#allocation7 + $0x1e8] sm:$0xff]   ;;  %v7468_v61 = vld [vmem:[#allocation7 + $0x1b0] sm:$0xff]  }
  0xb0   : > { %1050 = vmatprep.mubr.bf16.mxu0 %v1511_v51  ;;  %v568_v51 = vrot.slane %v8176_v28, 1  ;;  %v1520_v28 = vpack.c.bf16 %v8044_v17, %v8037_v14  ;;  %v1523_v14 = vpack.c.bf16 %v8058_v23, %v8055_v22  ;;  %v1450_v17 = vld [vmem:[#allocation2 + $0x1b0] sm:$0xff]  ;;  %v7467_v4 = vld [vmem:[#allocation7 + $0x220] sm:$0xff]  }
  0xb1   : > { %1804 = vmatmul.mubr.bf16.gmra.mrb[16].mxu1 %v1510_v52  ;;  %634 = vst [vmem:[#allocation2 + $0x298] sm:$0x7f] %v566_v62  ;;  %v8282_v12 = vsel %vm528_vm1, %v565_v44, %v566_v62  ;;  %v1522_v42 = vpack.c.bf16 %v8094_v38, %v1450_v17  ;;  %v1462_v22 = vld [vmem:[#allocation2 + $0x210] sm:$0xff]  ;;  %v7461_v62 = vld [vmem:[#allocation7 + $0x208] sm:$0xff]   ;;  %v7458_v44 = vld [vmem:[#allocation7 + $0x1e0] sm:$0xff]  }
  0xb2   : > { %1811 = vmatprep.mubr.bf16.mxu1 %v1514_v43  ;;  %v8285_v16 = vsel %vm528_vm1, %v568_v51, %v569_v45  ;;  %v1528_v23 = vpack.c.bf16 %v8140_v3, %v1462_v22  ;;  %v1474_v38 = vld [vmem:[#allocation2 + $0x270] sm:$0xff]  ;;  %v1537_v3 = vpack.c.bf16 %v8214_v50, %v1480_v58  ;;  %v1407_v50 = vld [vmem:[#allocation2 + $0x58] sm:$0xff]  ;;  %v7460_v51 = vld [vmem:[#allocation7 + $0x1a0] sm:$0xff]  }
  0xb3   : > { %v1500_v1 = vpack.c.bf16 %v1407_v50, %v8063_v24  ;;  %v1425_v24 = vld [vmem:[#allocation2 + $0xe8] sm:$0xff]  ;;  %v7472_v17 = vld [vmem:[#allocation7 + $0x1b8] sm:$0xff]   ;;  %v2162_v58 = vld [vmem:[#allocation2 + $0x80] sm:$0xff] }
  0xb4   : > { %v8338_v11 = vpack.c.bf16 %v1425_v24, %v8133_v60  ;;  %v7463_v60 = vld [vmem:[#allocation7 + $0x210] sm:$0xff]   ;;  %v1467_v22 = vld [vmem:[#allocation2 + $0x238] sm:$0xff] }
  0xb5   : > { %v2177_v24 = vld [vmem:[#allocation2 + $0xf8] sm:$0xff] }
  0xb7   : > { %1051 = vmatmul.mubr.bf16.gmra.mrb[20].mxu0 %v1510_v52 }
  0xb8   : > { %1058 = vmatprep.mubr.bf16.mxu0 %v1514_v43  ;;  %v1479_v34 = vld [vmem:[#allocation2 + $0x298] sm:$0xff] }
  0xb9   : > { %1812 = vmatmul.mubr.bf16.gmra.mrb[20].mxu1 %v1513_v2 }
  0xba   : > { %1819 = vmatprep.mubr.bf16.mxu1 %v1517_v49 }
  0xbf   : > { %1059 = vmatmul.mubr.bf16.gmra.mrb[24].mxu0 %v1513_v2  ;;  %v1431_v2 = vld [vmem:[#allocation2 + $0x118] sm:$0xff] }
  0xc0   : > { %1066 = vmatprep.mubr.bf16.mxu0 %v1517_v49  ;;  %v8346_v45 = vpack.c.bf16 %v1431_v2, %v8158_v13  ;;  %v1437_v49 = vld [vmem:[#allocation2 + $0x148] sm:$0xff]  ;;  %v1443_v13 = vld [vmem:[#allocation2 + $0x178] sm:$0xff]  ;;  %v2176_v2 = vld [vmem:[#allocation2 + $0xf0] sm:$0xff] }
  0xc1   : > { %1820 = vmatmul.mubr.bf16.gmra.mrb[24].mxu1 %v1516_v30  ;;  %v8349_v55 = vpack.c.bf16 %v1437_v49, %v8168_v19  ;;  %v7466_v19 = vld [vmem:[#allocation7 + $0x1f0] sm:$0xff]   ;;  %v8356_v5 = vpack.c.bf16 %v1443_v13, %v8226_v9  ;;  %v1455_v9 = vld [vmem:[#allocation2 + $0x1d8] sm:$0xff] }
  0xc2   : > { %1827 = vmatprep.mubr.bf16.mxu1 %v1520_v28 }
  0xc7   : > { %1067 = vmatmul.mubr.bf16.gmra.mrb[28].mxu0 %v1516_v30  ;;  %v7465_v30 = vld [vmem:[#allocation7 + $0x218] sm:$0xff]  }
  0xc8   : > { %1074 = vmatprep.mubr.bf16.mxu0 %v1520_v28  ;;  %v1449_v28 = vld [vmem:[#allocation2 + $0x1a8] sm:$0xff] }
  0xc9   : > { %1828 = vmatmul.mubr.bf16.gmra.mrb[28].mxu1 %v1519_v40  ;;  %v8359_v63 = vpack.c.bf16 %v1449_v28, %v8235_v33  ;;  %v7471_v33 = vld [vmem:[#allocation7 + $0x230] sm:$0xff]  }
  0xca   : > { %1835 = vmatprep.mubr.bf16.mxu1 %v1523_v14 }
  0xcf   : > { %1075 = vmatmul.mubr.bf16.gmra.mrb[32].mxu0 %v1519_v40  ;;  %v7469_v40 = vld [vmem:[#allocation7 + $0x228] sm:$0xff]  }
  0xd0   : > { %1082 = vmatprep.mubr.bf16.mxu0 %v1523_v14  ;;  %v7470_v14 = vld [vmem:[#allocation7 + $0x1f8] sm:$0xff]  }
  0xd1   : > { %1836 = vmatmul.mubr.bf16.gmra.mrb[32].mxu1 %v1522_v42 }
  0xd2   : > { %1843 = vmatprep.mubr.bf16.mxu1 %v1526_v15 }
  0xd7   : > { %1083 = vmatmul.mubr.bf16.gmra.mrb[36].mxu0 %v1522_v42  ;;  %v8366_v42 = vpack.c.bf16 %v1455_v9, %v8253_v31  ;;  %v8376_v31 = vpack.c.bf16 %v1467_v22, %v8266_v47 }
  0xd8   : > { %1090 = vmatprep.mubr.bf16.mxu0 %v1526_v15  ;;  %v1461_v15 = vld [vmem:[#allocation2 + $0x208] sm:$0xff] }
  0xd9   : > { %1844 = vmatmul.mubr.bf16.gmra.mrb[36].mxu1 %v1525_v29  ;;  %v8369_v57 = vpack.c.bf16 %v1461_v15, %v8256_v56 }
  0xda   : > { %1851 = vmatprep.mubr.bf16.mxu1 %v8120_v54 }
  0xdf   : > { %1091 = vmatmul.mubr.bf16.gmra.mrb[40].mxu0 %v1525_v29  ;;  %v7473_v29 = vld [vmem:[#allocation7 + $0x238] sm:$0xff]  }
  0xe0   : > { %1098 = vmatprep.mubr.bf16.mxu0 %v8120_v54  ;;  %v1534_v54 = vpack.c.bf16 %v8187_v37, %v1474_v38  ;;  %v8322_v37 = vpack.c.bf16 %v7546_v21, %v7546_v21  ;;  %v1485_v38 = vld [vmem:[#allocation2 + $0x2c8] sm:$0xff]  ;;  %v2165_v21 = vld [vmem:[#allocation2 + $0x98] sm:$0xff] }
  0xe1   : > { %1852 = vmatmul.mubr.bf16.gmra.mrb[40].mxu1 %v1528_v23  ;;  %v8389_v47 = vpack.c.bf16 %v1485_v38, %v8285_v16  ;;  %v1497_v16 = vld [vmem:[#allocation2 + $0x328] sm:$0xff] }
  0xe2   : > { %1859 = vmatprep.mubr.bf16.mxu1 %v8148_v8  ;;  %v8402_v50 = vpack.c.bf16 %v1497_v16, %v8298_v20  ;;  %v2170_v20 = vld [vmem:[#allocation2 + $0xc0] sm:$0xff]  ;;  %v2191_v38 = vld [vmem:[#allocation2 + $0x168] sm:$0xff] }
  0xe7   : > { %1099 = vmatmul.mubr.bf16.gmra.mrb[44].mxu0 %v1528_v23  ;;  %v1473_v23 = vld [vmem:[#allocation2 + $0x268] sm:$0xff] }
  0xe8   : > { %1106 = vmatprep.mubr.bf16.mxu0 %v8148_v8  ;;  %v1486_v8 = vld [vmem:[#allocation2 + $0x2d0] sm:$0xff]  ;;  %v8379_v56 = vpack.c.bf16 %v1473_v23, %v8269_v41  ;;  %v1491_v41 = vld [vmem:[#allocation2 + $0x2f8] sm:$0xff] }
  0xe9   : > { %1860 = vmatmul.mubr.bf16.gmra.mrb[44].mxu1 %v1531_v35 }
  0xea   : > { %1867 = vmatprep.mubr.bf16.mxu1 %v8165_v18 }
  0xef   : > { %1107 = vmatmul.mubr.bf16.gmra.mrb[48].mxu0 %v1531_v35  ;;  %v8386_v35 = vpack.c.bf16 %v1479_v34, %v8282_v12  ;;  %v2188_v34 = vld [vmem:[#allocation2 + $0x150] sm:$0xff] }
  0xf0   : > { %1114 = vmatprep.mubr.bf16.mxu0 %v8165_v18  ;;  %v1540_v18 = vpack.c.bf16 %v8220_v6, %v1486_v8  ;;  %v7452_v6 = vld [vmem:[#allocation7 + $0x1c8] sm:$0xff]   ;;  %v2158_v8 = vld [vmem:[#allocation2 + $0x60] sm:$0xff] }
  0xf1   : > { %1868 = vmatmul.mubr.bf16.gmra.mrb[48].mxu1 %v1534_v54 }
  0xf2   : > { %1875 = vmatprep.mubr.bf16.mxu1 %v8193_v39 }
  0xf7   : > { %1115 = vmatmul.mubr.bf16.gmra.mrb[52].mxu0 %v1534_v54  ;;  %v2159_v54 = vld [vmem:[#allocation2 + $0x68] sm:$0xff] }
  0xf8   : > { %1122 = vmatprep.mubr.bf16.mxu0 %v8193_v39  ;;  %v1492_v39 = vld [vmem:[#allocation2 + $0x300] sm:$0xff]  ;;  %v2255_v12 = vpack.c.bf16 %v2162_v58, %v2159_v54 }
  0xf9   : > { %1876 = vmatmul.mubr.bf16.gmra.mrb[52].mxu1 %v1537_v3  ;;  %v1543_v52 = vpack.c.bf16 %v8245_v25, %v1492_v39  ;;  %v8335_v25 = vpack.c.bf16 %v1419_v7, %v8111_v48  ;;  %v7457_v48 = vld [vmem:[#allocation7 + $0x198] sm:$0xff]   ;;  %v2168_v39 = vld [vmem:[#allocation2 + $0xb0] sm:$0xff]  ;;  %v2198_v54 = vld [vmem:[#allocation2 + $0x1a0] sm:$0xff] }
  0xfa   : > { %1883 = vmatprep.mubr.bf16.mxu1 %v8211_v53 }
  0xff   : > { %1123 = vmatmul.mubr.bf16.gmra.mrb[56].mxu0 %v1537_v3  ;;  %v8396_v3 = vpack.c.bf16 %v1491_v41, %v8295_v0  ;;  %v2164_v0 = vld [vmem:[#allocation2 + $0x90] sm:$0xff]  ;;  %v2195_v41 = vld [vmem:[#allocation2 + $0x188] sm:$0xff] }
 0x100   : > { %1130 = vmatprep.mubr.bf16.mxu0 %v8211_v53  ;;  %v1413_v53 = vld [vmem:[#allocation2 + $0x88] sm:$0xff] }
 0x101   : > { %1884 = vmatmul.mubr.bf16.gmra.mrb[56].mxu1 %v1540_v18  ;;  %v8331_v43 = vpack.c.bf16 %v1413_v53, %v8073_v27  ;;  %v7456_v27 = vld [vmem:[#allocation7 + $0x1d8] sm:$0xff]   ;;  %v2167_v53 = vld [vmem:[#allocation2 + $0xa8] sm:$0xff] }
 0x102   : > { %1891 = vmatprep.mubr.bf16.mxu1 %v1544_v36  ;;  %v7454_v36 = vld [vmem:[#allocation7 + $0x1d0] sm:$0xff]   ;;  %v2257_v7 = vpack.c.bf16 %v2167_v53, %v2164_v0 }
 0x107   : > { %1131 = vmatmul.mubr.bf16.gmra.mrb[60].mxu0 %v1540_v18  ;;  %v2161_v18 = vld [vmem:[#allocation2 + $0x78] sm:$0xff] }
 0x108   : > { %6672 = vmatprep.mubr.bf16.mxu0 %v8322_v37 }
 0x109   : > { %1892 = vmatmul.mubr.bf16.gmra.mrb[60].mxu1 %v1543_v52  ;;  %v2254_v52 = vpack.c.bf16 %v2161_v18, %v2158_v8  ;;  %v2269_v8 = vpack.c.bf16 %v2191_v38, %v2188_v34  ;;  %v2209_v34 = vld [vmem:[#allocation2 + $0x1f8] sm:$0xff] }
 0x10a   : > { %6720 = vmatprep.mubr.bf16.mxu1 %v1500_v1  ;;  %v2213_v38 = vld [vmem:[#allocation2 + $0x218] sm:$0xff] }
 0x10f   : > { %6673 = vmatmul.mubr.bf16.vlgmr.msra.gmra.mrb[64].mxu0 %v1500_v1  ;;  %v2258_v1 = vpack.c.bf16 %v2168_v39, %v2165_v21 }
 0x110   : > { %6113 = vmatpush3.bf16.msra.mxu0 %v7451_v32  ;;  %6676 = vmatprep.mubr.bf16.mxu0 %v8331_v43  ;;  %v2171_v32 = vld [vmem:[#allocation2 + $0xc8] sm:$0xff] }
 0x111   : > { %6114 = vmatprep.subr.bf16.mxu0 %v7452_v6  ;;  %6721 = vmatmul.mubr.bf16.vlgmr.msra.gmra.mrb[64].mxu1 %v8331_v43  ;;  %v2174_v6 = vld [vmem:[#allocation2 + $0xe0] sm:$0xff] }
 0x112   : > { %6724 = vmatprep.mubr.bf16.mxu1 %v8335_v25  ;;  %6753 = vmatpush3.bf16.msra.mxu1 %v8271_v46  ;;  %v7464_v46 = vld [vmem:[#allocation7 + $0x1a8] sm:$0xff]  }
 0x113   : > { %6754 = vmatprep.subr.bf16.mxu1 %v7461_v62 }
 0x114   : > { %6115 = vmatpush3.bf16.msra.mxu0 %v7453_v26  ;;  %v2261_v26 = vpack.c.bf16 %v2174_v6, %v2171_v32  ;;  %v2194_v6 = vld [vmem:[#allocation2 + $0x180] sm:$0xff] }
 0x115   : > { %6116 = vmatprep.subr.bf16.mxu0 %v7454_v36  ;;  %v2173_v36 = vld [vmem:[#allocation2 + $0xd8] sm:$0xff] }
 0x116   : > { %6755 = vmatpush3.bf16.msra.mxu1 %v7461_v62 }
 0x117   : > { %6677 = vmatmul.mubr.bf16.gmra.mrb[68].mxu0 %v8335_v25  ;;  %6756 = vmatprep.subr.bf16.mxu1 %v7463_v60 }
 0x118   : > { %6680 = vmatprep.mubr.bf16.mxu0 %v8338_v11  ;;  %6117 = vmatpush3.bf16.msra.mxu0 %v7455_v59  ;;  %v2180_v59 = vld [vmem:[#allocation2 + $0x110] sm:$0xff] }
 0x119   : > { %6118 = vmatprep.subr.bf16.mxu0 %v7456_v27  ;;  %6725 = vmatmul.mubr.bf16.gmra.mrb[68].mxu1 %v8338_v11  ;;  %v2260_v27 = vpack.c.bf16 %v2173_v36, %v2170_v20  ;;  %v2264_v62 = vpack.c.bf16 %v2180_v59, %v2177_v24  ;;  %v2204_v20 = vld [vmem:[#allocation2 + $0x1d0] sm:$0xff] }
 0x11a   : > { %6728 = vmatprep.mubr.bf16.mxu1 %v8346_v45  ;;  %6757 = vmatpush3.bf16.msra.mxu1 %v7463_v60  ;;  %v2186_v60 = vld [vmem:[#allocation2 + $0x140] sm:$0xff] }
 0x11b   : > { %6758 = vmatprep.subr.bf16.mxu1 %v7465_v30 }
 0x11c   : > { %6119 = vmatpush3.bf16.msra.mxu0 %v7457_v48  ;;  %v2179_v48 = vld [vmem:[#allocation2 + $0x108] sm:$0xff] }
 0x11d   : > { %6120 = vmatprep.subr.bf16.mxu0 %v7458_v44  ;;  %v2183_v44 = vld [vmem:[#allocation2 + $0x128] sm:$0xff] }
 0x11e   : > { %6759 = vmatpush3.bf16.msra.mxu1 %v7465_v30  ;;  %v2267_v13 = vpack.c.bf16 %v2186_v60, %v2183_v44 }
 0x11f   : > { %6681 = vmatmul.mubr.bf16.gmra.mrb[72].mxu0 %v8346_v45  ;;  %6760 = vmatprep.subr.bf16.mxu1 %v7467_v4 }
 0x120   : > { %6684 = vmatprep.mubr.bf16.mxu0 %v8349_v55  ;;  %6121 = vmatpush3.bf16.msra.mxu0 %v7460_v51 }
 0x121   : > { %6122 = vmatprep.subr.bf16.mxu0 %v7462_v10  ;;  %6729 = vmatmul.mubr.bf16.gmra.mrb[72].mxu1 %v8349_v55  ;;  %v2263_v10 = vpack.c.bf16 %v2179_v48, %v2176_v2 }
 0x122   : > { %6732 = vmatprep.mubr.bf16.mxu1 %v8356_v5  ;;  %6761 = vmatpush3.bf16.msra.mxu1 %v7467_v4 }
 0x123   : > { %6762 = vmatprep.subr.bf16.mxu1 %v7469_v40 }
 0x124   : > { %6123 = vmatpush3.bf16.msra.mxu0 %v7464_v46  ;;  %v2189_v46 = vld [vmem:[#allocation2 + $0x158] sm:$0xff] }
 0x125   : > { %6124 = vmatprep.subr.bf16.mxu0 %v7466_v19  ;;  %v2192_v19 = vld [vmem:[#allocation2 + $0x170] sm:$0xff] }
 0x126   : > { %6763 = vmatpush3.bf16.msra.mxu1 %v7469_v40 }
 0x127   : > { %6685 = vmatmul.mubr.bf16.gmra.mrb[76].mxu0 %v8356_v5  ;;  %6764 = vmatprep.subr.bf16.mxu1 %v7471_v33 }
 0x128   : > { %6688 = vmatprep.mubr.bf16.mxu0 %v8359_v63  ;;  %6125 = vmatpush3.bf16.msra.mxu0 %v7468_v61 }
 0x129   : > { %6126 = vmatprep.subr.bf16.mxu0 %v7470_v14  ;;  %6733 = vmatmul.mubr.bf16.gmra.mrb[76].mxu1 %v8359_v63 }
 0x12a   : > { %6736 = vmatprep.mubr.bf16.mxu1 %v8366_v42  ;;  %6765 = vmatpush3.bf16.msra.mxu1 %v7471_v33  ;;  %v2270_v33 = vpack.c.bf16 %v2192_v19, %v2189_v46 }
 0x12b   : > { %6766 = vmatprep.subr.bf16.mxu1 %v7473_v29 }
 0x12c   : > { %6127 = vmatpush3.bf16.msra.mxu0 %v7472_v17 }
 0x12e   : > { %6767 = vmatpush3.bf16.msra.mxu1 %v7473_v29 }
 0x12f   : > { %6689 = vmatmul.mubr.bf16.gmra.mrb[80].mxu0 %v8366_v42 }
 0x130   : > { %6692 = vmatprep.mubr.bf16.mxu0 %v8369_v57 }
 0x131   : > { %6737 = vmatmul.mubr.bf16.gmra.mrb[80].mxu1 %v8369_v57 }
 0x132   : > { %6740 = vmatprep.mubr.bf16.mxu1 %v8376_v31 }
 0x137   : > { %6693 = vmatmul.mubr.bf16.gmra.mrb[84].mxu0 %v8376_v31 }
 0x138   : > { %6696 = vmatprep.mubr.bf16.mxu0 %v8379_v56 }
 0x139   : > { %6741 = vmatmul.mubr.bf16.gmra.mrb[84].mxu1 %v8379_v56 }
 0x13a   : > { %6744 = vmatprep.mubr.bf16.mxu1 %v8386_v35 }
 0x13f   : > { %6697 = vmatmul.mubr.bf16.gmra.mrb[88].mxu0 %v8386_v35 }
 0x140   : > { %6700 = vmatprep.mubr.bf16.mxu0 %v8389_v47 }
 0x141   : > { %6745 = vmatmul.mubr.bf16.gmra.mrb[88].mxu1 %v8389_v47 }
 0x142   : > { %6748 = vmatprep.mubr.bf16.mxu1 %v8396_v3 }
 0x147   : > { %6701 = vmatmul.mubr.bf16.gmra.mrb[92].mxu0 %v8396_v3 }
 0x148   : > { %2527 = vmatprep.mubr.bf16.mxu0 %v2255_v12 }
 0x149   : > { %6749 = vmatmul.mubr.bf16.gmra.mrb[92].mxu1 %v8402_v50 }
 0x14a   : > { %6768 = vmatprep.mubr.bf16.mxu1 %v8331_v43 }
 0x14f   : > { %2528 = vmatmul.mubr.bf16.vlgmr.msra.gmra.mrb[96].mxu0 %v2254_v52  ;;  %v2273_v52 = vpack.c.bf16 %v2198_v54, %v2195_v41  ;;  %v2216_v41 = vld [vmem:[#allocation2 + $0x230] sm:$0xff] }
 0x150   : > { %2535 = vmatprep.mubr.bf16.mxu0 %v2258_v1 }
 0x151   : > { %6769 = vmatmul.mubr.bf16.vlgmr.msra.gmra.mrb[64].mxu1 %v8335_v25 }
 0x152   : > { %6772 = vmatprep.mubr.bf16.mxu1 %v8338_v11 }
 0x157   : > { %2536 = vmatmul.mubr.bf16.gmra.mrb[100].mxu0 %v2257_v7  ;;  %v2197_v7 = vld [vmem:[#allocation2 + $0x198] sm:$0xff] }
 0x158   : > { %2543 = vmatprep.mubr.bf16.mxu0 %v2261_v26  ;;  %v2201_v26 = vld [vmem:[#allocation2 + $0x1b8] sm:$0xff] }
 0x159   : > { %6773 = vmatmul.mubr.bf16.gmra.mrb[68].mxu1 %v8346_v45  ;;  %v2182_v45 = vld [vmem:[#allocation2 + $0x120] sm:$0xff]  ;;  %v2276_v48 = vpack.c.bf16 %v2204_v20, %v2201_v26  ;;  %v2215_v26 = vld [vmem:[#allocation2 + $0x228] sm:$0xff] }
 0x15a   : > { %6776 = vmatprep.mubr.bf16.mxu1 %v8349_v55  ;;  %v2185_v55 = vld [vmem:[#allocation2 + $0x138] sm:$0xff]  ;;  %v2219_v20 = vld [vmem:[#allocation2 + $0x248] sm:$0xff] }
 0x15b   : > { %v2266_v40 = vpack.c.bf16 %v2185_v55, %v2182_v45  ;;  %v2210_v45 = vld [vmem:[#allocation2 + $0x200] sm:$0xff] }
 0x15f   : > { %2544 = vmatmul.mubr.bf16.gmra.mrb[104].mxu0 %v2260_v27  ;;  %v2272_v27 = vpack.c.bf16 %v2197_v7, %v2194_v6  ;;  %v2212_v7 = vld [vmem:[#allocation2 + $0x210] sm:$0xff] }
 0x160   : > { %2551 = vmatprep.mubr.bf16.mxu0 %v2264_v62 }
 0x161   : > { %6777 = vmatmul.mubr.bf16.gmra.mrb[72].mxu1 %v8356_v5 }
 0x162   : > { %v5856_v43 = vpop.f32.mrb[0].mxu0  ;;  %6780 = vmatprep.mubr.bf16.mxu1 %v8359_v63 }
 0x163   : > { %v5857_v25 = vpop.f32.mrb[1].mxu0 }
 0x164   : > { %v8410_v11 = vadd.f32 %v5857_v25, %v5856_v43  ;;  %v5859_v49 = vpop.f32.mrb[2].mxu0  ;;  %v5992_v28 = vpop.f32.mrb[0].mxu1 }
 0x165   : > { %v5860_v51 = vpop.f32.mrb[3].mxu0  ;;  %v5993_v14 = vpop.f32.mrb[1].mxu1 }
 0x166   : > { %v8412_v30 = vadd.f32 %v5860_v51, %v5859_v49  ;;  %v8418_v15 = vadd.f32 %v5993_v14, %v5992_v28  ;;  %v5995_v5 = vpop.f32.mrb[2].mxu1  ;;  %v2200_v51 = vld [vmem:[#allocation2 + $0x1b0] sm:$0xff] }
 0x167   : > { %2552 = vmatmul.mubr.bf16.gmra.mrb[108].mxu0 %v2263_v10  ;;  %v5996_v22 = vpop.f32.mrb[3].mxu1  ;;  %v2203_v10 = vld [vmem:[#allocation2 + $0x1c8] sm:$0xff] }
 0x168   : > { %2559 = vmatprep.mubr.bf16.mxu0 %v2267_v13  ;;  %v8422_v23 = vadd.f32 %v5996_v22, %v5995_v5  ;;  %v2207_v13 = vld [vmem:[#allocation2 + $0x1e8] sm:$0xff]  ;;  %v2206_v22 = vld [vmem:[#allocation2 + $0x1e0] sm:$0xff] }
 0x169   : > { %6781 = vmatmul.mubr.bf16.gmra.mrb[76].mxu1 %v8366_v42  ;;  %v2279_v14 = vpack.c.bf16 %v2210_v45, %v2207_v13  ;;  %v7474_v45 = vld [vmem:[#allocation9 + $0x40] sm:$0xff]  }
 0x16a   : > { %v5862_v4 = vpop.f32.mrb[4].mxu0  ;;  %6784 = vmatprep.mubr.bf16.mxu1 %v8369_v57  ;;  %6248 = vmatprep.subr.bf16.mxu0 %v7474_v45 }
 0x16b   : > { %v5863_v61 = vpop.f32.mrb[5].mxu0 }
 0x16c   : > { %v8416_v9 = vadd.f32 %v5863_v61, %v5862_v4  ;;  %v5865_v17 = vpop.f32.mrb[6].mxu0  ;;  %v5998_v12 = vpop.f32.mrb[4].mxu1  ;;  %v2275_v4 = vpack.c.bf16 %v2203_v10, %v2200_v51 }
 0x16d   : > { %v5866_v29 = vpop.f32.mrb[7].mxu0  ;;  %v5999_v18 = vpop.f32.mrb[5].mxu1 }
 0x16e   : > { %v8420_v63 = vadd.f32 %v5866_v29, %v5865_v17  ;;  %v8428_v1 = vadd.f32 %v5999_v18, %v5998_v12  ;;  %v6001_v42 = vpop.f32.mrb[6].mxu1 }
 0x16f   : > { %2560 = vmatmul.mubr.bf16.gmra.mrb[112].mxu0 %v2266_v40  ;;  %v6002_v53 = vpop.f32.mrb[7].mxu1 }
 0x170   : > { %2567 = vmatprep.mubr.bf16.mxu0 %v2270_v33  ;;  %v8432_v32 = vadd.f32 %v6002_v53, %v6001_v42 }
 0x171   : > { %6785 = vmatmul.mubr.bf16.gmra.mrb[80].mxu1 %v8376_v31 }
 0x172   : > { %v5868_v58 = vpop.f32.mrb[8].mxu0  ;;  %6788 = vmatprep.mubr.bf16.mxu1 %v8379_v56 }
 0x173   : > { %v5869_v16 = vpop.f32.mrb[9].mxu0 }
 0x174   : > { %v8426_v21 = vadd.f32 %v5869_v16, %v5868_v58  ;;  %v5871_v39 = vpop.f32.mrb[10].mxu0  ;;  %v6004_v24 = vpop.f32.mrb[8].mxu1  ;;  %v2278_v16 = vpack.c.bf16 %v2209_v34, %v2206_v22 }
 0x175   : > { %v5872_v0 = vpop.f32.mrb[11].mxu0  ;;  %v6005_v62 = vpop.f32.mrb[9].mxu1 }
 0x176   : > { %v8430_v57 = vadd.f32 %v5872_v0, %v5871_v39  ;;  %v8438_v25 = vadd.f32 %v6005_v62, %v6004_v24  ;;  %v6007_v31 = vpop.f32.mrb[10].mxu1  ;;  %v2281_v62 = vpack.c.bf16 %v2215_v26, %v2212_v7  ;;  %v7479_v7 = vld [vmem:[#allocation9 + $0x80] sm:$0xff]   ;;  %v7480_v26 = vld [vmem:[#allocation9 + $0x10] sm:$0xff]  }
 0x177   : > { %2568 = vmatmul.mubr.bf16.gmra.mrb[116].mxu0 %v2269_v8  ;;  %v6008_v60 = vpop.f32.mrb[11].mxu1  ;;  %6800 = vmatprep.subr.bf16.mxu1 %v7479_v7 }
 0x178   : > { %2575 = vmatprep.mubr.bf16.mxu0 %v2273_v52  ;;  %v8442_v49 = vadd.f32 %v6008_v60, %v6007_v31  ;;  %v2282_v52 = vpack.c.bf16 %v2216_v41, %v2213_v38  ;;  %6801 = vmatpush3.bf16.msra.mxu1 %v7479_v7  ;;  %v7489_v7 = vld [vmem:[#allocation9 + $0x28] sm:$0xff]  }
 0x179   : > { %6789 = vmatmul.mubr.bf16.gmra.mrb[84].mxu1 %v8386_v35 }
 0x17a   : > { %v5874_v36 = vpop.f32.mrb[12].mxu0  ;;  %6792 = vmatprep.mubr.bf16.mxu1 %v8389_v47 }
 0x17b   : > { %v5875_v59 = vpop.f32.mrb[13].mxu0 }
 0x17c   : > { %v8436_v43 = vadd.f32 %v5875_v59, %v5874_v36  ;;  %v5877_v2 = vpop.f32.mrb[14].mxu0  ;;  %v6010_v46 = vpop.f32.mrb[12].mxu1  ;;  %v2222_v36 = vld [vmem:[#allocation2 + $0x260] sm:$0xff] }
 0x17d   : > { %v5878_v44 = vpop.f32.mrb[15].mxu0  ;;  %v6011_v28 = vpop.f32.mrb[13].mxu1 }
 0x17e   : > { %v8440_v56 = vadd.f32 %v5878_v44, %v5877_v2  ;;  %v8448_v17 = vadd.f32 %v6011_v28, %v6010_v46  ;;  %v6013_v35 = vpop.f32.mrb[14].mxu1  ;;  %v2285_v44 = vpack.c.bf16 %v2222_v36, %v2219_v20  ;;  %v2221_v28 = vld [vmem:[#allocation2 + $0x258] sm:$0xff]  ;;  %v2224_v20 = vld [vmem:[#allocation2 + $0x270] sm:$0xff]  ;;  %v2227_v36 = vld [vmem:[#allocation2 + $0x288] sm:$0xff] }
 0x17f   : > { %2576 = vmatmul.mubr.bf16.gmra.mrb[120].mxu0 %v2272_v27  ;;  %v6014_v5 = vpop.f32.mrb[15].mxu1 }
 0x180   : > { %2583 = vmatprep.mubr.bf16.mxu0 %v2276_v48  ;;  %v8452_v29 = vadd.f32 %v6014_v5, %v6013_v35  ;;  %v2225_v35 = vld [vmem:[#allocation2 + $0x278] sm:$0xff] }
 0x181   : > { %6793 = vmatmul.mubr.bf16.gmra.mrb[88].mxu1 %v8396_v3 }
 0x182   : > { %v5880_v55 = vpop.f32.mrb[16].mxu0  ;;  %6796 = vmatprep.mubr.bf16.mxu1 %v8402_v50 }
 0x183   : > { %v5881_v19 = vpop.f32.mrb[17].mxu0 }
 0x184   : > { %v8446_v61 = vadd.f32 %v5881_v19, %v5880_v55  ;;  %v5883_v40 = vpop.f32.mrb[18].mxu0  ;;  %v6016_v58 = vpop.f32.mrb[16].mxu1  ;;  %v7475_v19 = vld [vmem:[#allocation9] sm:$0xff]  }
 0x185   : > { %v5884_v33 = vpop.f32.mrb[19].mxu0  ;;  %v6017_v8 = vpop.f32.mrb[17].mxu1  ;;  %6249 = vmatpush3.bf16.msra.mxu0 %v7475_v19 }
 0x186   : > { %v8450_v47 = vadd.f32 %v5884_v33, %v5883_v40  ;;  %v8458_v42 = vadd.f32 %v6017_v8, %v6016_v58  ;;  %v6019_v3 = vpop.f32.mrb[18].mxu1  ;;  %v7476_v40 = vld [vmem:[#allocation9 + $0x48] sm:$0xff]   ;;  %v2228_v33 = vld [vmem:[#allocation2 + $0x290] sm:$0xff] }
 0x187   : > { %2584 = vmatmul.mubr.bf16.gmra.mrb[124].mxu0 %v2275_v4  ;;  %v6020_v53 = vpop.f32.mrb[19].mxu1  ;;  %v2218_v4 = vld [vmem:[#allocation2 + $0x240] sm:$0xff]  ;;  %6250 = vmatprep.subr.bf16.mxu0 %v7476_v40 }
 0x188   : > { %2591 = vmatprep.mubr.bf16.mxu0 %v2279_v14  ;;  %v8462_v6 = vadd.f32 %v6020_v53, %v6019_v3  ;;  %v7477_v14 = vld [vmem:[#allocation9 + $0x8] sm:$0xff]   ;;  %v2284_v38 = vpack.c.bf16 %v2221_v28, %v2218_v4  ;;  %v7478_v3 = vld [vmem:[#allocation9 + $0x50] sm:$0xff]  }
 0x189   : > { %6797 = vmatmul.mubr.bf16.gmra.mrb[92].mxu1 %v8322_v37  ;;  %6251 = vmatpush3.bf16.msra.mxu0 %v7477_v14 }
 0x18a   : > { %v5886_v54 = vpop.f32.mrb[20].mxu0  ;;  %6816 = vmatprep.mubr.bf16.mxu1 %v8322_v37  ;;  %6252 = vmatprep.subr.bf16.mxu0 %v7478_v3 }
 0x18b   : > { %v5887_v12 = vpop.f32.mrb[21].mxu0 }
 0x18c   : > { %v8456_v18 = vadd.f32 %v5887_v12, %v5886_v54  ;;  %v5889_v39 = vpop.f32.mrb[22].mxu0  ;;  %v6022_v59 = vpop.f32.mrb[20].mxu1  ;;  %v2288_v12 = vpack.c.bf16 %v2228_v33, %v2225_v35  ;;  %v7484_v33 = vld [vmem:[#allocation9 + $0x60] sm:$0xff]  }
 0x18d   : > { %v5890_v0 = vpop.f32.mrb[23].mxu0  ;;  %v6023_v2 = vpop.f32.mrb[21].mxu1  ;;  %6253 = vmatpush3.bf16.msra.mxu0 %v7480_v26 }
 0x18e   : > { %v8460_v50 = vadd.f32 %v5890_v0, %v5889_v39  ;;  %v8468_v60 = vadd.f32 %v6023_v2, %v6022_v59  ;;  %v6025_v51 = vpop.f32.mrb[22].mxu1  ;;  %v7482_v59 = vld [vmem:[#allocation9 + $0x88] sm:$0xff]   ;;  %v7483_v2 = vld [vmem:[#allocation9 + $0x18] sm:$0xff]  }
 0x18f   : > { %2592 = vmatmul.mubr.bf16.gmra.mrb[128].mxu0 %v2278_v16  ;;  %v6026_v13 = vpop.f32.mrb[23].mxu1  ;;  %6802 = vmatprep.subr.bf16.mxu1 %v7482_v59 }
 0x190   : > { %2599 = vmatprep.mubr.bf16.mxu0 %v2282_v52  ;;  %v8472_v46 = vadd.f32 %v6026_v13, %v6025_v51  ;;  %6803 = vmatpush3.bf16.msra.mxu1 %v7482_v59 }
 0x192   : > { %v5892_v24 = vpop.f32.mrb[24].mxu0 }
 0x193   : > { %v5893_v27 = vpop.f32.mrb[25].mxu0 }
 0x194   : > { %v8466_v48 = vadd.f32 %v5893_v27, %v5892_v24  ;;  %v5895_v31 = vpop.f32.mrb[26].mxu0  ;;  %v6028_v22 = vpop.f32.mrb[24].mxu1  ;;  %v7481_v24 = vld [vmem:[#allocation9 + $0x58] sm:$0xff]   ;;  %v2231_v27 = vld [vmem:[#allocation2 + $0x2a8] sm:$0xff] }
 0x195   : > { %v5896_v10 = vpop.f32.mrb[27].mxu0  ;;  %v6029_v41 = vpop.f32.mrb[25].mxu1  ;;  %6254 = vmatprep.subr.bf16.mxu0 %v7481_v24 }
 0x196   : > { %v8470_v55 = vadd.f32 %v5896_v10, %v5895_v31  ;;  %v8476_v16 = vadd.f32 %v6029_v41, %v6028_v22  ;;  %v6031_v8 = vpop.f32.mrb[26].mxu1  ;;  %v2287_v10 = vpack.c.bf16 %v2227_v36, %v2224_v20  ;;  %6255 = vmatpush3.bf16.msra.mxu0 %v7483_v2  ;;  %v2233_v41 = vld [vmem:[#allocation2 + $0x2b8] sm:$0xff] }
 0x197   : > { %2600 = vmatmul.mubr.bf16.gmra.mrb[132].mxu0 %v2281_v62  ;;  %v6032_v52 = vpop.f32.mrb[27].mxu1  ;;  %v2234_v62 = vld [vmem:[#allocation2 + $0x2c0] sm:$0xff]  ;;  %6256 = vmatprep.subr.bf16.mxu0 %v7484_v33  ;;  %v2243_v33 = vld [vmem:[#allocation2 + $0x308] sm:$0xff] }
 0x198   : > { %2607 = vmatprep.mubr.bf16.mxu0 %v2285_v44  ;;  %v8480_v53 = vadd.f32 %v6032_v52, %v6031_v8  ;;  %v2291_v4 = vpack.c.bf16 %v2234_v62, %v2231_v27  ;;  %v2240_v8 = vld [vmem:[#allocation2 + $0x2f0] sm:$0xff] }
 0x19a   : > { %v5898_v5 = vpop.f32.mrb[28].mxu0 }
 0x19b   : > { %v5899_v34 = vpop.f32.mrb[29].mxu0 }
 0x19c   : > { %v8474_v54 = vadd.f32 %v5899_v34, %v5898_v5  ;;  %v5901_v58 = vpop.f32.mrb[30].mxu0  ;;  %v6034_v44 = vpop.f32.mrb[28].mxu1  ;;  %v7486_v34 = vld [vmem:[#allocation9 + $0x20] sm:$0xff]  }
 0x19d   : > { %v5902_v39 = vpop.f32.mrb[31].mxu0  ;;  %v6035_v13 = vpop.f32.mrb[29].mxu1  ;;  %6257 = vmatpush3.bf16.msra.mxu0 %v7486_v34  ;;  %v2246_v34 = vld [vmem:[#allocation2 + $0x320] sm:$0xff] }
 0x19e   : > { %v8478_v0 = vadd.f32 %v5902_v39, %v5901_v58  ;;  %v8484_v28 = vadd.f32 %v6035_v13, %v6034_v44  ;;  %v6037_v40 = vpop.f32.mrb[30].mxu1  ;;  %v7485_v58 = vld [vmem:[#allocation9 + $0x90] sm:$0xff]   ;;  %v7487_v39 = vld [vmem:[#allocation9 + $0x68] sm:$0xff]  }
 0x19f   : > { %2608 = vmatmul.mubr.bf16.gmra.mrb[136].mxu0 %v2284_v38  ;;  %v6038_v35 = vpop.f32.mrb[31].mxu1  ;;  %v2230_v38 = vld [vmem:[#allocation2 + $0x2a0] sm:$0xff]  ;;  %6804 = vmatprep.subr.bf16.mxu1 %v7485_v58 }
 0x1a0   : > { %2615 = vmatprep.mubr.bf16.mxu0 %v2288_v12  ;;  %v8488_v22 = vadd.f32 %v6038_v35, %v6037_v40  ;;  %v2237_v12 = vld [vmem:[#allocation2 + $0x2d8] sm:$0xff]  ;;  %v2290_v20 = vpack.c.bf16 %v2233_v41, %v2230_v38  ;;  %6805 = vmatpush3.bf16.msra.mxu1 %v7485_v58  ;;  %v2236_v40 = vld [vmem:[#allocation2 + $0x2d0] sm:$0xff]  ;;  %v7491_v35 = vld [vmem:[#allocation9 + $0xa0] sm:$0xff]  }
 0x1a1   : > { %6258 = vmatprep.subr.bf16.mxu0 %v7487_v39  ;;  %v2294_v27 = vpack.c.bf16 %v2240_v8, %v2237_v12  ;;  %v7493_v38 = vld [vmem:[#allocation9 + $0x78] sm:$0xff]  }
 0x1a2   : > { %v5904_v31 = vpop.f32.mrb[32].mxu0  ;;  %6259 = vmatpush3.bf16.msra.mxu0 %v7489_v7  ;;  %v7495_v12 = vld [vmem:[#allocation9 + $0x38] sm:$0xff]  }
 0x1a3   : > { %v5905_v51 = vpop.f32.mrb[33].mxu0 }
 0x1a4   : > { %v8482_v45 = vadd.f32 %v5905_v51, %v5904_v31  ;;  %v5907_v19 = vpop.f32.mrb[34].mxu0  ;;  %v6040_v3 = vpop.f32.mrb[32].mxu1  ;;  %v7488_v31 = vld [vmem:[#allocation9 + $0x98] sm:$0xff]  }
 0x1a5   : > { %v5908_v14 = vpop.f32.mrb[35].mxu0  ;;  %v6041_v36 = vpop.f32.mrb[33].mxu1  ;;  %6806 = vmatprep.subr.bf16.mxu1 %v7488_v31 }
 0x1a6   : > { %v8486_v5 = vadd.f32 %v5908_v14, %v5907_v19  ;;  %v8492_v62 = vadd.f32 %v6041_v36, %v6040_v3  ;;  %v6043_v2 = vpop.f32.mrb[34].mxu1  ;;  %6807 = vmatpush3.bf16.msra.mxu1 %v7488_v31  ;;  %v2239_v14 = vld [vmem:[#allocation2 + $0x2e8] sm:$0xff] }
 0x1a7   : > { %2616 = vmatmul.mubr.bf16.gmra.mrb[140].mxu0 %v2287_v10  ;;  %v6044_v51 = vpop.f32.mrb[35].mxu1  ;;  %v7490_v10 = vld [vmem:[#allocation9 + $0x70] sm:$0xff]   ;;  %6808 = vmatprep.subr.bf16.mxu1 %v7491_v35  ;;  %v2293_v39 = vpack.c.bf16 %v2239_v14, %v2236_v40 }
 0x1a8   : > { %2623 = vmatprep.mubr.bf16.mxu0 %v2291_v4  ;;  %v8496_v19 = vadd.f32 %v6044_v51, %v6043_v2  ;;  %v7492_v4 = vld [vmem:[#allocation9 + $0x30] sm:$0xff]   ;;  %6260 = vmatprep.subr.bf16.mxu0 %v7490_v10  ;;  %v2242_v51 = vld [vmem:[#allocation2 + $0x300] sm:$0xff]  ;;  %v2245_v10 = vld [vmem:[#allocation2 + $0x318] sm:$0xff] }
 0x1a9   : > { %6261 = vmatpush3.bf16.msra.mxu0 %v7492_v4  ;;  %v7496_v4 = vld [vmem:[#allocation9 + $0xb0] sm:$0xff]  }
 0x1aa   : > { %v5910_v52 = vpop.f32.mrb[36].mxu0  ;;  %6809 = vmatpush3.bf16.msra.mxu1 %v7491_v35  ;;  %6262 = vmatprep.subr.bf16.mxu0 %v7493_v38 }
 0x1ab   : > { %v5911_v26 = vpop.f32.mrb[37].mxu0 }
 0x1ac   : > { %v8490_v24 = vadd.f32 %v5911_v26, %v5910_v52  ;;  %v5913_v59 = vpop.f32.mrb[38].mxu0  ;;  %v6046_v58 = vpop.f32.mrb[36].mxu1  ;;  %v2297_v26 = vpack.c.bf16 %v2246_v34, %v2243_v33  ;;  %v2296_v33 = vpack.c.bf16 %v2245_v10, %v2242_v51 }
 0x1ad   : > { %v5914_v44 = vpop.f32.mrb[39].mxu0  ;;  %v6047_v52 = vpop.f32.mrb[37].mxu1  ;;  %6263 = vmatpush3.bf16.msra.mxu0 %v7495_v12 }
 0x1ae   : > { %v8494_v13 = vadd.f32 %v5914_v44, %v5913_v59  ;;  %v6049_v36 = vpop.f32.mrb[38].mxu1  ;;  %v7494_v59 = vld [vmem:[#allocation9 + $0xa8] sm:$0xff]  }
 0x1af   : > { %2624 = vmatmul.mubr.bf16.gmra.mrb[144].mxu0 %v2290_v20  ;;  %v8500_v20 = vadd.f32 %v6047_v52, %v6046_v58  ;;  %v6050_v2 = vpop.f32.mrb[39].mxu1  ;;  %6810 = vmatprep.subr.bf16.mxu1 %v7494_v59 }
 0x1b0   : > { %2631 = vmatprep.mubr.bf16.mxu0 %v2294_v27  ;;  %v8504_v44 = vadd.f32 %v6050_v2, %v6049_v36  ;;  %6811 = vmatpush3.bf16.msra.mxu1 %v7494_v59 }
 0x1b1   : > { %6812 = vmatprep.subr.bf16.mxu1 %v7496_v4 }
 0x1b2   : > { %v5916_v41 = vpop.f32.mrb[40].mxu0 }
 0x1b3   : > { %v5917_v8 = vpop.f32.mrb[41].mxu0 }
 0x1b4   : > { %v8498_v3 = vadd.f32 %v5917_v8, %v5916_v41  ;;  %v5919_v7 = vpop.f32.mrb[42].mxu0  ;;  %v6052_v14 = vpop.f32.mrb[40].mxu1  ;;  %6813 = vmatpush3.bf16.msra.mxu1 %v7496_v4  ;;  %v7497_v8 = vld [vmem:[#allocation9 + $0xb8] sm:$0xff]  }
 0x1b5   : > { %v5920_v27 = vpop.f32.mrb[43].mxu0  ;;  %v6053_v34 = vpop.f32.mrb[41].mxu1  ;;  %6814 = vmatprep.subr.bf16.mxu1 %v7497_v8 }
 0x1b6   : > { %v8502_v31 = vadd.f32 %v5920_v27, %v5919_v7  ;;  %v8508_v58 = vadd.f32 %v6053_v34, %v6052_v14  ;;  %v6055_v12 = vpop.f32.mrb[42].mxu1 }
 0x1b7   : > { %2632 = vmatmul.mubr.bf16.gmra.mrb[148].mxu0 %v2293_v39  ;;  %v6056_v52 = vpop.f32.mrb[43].mxu1 }
 0x1b8   : > { %2639 = vmatprep.mubr.bf16.mxu0 %v2297_v26  ;;  %9562 = vst [vmem:[#allocation14_spill] sm:$0xff] %v8508_v58  ;;  %v8512_v26 = vadd.f32 %v6056_v52, %v6055_v12  ;;  %6815 = vmatpush3.bf16.msra.mxu1 %v7497_v8 }
 0x1ba   : > { %v5922_v40 = vpop.f32.mrb[44].mxu0  ;;  %9563 = vst [vmem:[#allocation15_spill] sm:$0xff] %v8512_v26 }
 0x1bb   : > { %v5923_v35 = vpop.f32.mrb[45].mxu0 }
 0x1bc   : > { %v8506_v38 = vadd.f32 %v5923_v35, %v5922_v40  ;;  %v5925_v41 = vpop.f32.mrb[46].mxu0  ;;  %v6058_v59 = vpop.f32.mrb[44].mxu1 }
 0x1bd   : > { %v5926_v39 = vpop.f32.mrb[47].mxu0  ;;  %v6059_v2 = vpop.f32.mrb[45].mxu1 }
 0x1be   : > { %v8510_v7 = vadd.f32 %v5926_v39, %v5925_v41  ;;  %v8517_v4 = vadd.f32 %v6059_v2, %v6058_v59  ;;  %v6061_v40 = vpop.f32.mrb[46].mxu1 }
 0x1bf   : > { %2640 = vmatmul.mubr.bf16.gmra.mrb[152].mxu0 %v2296_v33  ;;  %v6062_v35 = vpop.f32.mrb[47].mxu1 }
 0x1c0   : > { %2647 = vmatprep.mubr.bf16.mxu0 %v8322_v37  ;;  %v8521_v41 = vadd.f32 %v6062_v35, %v6061_v40 }
 0x1c2   : > { %v5928_v36 = vpop.f32.mrb[48].mxu0  ;;  %9566 = vst [vmem:[#allocation18_spill] sm:$0xff] %v8521_v41 }
 0x1c3   : > { %v5929_v27 = vpop.f32.mrb[49].mxu0 }
 0x1c4   : > { %v8515_v51 = vadd.f32 %v5929_v27, %v5928_v36  ;;  %v5931_v10 = vpop.f32.mrb[50].mxu0  ;;  %v6064_v12 = vpop.f32.mrb[48].mxu1 }
 0x1c5   : > { %v5932_v14 = vpop.f32.mrb[51].mxu0  ;;  %v6065_v39 = vpop.f32.mrb[49].mxu1 }
 0x1c6   : > { %9564 = vst [vmem:[#allocation16_spill] sm:$0xff] %v8515_v51  ;;  %v8519_v34 = vadd.f32 %v5932_v14, %v5931_v10  ;;  %v8527_v59 = vadd.f32 %v6065_v39, %v6064_v12  ;;  %v6067_v27 = vpop.f32.mrb[50].mxu1 }
 0x1c7   : > { %2648 = vmatmul.mubr.bf16.gmra.mrb[156].mxu0 %v8322_v37  ;;  %v6068_v51 = vpop.f32.mrb[51].mxu1 }
 0x1c8   : > { %9565 = vst [vmem:[#allocation17_spill] sm:$0xff] %v8519_v34  ;;  %3602 = vmatprep.mubr.bf16.mxu0 %v8322_v37  ;;  %9568 = vst [vmem:[#allocation20_spill] sm:$0xff] %v8527_v59  ;;  %v8531_v40 = vadd.f32 %v6068_v51, %v6067_v27 }
 0x1ca   : > { %v5934_v33 = vpop.f32.mrb[52].mxu0  ;;  %9570 = vst [vmem:[#allocation22_spill] sm:$0xff] %v8531_v40 }
 0x1cb   : > { %v5935_v8 = vpop.f32.mrb[53].mxu0 }
 0x1cc   : > { %v8525_v52 = vadd.f32 %v5935_v8, %v5934_v33  ;;  %v5937_v36 = vpop.f32.mrb[54].mxu0  ;;  %v6070_v35 = vpop.f32.mrb[52].mxu1 }
 0x1cd   : > { %v5938_v2 = vpop.f32.mrb[55].mxu0  ;;  %v6071_v26 = vpop.f32.mrb[53].mxu1 }
 0x1ce   : > { %9567 = vst [vmem:[#allocation19_spill] sm:$0xff] %v8525_v52  ;;  %v8529_v10 = vadd.f32 %v5938_v2, %v5937_v36  ;;  %v8536_v8 = vadd.f32 %v6071_v26, %v6070_v35  ;;  %v6073_v12 = vpop.f32.mrb[54].mxu1 }
 0x1cf   : > { %3603 = vmatmul.mubr.bf16.vlgmr.msra.gmra.mrb[160].mxu0 %v8322_v37  ;;  %v6074_v59 = vpop.f32.mrb[55].mxu1 }
 0x1d0   : > { %9569 = vst [vmem:[#allocation21_spill] sm:$0xff] %v8529_v10  ;;  %v8540_v36 = vadd.f32 %v6074_v59, %v6073_v12  ;;  %v8553_v59 = vld [vmem:[%s9545_s2] ss:$0 sm:$0xff] }
 0x1d2   : > { %v5940_v14 = vpop.f32.mrb[56].mxu0 }
 0x1d3   : > { %v5941_v34 = vpop.f32.mrb[57].mxu0 }
 0x1d4   : > { %v8534_v41 = vadd.f32 %v5941_v34, %v5940_v14  ;;  %v5943_v33 = vpop.f32.mrb[58].mxu0  ;;  %v6076_v27 = vpop.f32.mrb[56].mxu1 }
 0x1d5   : > { %v5944_v39 = vpop.f32.mrb[59].mxu0  ;;  %v6077_v37 = vpop.f32.mrb[57].mxu1 }
 0x1d6   : > { %9571 = vst [vmem:[#allocation23_spill] sm:$0xff] %v8534_v41  ;;  %v8538_v52 = vadd.f32 %v5944_v39, %v5943_v33  ;;  %v8544_v58 = vadd.f32 %v6077_v37, %v6076_v27  ;;  %v6079_v34 = vpop.f32.mrb[58].mxu1  ;;  %v6944_v33 = vadd.f32 %v8416_v9, %v8553_v59  ;;  %v6949_v39 = vadd.f32 %v8410_v11, %v8553_v59 }
 0x1d7   : > { %v6080_v26 = vpop.f32.mrb[59].mxu1 }
 0x1d8   : > { %9572 = vst [vmem:[#allocation24_spill] sm:$0xff] %v8538_v52  ;;  %9573 = vst [vmem:[#allocation25_spill] sm:$0xff] %v8544_v58  ;;  %v8548_v41 = vadd.f32 %v6080_v26, %v6079_v34  ;;  %v6959_v26 = vadd.f32 %v8412_v30, %v8553_v59 }
 0x1da   : > { %v5946_v51 = vpop.f32.mrb[60].mxu0  ;;  %9575 = vst [vmem:[#allocation27_spill] sm:$0xff] %v8548_v41 }
 0x1db   : > { %v5947_v2 = vpop.f32.mrb[61].mxu0 }
 0x1dc   : > { %v8542_v40 = vadd.f32 %v5947_v2, %v5946_v51  ;;  %v5949_v10 = vpop.f32.mrb[62].mxu0  ;;  %v6082_v51 = vpop.f32.mrb[60].mxu1 }
 0x1dd   : > { %v5950_v14 = vpop.f32.mrb[63].mxu0  ;;  %v6083_v37 = vpop.f32.mrb[61].mxu1 }
 0x1de   : > { %v8546_v35 = vadd.f32 %v5950_v14, %v5949_v10  ;;  %v6954_v10 = vadd.f32 %v8420_v63, %v8553_v59  ;;  %v8563_v41 = vadd.f32 %v6083_v37, %v6082_v51  ;;  %v6085_v58 = vpop.f32.mrb[62].mxu1  ;;  %v6964_v51 = vadd.f32 %v8436_v43, %v8553_v59 }
 0x1e0   : > { %9574 = vst [vmem:[#allocation26_spill] sm:$0xff] %v8546_v35  ;;  %v6086_v35 = vpop.f32.mrb[63].mxu1 }
 0x1e1   : > { %v8571_v63 = vadd.f32 %v6086_v35, %v6085_v58 }
 0x1e2   : > { %v6674_v12 = vpop.f32.mrb[64].mxu0 }
 0x1e3   : > { %v6945_v27 = vadd.f32 %v6944_v33, %v6674_v12  ;;  %v1173_v2 = vpop.f32.mrb[65].mxu0 }
 0x1e4   : > { %v6950_v34 = vadd.f32 %v6949_v39, %v1173_v2  ;;  %v6675_v14 = vpop.f32.mrb[66].mxu0 }
 0x1e5   : > { %v8566_v9 = vadd.f32 %v6945_v27, %v8428_v1  ;;  %v6955_v52 = vadd.f32 %v6954_v10, %v6675_v14  ;;  %v1176_v11 = vpop.f32.mrb[67].mxu0  ;;  %v6969_v27 = vadd.f32 %v8426_v21, %v8553_v59 }
 0x1e6   : > { %v8569_v33 = vadd.f32 %v6950_v34, %v8418_v15  ;;  %v6960_v12 = vadd.f32 %v6959_v26, %v1176_v11  ;;  %v6974_v15 = vadd.f32 %v8440_v56, %v8553_v59  ;;  %v6984_v56 = vadd.f32 %v8456_v18, %v8553_v59 }
 0x1e7   : > { %v8574_v39 = vadd.f32 %v6955_v52, %v8432_v32  ;;  %v6979_v32 = vadd.f32 %v8430_v57, %v8553_v59  ;;  %v6989_v57 = vadd.f32 %v8446_v61, %v8553_v59 }
 0x1e8   : > { %v8577_v30 = vadd.f32 %v6960_v12, %v8422_v23 }
 0x1ea   : > { %v6678_v1 = vpop.f32.mrb[68].mxu0 }
 0x1eb   : > { %v6965_v2 = vadd.f32 %v6964_v51, %v6678_v1  ;;  %v1189_v10 = vpop.f32.mrb[69].mxu0 }
 0x1ec   : > { %v6970_v58 = vadd.f32 %v6969_v27, %v1189_v10  ;;  %v6679_v35 = vpop.f32.mrb[70].mxu0 }
 0x1ed   : > { %v8588_v23 = vadd.f32 %v6965_v2, %v8448_v17  ;;  %v6975_v52 = vadd.f32 %v6974_v15, %v6679_v35  ;;  %v1192_v37 = vpop.f32.mrb[71].mxu0 }
 0x1ee   : > { %v8591_v43 = vadd.f32 %v6970_v58, %v8438_v25  ;;  %v6980_v34 = vadd.f32 %v6979_v32, %v1192_v37  ;;  %v6994_v25 = vadd.f32 %v8460_v50, %v8553_v59  ;;  %v7004_v50 = vadd.f32 %v8474_v54, %v8553_v59 }
 0x1ef   : > { %v8594_v21 = vadd.f32 %v6975_v52, %v8452_v29  ;;  %v6999_v29 = vadd.f32 %v8450_v47, %v8553_v59  ;;  %v7009_v47 = vadd.f32 %v8466_v48, %v8553_v59  ;;  %v8633_v48 = vld [vmem:[#allocation9 + $0x140] sm:$0xff]  }
 0x1f0   : > { %v8597_v14 = vadd.f32 %v6980_v34, %v8442_v49  ;;  %6848 = vmatprep.subr.bf16.mxu1 %v8633_v48 }
 0x1f2   : > { %v6682_v26 = vpop.f32.mrb[72].mxu0 }
 0x1f3   : > { %v6985_v17 = vadd.f32 %v6984_v56, %v6682_v26  ;;  %v1205_v11 = vpop.f32.mrb[73].mxu0  ;;  %v7029_v26 = vadd.f32 %v8482_v45, %v8553_v59 }
 0x1f4   : > { %v6990_v12 = vadd.f32 %v6989_v57, %v1205_v11  ;;  %v6683_v51 = vpop.f32.mrb[74].mxu0 }
 0x1f5   : > { %v8608_v49 = vadd.f32 %v6985_v17, %v8468_v60  ;;  %v6995_v1 = vadd.f32 %v6994_v25, %v6683_v51  ;;  %v1208_v27 = vpop.f32.mrb[75].mxu0  ;;  %v7034_v17 = vadd.f32 %v8494_v13, %v8553_v59  ;;  %v7044_v13 = vadd.f32 %v8506_v38, %v8553_v59  ;;  %v9576_v38 = vld [vmem:[#allocation14_spill] sm:$0xff] }
 0x1f6   : > { %v8611_v18 = vadd.f32 %v6990_v12, %v8458_v42  ;;  %v7000_v2 = vadd.f32 %v6999_v29, %v1208_v27  ;;  %v7014_v42 = vadd.f32 %v8478_v0, %v8553_v59 }
 0x1f7   : > { %v8614_v61 = vadd.f32 %v6995_v1, %v8472_v46  ;;  %v7019_v46 = vadd.f32 %v8470_v55, %v8553_v59  ;;  %v7024_v55 = vadd.f32 %v8490_v24, %v8553_v59 }
 0x1f8   : > { %v8617_v10 = vadd.f32 %v7000_v2, %v8462_v6 }
 0x1fa   : > { %v6686_v15 = vpop.f32.mrb[76].mxu0 }
 0x1fb   : > { %v7005_v60 = vadd.f32 %v7004_v50, %v6686_v15  ;;  %v1221_v58 = vpop.f32.mrb[77].mxu0 }
 0x1fc   : > { %v7010_v35 = vadd.f32 %v7009_v47, %v1221_v58  ;;  %v6687_v32 = vpop.f32.mrb[78].mxu0 }
 0x1fd   : > { %v8628_v6 = vadd.f32 %v7005_v60, %v8484_v28  ;;  %v7015_v52 = vadd.f32 %v7014_v42, %v6687_v32  ;;  %v1224_v37 = vpop.f32.mrb[79].mxu0  ;;  %v9578_v32 = vld [vmem:[#allocation15_spill] sm:$0xff] }
 0x1fe   : > { %v8631_v54 = vadd.f32 %v7010_v35, %v8476_v16  ;;  %v7020_v34 = vadd.f32 %v7019_v46, %v1224_v37 }
 0x1ff   : > { %v8636_v56 = vadd.f32 %v7015_v52, %v8488_v22 }
 0x200   : > { %v8639_v0 = vadd.f32 %v7020_v34, %v8480_v53  ;;  %v7039_v53 = vadd.f32 %v8486_v5, %v8553_v59  ;;  %v7049_v5 = vadd.f32 %v8498_v3, %v8553_v59  ;;  %v9577_v3 = vld [vmem:[#allocation18_spill] sm:$0xff] }
 0x202   : > { %v6690_v28 = vpop.f32.mrb[80].mxu0 }
 0x203   : > { %v7025_v16 = vadd.f32 %v7024_v55, %v6690_v28  ;;  %v1237_v57 = vpop.f32.mrb[81].mxu0  ;;  %v9581_v28 = vld [vmem:[#allocation21_spill] sm:$0xff] }
 0x204   : > { %v7030_v11 = vadd.f32 %v7029_v26, %v1237_v57  ;;  %v6691_v22 = vpop.f32.mrb[82].mxu0  ;;  %v7074_v26 = vadd.f32 %v9581_v28, %v8553_v59 }
 0x205   : > { %v8651_v25 = vadd.f32 %v7025_v16, %v8500_v20  ;;  %v7035_v12 = vadd.f32 %v7034_v17, %v6691_v22  ;;  %v1240_v51 = vpop.f32.mrb[83].mxu0  ;;  %v9582_v17 = vld [vmem:[#allocation17_spill] sm:$0xff] }
 0x206   : > { %v8654_v24 = vadd.f32 %v7030_v11, %v8492_v62  ;;  %v7040_v29 = vadd.f32 %v7039_v53, %v1240_v51  ;;  %v7054_v62 = vadd.f32 %v8510_v7, %v8553_v59  ;;  %v9579_v7 = vld [vmem:[#allocation19_spill] sm:$0xff]  ;;  %v7079_v11 = vadd.f32 %v9582_v17, %v8553_v59  ;;  %v9583_v51 = vld [vmem:[#allocation20_spill] sm:$0xff] }
 0x207   : > { %v8657_v45 = vadd.f32 %v7035_v12, %v8504_v44  ;;  %v7059_v44 = vadd.f32 %v8502_v31, %v8553_v59  ;;  %v7064_v52 = vadd.f32 %v9579_v7, %v8553_v59  ;;  %v9580_v31 = vld [vmem:[#allocation16_spill] sm:$0xff]  ;;  %v9589_v17 = vld [vmem:[#allocation27_spill] sm:$0xff] }
 0x208   : > { %v8660_v1 = vadd.f32 %v7040_v29, %v8496_v19 }
 0x20a   : > { %v6694_v27 = vpop.f32.mrb[84].mxu0 }
 0x20b   : > { %v7045_v20 = vadd.f32 %v7044_v13, %v6694_v27  ;;  %v1253_v2 = vpop.f32.mrb[85].mxu0  ;;  %v7502_v27 = vld [vmem:[#allocation9 + $0x100] sm:$0xff]  }
 0x20c   : > { %v7050_v50 = vadd.f32 %v7049_v5, %v1253_v2  ;;  %v6695_v15 = vpop.f32.mrb[86].mxu0  ;;  %v9584_v2 = vld [vmem:[#allocation22_spill] sm:$0xff]  ;;  %6384 = vmatprep.subr.bf16.mxu0 %v7502_v27 }
 0x20d   : > { %v8671_v19 = vadd.f32 %v7045_v20, %v8517_v4  ;;  %v7055_v47 = vadd.f32 %v7054_v62, %v6695_v15  ;;  %v1256_v60 = vpop.f32.mrb[87].mxu0  ;;  %v7069_v4 = vadd.f32 %v9580_v31, %v8553_v59  ;;  %v7504_v20 = vld [vmem:[#allocation9 + $0xc0] sm:$0xff]   ;;  %v9585_v15 = vld [vmem:[#allocation23_spill] sm:$0xff] }
 0x20e   : > { %v8674_v58 = vadd.f32 %v7050_v50, %v9576_v38  ;;  %v7060_v42 = vadd.f32 %v7059_v44, %v1256_v60  ;;  %v7084_v50 = vadd.f32 %v8542_v40, %v8553_v59  ;;  %6385 = vmatpush3.bf16.msra.mxu0 %v7504_v20  ;;  %v7089_v44 = vadd.f32 %v9585_v15, %v8553_v59  ;;  %v7515_v15 = vld [vmem:[#allocation9 + $0x128] sm:$0xff]  }
 0x20f   : > { %v8677_v35 = vadd.f32 %v7055_v47, %v9577_v3  ;;  %v7505_v47 = vld [vmem:[#allocation9 + $0x108] sm:$0xff]  }
 0x210   : > { %v8680_v46 = vadd.f32 %v7060_v42, %v9578_v32  ;;  %v9586_v42 = vld [vmem:[#allocation26_spill] sm:$0xff]  ;;  %v7506_v3 = vld [vmem:[#allocation9 + $0xc8] sm:$0xff]   ;;  %6386 = vmatprep.subr.bf16.mxu0 %v7505_v47 }
 0x212   : > { %v6698_v37 = vpop.f32.mrb[88].mxu0  ;;  %6387 = vmatpush3.bf16.msra.mxu0 %v7506_v3 }
 0x213   : > { %v7065_v34 = vadd.f32 %v7064_v52, %v6698_v37  ;;  %v1269_v55 = vpop.f32.mrb[89].mxu0  ;;  %v9587_v52 = vld [vmem:[#allocation24_spill] sm:$0xff] }
 0x214   : > { %v7070_v16 = vadd.f32 %v7069_v4, %v1269_v55  ;;  %v6699_v57 = vpop.f32.mrb[90].mxu0  ;;  %v7099_v37 = vadd.f32 %v9587_v52, %v8553_v59  ;;  %v7517_v52 = vld [vmem:[#allocation9 + $0x130] sm:$0xff]  }
 0x215   : > { %v8691_v22 = vadd.f32 %v7065_v34, %v8536_v8  ;;  %v7075_v53 = vadd.f32 %v7074_v26, %v6699_v57  ;;  %v1272_v12 = vpop.f32.mrb[91].mxu0  ;;  %v9588_v34 = vld [vmem:[#allocation25_spill] sm:$0xff]  ;;  %v7507_v26 = vld [vmem:[#allocation9 + $0x110] sm:$0xff]  }
 0x216   : > { %v8694_v29 = vadd.f32 %v7070_v16, %v9583_v51  ;;  %v7080_v13 = vadd.f32 %v7079_v11, %v1272_v12  ;;  %v7509_v57 = vld [vmem:[#allocation9 + $0xd0] sm:$0xff]   ;;  %6388 = vmatprep.subr.bf16.mxu0 %v7507_v26  ;;  %v7511_v12 = vld [vmem:[#allocation9 + $0xd8] sm:$0xff]  }
 0x217   : > { %v8697_v5 = vadd.f32 %v7075_v53, %v8540_v36  ;;  %v7094_v36 = vadd.f32 %v9586_v42, %v8553_v59  ;;  %6389 = vmatpush3.bf16.msra.mxu0 %v7509_v57  ;;  %v7520_v26 = vld [vmem:[#allocation9 + $0x138] sm:$0xff]  }
 0x218   : > { %v8700_v62 = vadd.f32 %v7080_v13, %v9584_v2 }
 0x21a   : > { %v6702_v8 = vpop.f32.mrb[92].mxu0 }
 0x21b   : > { %v7085_v60 = vadd.f32 %v7084_v50, %v6702_v8  ;;  %v1285_v38 = vpop.f32.mrb[93].mxu0  ;;  %v7514_v50 = vld [vmem:[#allocation9 + $0xe0] sm:$0xff]  }
 0x21c   : > { %v7090_v32 = vadd.f32 %v7089_v44, %v1285_v38  ;;  %v6703_v7 = vpop.f32.mrb[94].mxu0  ;;  %v7516_v44 = vld [vmem:[#allocation9 + $0xe8] sm:$0xff]  }
 0x21d   : > { %v8711_v40 = vadd.f32 %v7085_v60, %v8563_v41  ;;  %v7095_v31 = vadd.f32 %v7094_v36, %v6703_v7  ;;  %v1288_v4 = vpop.f32.mrb[95].mxu0  ;;  %v7510_v41 = vld [vmem:[#allocation9 + $0x118] sm:$0xff]  }
 0x21e   : > { %v8714_v55 = vadd.f32 %v7090_v32, %v9588_v34  ;;  %v7100_v28 = vadd.f32 %v7099_v37, %v1288_v4  ;;  %6390 = vmatprep.subr.bf16.mxu0 %v7510_v41 }
 0x21f   : > { %v8717_v16 = vadd.f32 %v7095_v31, %v8571_v63  ;;  %6391 = vmatpush3.bf16.msra.mxu0 %v7511_v12  ;;  %v7512_v63 = vld [vmem:[#allocation9 + $0x120] sm:$0xff]   ;;  %v7519_v31 = vld [vmem:[#allocation9 + $0xf0] sm:$0xff]   ;;  %v7521_v12 = vld [vmem:[#allocation9 + $0xf8] sm:$0xff]  }
 0x220   : > { %v8720_v11 = vadd.f32 %v7100_v28, %v9589_v17  ;;  %6392 = vmatprep.subr.bf16.mxu0 %v7512_v63 }
 0x222   : > { %v6128_v59 = vpop.f32.mrb[96].mxu0 }
 0x223   : > { %v6129_v53 = vpop.f32.mrb[97].mxu0  ;;  %6393 = vmatpush3.bf16.msra.mxu0 %v7514_v50 }
 0x224   : > { %v6130_v51 = vadd.f32 %v6129_v53, %v6128_v59  ;;  %v6131_v13 = vpop.f32.mrb[98].mxu0  ;;  %v6770_v47 = vpop.f32.mrb[64].mxu1  ;;  %6394 = vmatprep.subr.bf16.mxu0 %v7515_v15 }
 0x225   : > { %v6132_v27 = vpop.f32.mrb[99].mxu0  ;;  %v2690_v38 = vpop.f32.mrb[65].mxu1 }
 0x226   : > { %v6952_v20 = vadd.f32 %v8569_v33, %v6130_v51  ;;  %v6133_v2 = vadd.f32 %v6132_v27, %v6131_v13  ;;  %v6771_v3 = vpop.f32.mrb[66].mxu1 }
 0x227   : > { %v2693_v33 = vpop.f32.mrb[67].mxu1  ;;  %6395 = vmatpush3.bf16.msra.mxu0 %v7516_v44 }
 0x228   : > { %v6962_v8 = vadd.f32 %v8577_v30, %v6133_v2  ;;  %v6953_v36 = vadd.f32 %v6952_v20, %v2690_v38  ;;  %6396 = vmatprep.subr.bf16.mxu0 %v7517_v52 }
 0x22a   : > { %v6134_v60 = vpop.f32.mrb[100].mxu0  ;;  %v2913_v4 = vmax.f32 %v6953_v36, 0.0  ;;  %v6963_v30 = vadd.f32 %v6962_v8, %v2693_v33 }
 0x22b   : > { %v6135_v42 = vpop.f32.mrb[101].mxu0  ;;  %6397 = vmatpush3.bf16.msra.mxu0 %v7519_v31 }
 0x22c   : > { %v6136_v32 = vadd.f32 %v6135_v42, %v6134_v60  ;;  %v6137_v7 = vpop.f32.mrb[102].mxu0  ;;  %2945 = vst [vmem:[#allocation2 + $0x38] sm:$0xff] %v2913_v4  ;;  %v3009_v57 = vrot.slane %v2913_v4, 7  ;;  %v2914_v17 = vmax.f32 %v6963_v30, 0.0  ;;  %v3121_v41 = vrot.slane %v2913_v4, 1  ;;  %v8726_v27 = vpop.f32.mrb[68].mxu1  ;;  %6398 = vmatprep.subr.bf16.mxu0 %v7520_v26 }
 0x22d   : > { %v6138_v37 = vpop.f32.mrb[103].mxu0  ;;  %v2706_v63 = vpop.f32.mrb[69].mxu1 }
 0x22e   : > { %v6947_v34 = vadd.f32 %v8566_v9, %v6136_v32  ;;  %v6139_v28 = vadd.f32 %v6138_v37, %v6137_v7  ;;  %3089 = vst [vmem:[#allocation2 + $0x30] sm:$0xfe] %v3009_v57  ;;  %2946 = vst [vmem:[#allocation2 + $0x50] sm:$0xff] %v2914_v17  ;;  %v3010_v51 = vrot.slane %v2914_v17, 7  ;;  %v3122_v13 = vrot.slane %v2914_v17, 1 }
 0x22f   : > { %v3334_v2 = vpack.c.bf16 %v2914_v17, %v2913_v4  ;;  %6399 = vmatpush3.bf16.msra.mxu0 %v7521_v12 }
 0x230   : > { %v6948_v59 = vadd.f32 %v6947_v34, %v6770_v47  ;;  %v6957_v53 = vadd.f32 %v8574_v39, %v6139_v28  ;;  %v3011_v15 = vsel %vm415_vm0, %v3009_v57, %v3010_v51  ;;  %v3123_v44 = vsel %vm528_vm1, %v3121_v41, %v3122_v13  ;;  %3202 = vst [vmem:[#allocation2 + $0x58] sm:$0x7f] %v3122_v13  ;;  %v8730_v47 = vpop.f32.mrb[70].mxu1 }
 0x231   : > { %3610 = vmatprep.mubr.bf16.mxu0 %v3334_v2  ;;  %3090 = vst [vmem:[#allocation2 + $0x48] sm:$0xff] %v3011_v15  ;;  %3201 = vst [vmem:[#allocation2 + $0x40] sm:$0xff] %v3123_v44  ;;  %v2709_v42 = vpop.f32.mrb[71].mxu1 }
 0x232   : > { %v2915_v20 = vmax.f32 %v6948_v59, 0.0  ;;  %v6140_v9 = vpop.f32.mrb[104].mxu0  ;;  %v6958_v50 = vadd.f32 %v6957_v53, %v6771_v3 }
 0x233   : > { %v6141_v8 = vpop.f32.mrb[105].mxu0 }
 0x234   : > { %2947 = vst [vmem:[#allocation2 + $0x68] sm:$0xff] %v2915_v20  ;;  %v3012_v39 = vrot.slane %v2915_v20, 7  ;;  %v6143_v60 = vpop.f32.mrb[106].mxu0  ;;  %v2916_v38 = vmax.f32 %v6958_v50, 0.0  ;;  %v6142_v36 = vadd.f32 %v6141_v8, %v6140_v9  ;;  %v3124_v3 = vrot.slane %v2915_v20, 1  ;;  %v8739_v57 = vpop.f32.mrb[72].mxu1 }
 0x235   : > { %v6144_v32 = vpop.f32.mrb[107].mxu0  ;;  %v3240_v26 = vld [vmem:[#allocation2 + $0x30] sm:$0xff]  ;;  %v8741_v53 = vpop.f32.mrb[73].mxu1 }
 0x236   : > { %3091 = vst [vmem:[#allocation2 + $0x60] sm:$0xfe] %v3012_v39  ;;  %v6145_v7 = vadd.f32 %v6144_v32, %v6143_v60  ;;  %2948 = vst [vmem:[#allocation2 + $0x80] sm:$0xff] %v2916_v38  ;;  %v3013_v52 = vrot.slane %v2916_v38, 7  ;;  %v3125_v33 = vrot.slane %v2916_v38, 1  ;;  %v6972_v37 = vadd.f32 %v8591_v43, %v6142_v36  ;;  %v8743_v51 = vpop.f32.mrb[74].mxu1 }
 0x237   : > { %v3337_v31 = vpack.c.bf16 %v2916_v38, %v2915_v20  ;;  %v3333_v41 = vpack.c.bf16 %v3011_v15, %v3240_v26  ;;  %v3245_v12 = vld [vmem:[#allocation2 + $0x58] sm:$0xff] }
 0x238   : > { %v6982_v4 = vadd.f32 %v8597_v14, %v6145_v7  ;;  %v8735_v30 = vsel %vm415_vm0, %v3012_v39, %v3013_v52  ;;  %v3126_v34 = vsel %vm528_vm1, %v3124_v3, %v3125_v33  ;;  %3204 = vst [vmem:[#allocation2 + $0x88] sm:$0x7f] %v3125_v33  ;;  %v6973_v28 = vadd.f32 %v6972_v37, %v2706_v63  ;;  %v7499_v63 = vld [vmem:[#allocation9 + $0x148] sm:$0xff]   ;;  %v8745_v39 = vpop.f32.mrb[75].mxu1 }
 0x239   : > { %3092 = vst [vmem:[#allocation2 + $0x78] sm:$0xff] %v8735_v30  ;;  %3203 = vst [vmem:[#allocation2 + $0x70] sm:$0xff] %v3126_v34  ;;  %3611 = vmatmul.mubr.bf16.gmra.mrb[164].mxu0 %v3333_v41  ;;  %v3335_v9 = vpack.c.bf16 %v3245_v12, %v3123_v44 }
 0x23a   : > { %v6983_v17 = vadd.f32 %v6982_v4, %v2709_v42  ;;  %v6146_v59 = vpop.f32.mrb[108].mxu0  ;;  %v2917_v43 = vmax.f32 %v6973_v28, 0.0  ;;  %3618 = vmatprep.mubr.bf16.mxu0 %v3337_v31 }
 0x23b   : > { %v6147_v14 = vpop.f32.mrb[109].mxu0  ;;  %6817 = vmatmul.mubr.bf16.vlgmr.msra.gmra.mrb[96].mxu1 %v3335_v9 }
 0x23c   : > { %v2918_v13 = vmax.f32 %v6983_v17, 0.0  ;;  %v6148_v20 = vadd.f32 %v6147_v14, %v6146_v59  ;;  %v6149_v2 = vpop.f32.mrb[110].mxu0  ;;  %2949 = vst [vmem:[#allocation2 + $0x98] sm:$0xff] %v2917_v43  ;;  %v3015_v50 = vrot.slane %v2917_v43, 7  ;;  %v3127_v8 = vrot.slane %v2917_v43, 1  ;;  %6849 = vmatpush3.bf16.msra.mxu1 %v8633_v48 }
 0x23d   : > { %v6150_v60 = vpop.f32.mrb[111].mxu0  ;;  %v3246_v15 = vld [vmem:[#allocation2 + $0x60] sm:$0xff]  ;;  %6850 = vmatprep.subr.bf16.mxu1 %v7499_v63 }
 0x23e   : > { %2950 = vst [vmem:[#allocation2 + $0xb0] sm:$0xff] %v2918_v13  ;;  %v3016_v38 = vrot.slane %v2918_v13, 7  ;;  %v3128_v42 = vrot.slane %v2918_v13, 1  ;;  %v6967_v36 = vadd.f32 %v8588_v23, %v6148_v20  ;;  %v6151_v32 = vadd.f32 %v6150_v60, %v6149_v2  ;;  %3093 = vst [vmem:[#allocation2 + $0x90] sm:$0xfe] %v3015_v50  ;;  %v7500_v23 = vld [vmem:[#allocation9 + $0x150] sm:$0xff]  }
 0x23f   : > { %v3336_v44 = vpack.c.bf16 %v8735_v30, %v3246_v15  ;;  %v3340_v3 = vpack.c.bf16 %v2918_v13, %v2917_v43  ;;  %v3251_v31 = vld [vmem:[#allocation2 + $0x88] sm:$0xff]  ;;  %v8757_v30 = vpop.f32.mrb[76].mxu1 }
 0x240   : > { %v8751_v7 = vsel %vm415_vm0, %v3015_v50, %v3016_v38  ;;  %v3129_v52 = vsel %vm528_vm1, %v3127_v8, %v3128_v42  ;;  %3206 = vst [vmem:[#allocation2 + $0xb8] sm:$0x7f] %v3128_v42  ;;  %v6968_v33 = vadd.f32 %v6967_v36, %v8726_v27  ;;  %v6977_v37 = vadd.f32 %v8594_v21, %v6151_v32  ;;  %v8760_v17 = vpop.f32.mrb[77].mxu1 }
 0x241   : > { %3094 = vst [vmem:[#allocation2 + $0xa8] sm:$0xff] %v8751_v7  ;;  %3205 = vst [vmem:[#allocation2 + $0xa0] sm:$0xff] %v3129_v52  ;;  %v3338_v4 = vpack.c.bf16 %v3251_v31, %v3126_v34  ;;  %6851 = vmatpush3.bf16.msra.mxu1 %v7499_v63  ;;  %v8762_v27 = vpop.f32.mrb[78].mxu1  ;;  %3619 = vmatmul.mubr.bf16.gmra.mrb[168].mxu0 %v3336_v44  ;;  %v7501_v34 = vld [vmem:[#allocation9 + $0x158] sm:$0xff]   ;;  %v7503_v44 = vld [vmem:[#allocation9 + $0x160] sm:$0xff]  }
 0x242   : > { %v2919_v48 = vmax.f32 %v6968_v33, 0.0  ;;  %v6978_v28 = vadd.f32 %v6977_v37, %v8730_v47  ;;  %v6152_v26 = vpop.f32.mrb[112].mxu0  ;;  %6852 = vmatprep.subr.bf16.mxu1 %v7500_v23  ;;  %v8764_v13 = vpop.f32.mrb[79].mxu1  ;;  %3626 = vmatprep.mubr.bf16.mxu0 %v3340_v3 }
 0x243   : > { %v6153_v59 = vpop.f32.mrb[113].mxu0  ;;  %6820 = vmatprep.mubr.bf16.mxu1 %v3338_v4 }
 0x244   : > { %2951 = vst [vmem:[#allocation2 + $0xc8] sm:$0xff] %v2919_v48  ;;  %v3018_v21 = vrot.slane %v2919_v48, 7  ;;  %v2920_v41 = vmax.f32 %v6978_v28, 0.0  ;;  %v6154_v43 = vadd.f32 %v6153_v59, %v6152_v26  ;;  %v6155_v14 = vpop.f32.mrb[114].mxu0  ;;  %v3130_v12 = vrot.slane %v2919_v48, 1  ;;  %v8775_v3 = vpop.f32.mrb[80].mxu1 }
 0x245   : > { %v6156_v47 = vpop.f32.mrb[115].mxu0  ;;  %v3252_v50 = vld [vmem:[#allocation2 + $0x90] sm:$0xff]  ;;  %6853 = vmatpush3.bf16.msra.mxu1 %v7500_v23  ;;  %v8778_v31 = vpop.f32.mrb[81].mxu1 }
 0x246   : > { %3095 = vst [vmem:[#allocation2 + $0xc0] sm:$0xfe] %v3018_v21  ;;  %2952 = vst [vmem:[#allocation2 + $0xe0] sm:$0xff] %v2920_v41  ;;  %v3019_v20 = vrot.slane %v2920_v41, 7  ;;  %v3131_v9 = vrot.slane %v2920_v41, 1  ;;  %v6992_v2 = vadd.f32 %v8611_v18, %v6154_v43  ;;  %v6157_v63 = vadd.f32 %v6156_v47, %v6155_v14  ;;  %6854 = vmatprep.subr.bf16.mxu1 %v7501_v34  ;;  %v8780_v4 = vpop.f32.mrb[82].mxu1 }
 0x247   : > { %v3339_v8 = vpack.c.bf16 %v8751_v7, %v3252_v50  ;;  %v3257_v60 = vld [vmem:[#allocation2 + $0xb8] sm:$0xff]  ;;  %v3343_v15 = vpack.c.bf16 %v2920_v41, %v2919_v48  ;;  %v8782_v26 = vpop.f32.mrb[83].mxu1 }
 0x248   : > { %v8769_v38 = vsel %vm415_vm0, %v3018_v21, %v3019_v20  ;;  %v3132_v42 = vsel %vm528_vm1, %v3130_v12, %v3131_v9  ;;  %3208 = vst [vmem:[#allocation2 + $0xe8] sm:$0x7f] %v3131_v9  ;;  %v6993_v36 = vadd.f32 %v6992_v2, %v8741_v53  ;;  %v7002_v32 = vadd.f32 %v8617_v10, %v6157_v63  ;;  %v7508_v21 = vld [vmem:[#allocation9 + $0x168] sm:$0xff]  }
 0x249   : > { %3096 = vst [vmem:[#allocation2 + $0xd8] sm:$0xff] %v8769_v38  ;;  %3207 = vst [vmem:[#allocation2 + $0xd0] sm:$0xff] %v3132_v42  ;;  %v3341_v18 = vpack.c.bf16 %v3257_v60, %v3129_v52  ;;  %3627 = vmatmul.mubr.bf16.gmra.mrb[172].mxu0 %v3339_v8  ;;  %6855 = vmatpush3.bf16.msra.mxu1 %v7501_v34  ;;  %v7513_v8 = vld [vmem:[#allocation9 + $0x170] sm:$0xff]  }
 0x24a   : > { %v2921_v7 = vmax.f32 %v6993_v36, 0.0  ;;  %v7003_v33 = vadd.f32 %v7002_v32, %v8745_v39  ;;  %v6158_v37 = vpop.f32.mrb[116].mxu0  ;;  %3634 = vmatprep.mubr.bf16.mxu0 %v3343_v15  ;;  %6856 = vmatprep.subr.bf16.mxu1 %v7503_v44 }
 0x24b   : > { %v6159_v23 = vpop.f32.mrb[117].mxu0  ;;  %6821 = vmatmul.mubr.bf16.gmra.mrb[100].mxu1 %v3341_v18 }
 0x24c   : > { %2953 = vst [vmem:[#allocation2 + $0xf8] sm:$0xff] %v2921_v7  ;;  %v3021_v53 = vrot.slane %v2921_v7, 7  ;;  %v2922_v10 = vmax.f32 %v7003_v33, 0.0  ;;  %v6160_v48 = vadd.f32 %v6159_v23, %v6158_v37  ;;  %v6161_v28 = vpop.f32.mrb[118].mxu0  ;;  %v3133_v52 = vrot.slane %v2921_v7, 1  ;;  %v8796_v60 = vpop.f32.mrb[84].mxu1 }
 0x24d   : > { %v6162_v59 = vpop.f32.mrb[119].mxu0  ;;  %v3258_v39 = vld [vmem:[#allocation2 + $0xc0] sm:$0xff]  ;;  %6857 = vmatpush3.bf16.msra.mxu1 %v7503_v44  ;;  %v8799_v32 = vpop.f32.mrb[85].mxu1 }
 0x24e   : > { %3097 = vst [vmem:[#allocation2 + $0xf0] sm:$0xfe] %v3021_v53  ;;  %2954 = vst [vmem:[#allocation2 + $0x110] sm:$0xff] %v2922_v10  ;;  %v3022_v41 = vrot.slane %v2922_v10, 7  ;;  %v3134_v43 = vrot.slane %v2922_v10, 1  ;;  %v6987_v14 = vadd.f32 %v8608_v49, %v6160_v48  ;;  %v6163_v12 = vadd.f32 %v6162_v59, %v6161_v28  ;;  %6858 = vmatprep.subr.bf16.mxu1 %v7508_v21 }
 0x24f   : > { %v3342_v47 = vpack.c.bf16 %v8769_v38, %v3258_v39  ;;  %v8786_v20 = vld [vmem:[#allocation2 + $0xe8] sm:$0xff]  ;;  %v3346_v34 = vpack.c.bf16 %v2922_v10, %v2921_v7 }
 0x250   : > { %v8789_v9 = vsel %vm415_vm0, %v3021_v53, %v3022_v41  ;;  %v3135_v2 = vsel %vm528_vm1, %v3133_v52, %v3134_v43  ;;  %3210 = vst [vmem:[#allocation2 + $0x118] sm:$0x7f] %v3134_v43  ;;  %v6988_v63 = vadd.f32 %v6987_v14, %v8739_v57  ;;  %v6997_v50 = vadd.f32 %v8614_v61, %v6163_v12  ;;  %v8801_v57 = vpop.f32.mrb[86].mxu1  ;;  %v7518_v53 = vld [vmem:[#allocation9 + $0x178] sm:$0xff]  }
 0x251   : > { %3098 = vst [vmem:[#allocation2 + $0x108] sm:$0xff] %v8789_v9  ;;  %3209 = vst [vmem:[#allocation2 + $0x100] sm:$0xff] %v3135_v2  ;;  %v3344_v49 = vpack.c.bf16 %v8786_v20, %v3132_v42  ;;  %3635 = vmatmul.mubr.bf16.gmra.mrb[176].mxu0 %v3342_v47  ;;  %6859 = vmatpush3.bf16.msra.mxu1 %v7508_v21  ;;  %v8803_v37 = vpop.f32.mrb[87].mxu1  ;;  %v7522_v47 = vld [vmem:[#allocation9 + $0x1c0] sm:$0xff]  }
 0x252   : > { %v2923_v15 = vmax.f32 %v6988_v63, 0.0  ;;  %v6998_v38 = vadd.f32 %v6997_v50, %v8743_v51  ;;  %v6164_v36 = vpop.f32.mrb[120].mxu0  ;;  %3642 = vmatprep.mubr.bf16.mxu0 %v3346_v34  ;;  %6860 = vmatprep.subr.bf16.mxu1 %v7513_v8 }
 0x253   : > { %v6165_v18 = vpop.f32.mrb[121].mxu0  ;;  %6824 = vmatprep.mubr.bf16.mxu1 %v3344_v49 }
 0x254   : > { %2955 = vst [vmem:[#allocation2 + $0x128] sm:$0xff] %v2923_v15  ;;  %v3024_v61 = vrot.slane %v2923_v15, 7  ;;  %v2924_v44 = vmax.f32 %v6998_v38, 0.0  ;;  %v6166_v7 = vadd.f32 %v6165_v18, %v6164_v36  ;;  %v6167_v42 = vpop.f32.mrb[122].mxu0  ;;  %v3136_v33 = vrot.slane %v2923_v15, 1  ;;  %v8814_v34 = vpop.f32.mrb[88].mxu1 }
 0x255   : > { %v6168_v23 = vpop.f32.mrb[123].mxu0  ;;  %v3264_v51 = vld [vmem:[#allocation2 + $0xf0] sm:$0xff]  ;;  %6861 = vmatpush3.bf16.msra.mxu1 %v7513_v8  ;;  %v8817_v49 = vpop.f32.mrb[89].mxu1 }
 0x256   : > { %3099 = vst [vmem:[#allocation2 + $0x120] sm:$0xfe] %v3024_v61  ;;  %2956 = vst [vmem:[#allocation2 + $0x140] sm:$0xff] %v2924_v44  ;;  %v3025_v10 = vrot.slane %v2924_v44, 7  ;;  %v3137_v48 = vrot.slane %v2924_v44, 1  ;;  %v7012_v28 = vadd.f32 %v8631_v54, %v6166_v7  ;;  %v6169_v52 = vadd.f32 %v6168_v23, %v6167_v42  ;;  %6862 = vmatprep.subr.bf16.mxu1 %v7518_v53 }
 0x257   : > { %v3345_v59 = vpack.c.bf16 %v8789_v9, %v3264_v51  ;;  %v8807_v39 = vld [vmem:[#allocation2 + $0x118] sm:$0xff]  ;;  %v3349_v21 = vpack.c.bf16 %v2924_v44, %v2923_v15 }
 0x258   : > { %v3026_v41 = vsel %vm415_vm0, %v3024_v61, %v3025_v10  ;;  %v3138_v43 = vsel %vm528_vm1, %v3136_v33, %v3137_v48  ;;  %3212 = vst [vmem:[#allocation2 + $0x148] sm:$0x7f] %v3137_v48  ;;  %v7013_v14 = vadd.f32 %v7012_v28, %v8760_v17  ;;  %v7022_v12 = vadd.f32 %v8639_v0, %v6169_v52  ;;  %v8819_v0 = vpop.f32.mrb[90].mxu1 }
 0x259   : > { %3100 = vst [vmem:[#allocation2 + $0x138] sm:$0xff] %v3026_v41  ;;  %3211 = vst [vmem:[#allocation2 + $0x130] sm:$0xff] %v3138_v43  ;;  %v3347_v54 = vpack.c.bf16 %v8807_v39, %v3135_v2  ;;  %3643 = vmatmul.mubr.bf16.gmra.mrb[180].mxu0 %v3345_v59  ;;  %6863 = vmatpush3.bf16.msra.mxu1 %v7518_v53  ;;  %v8821_v18 = vpop.f32.mrb[91].mxu1 }
 0x25a   : > { %v2925_v9 = vmax.f32 %v7013_v14, 0.0  ;;  %v7023_v63 = vadd.f32 %v7022_v12, %v8764_v13  ;;  %v6170_v50 = vpop.f32.mrb[124].mxu0  ;;  %3650 = vmatprep.mubr.bf16.mxu0 %v3349_v21  ;;  %6520 = vmatprep.subr.bf16.mxu1 %v7522_v47 }
 0x25b   : > { %v6171_v15 = vpop.f32.mrb[125].mxu0  ;;  %6825 = vmatmul.mubr.bf16.gmra.mrb[104].mxu1 %v3347_v54 }
 0x25c   : > { %2957 = vst [vmem:[#allocation2 + $0x158] sm:$0xff] %v2925_v9  ;;  %v3027_v17 = vrot.slane %v2925_v9, 7  ;;  %v2926_v8 = vmax.f32 %v7023_v63, 0.0  ;;  %v6172_v38 = vadd.f32 %v6171_v15, %v6170_v50  ;;  %v6173_v2 = vpop.f32.mrb[126].mxu0  ;;  %v3139_v36 = vrot.slane %v2925_v9, 1  ;;  %v8831_v21 = vpop.f32.mrb[92].mxu1 }
 0x25d   : > { %v6174_v61 = vpop.f32.mrb[127].mxu0  ;;  %v3270_v13 = vld [vmem:[#allocation2 + $0x120] sm:$0xff]  ;;  %v8834_v12 = vpop.f32.mrb[93].mxu1 }
 0x25e   : > { %3101 = vst [vmem:[#allocation2 + $0x150] sm:$0xfe] %v3027_v17  ;;  %2958 = vst [vmem:[#allocation2 + $0x170] sm:$0xff] %v2926_v8  ;;  %v3028_v44 = vrot.slane %v2926_v8, 7  ;;  %v3140_v7 = vrot.slane %v2926_v8, 1  ;;  %v7007_v42 = vadd.f32 %v8628_v6, %v6172_v38  ;;  %v6175_v33 = vadd.f32 %v6174_v61, %v6173_v2 }
 0x25f   : > { %v3348_v23 = vpack.c.bf16 %v3026_v41, %v3270_v13  ;;  %v8824_v51 = vld [vmem:[#allocation2 + $0x148] sm:$0xff]  ;;  %v3352_v10 = vpack.c.bf16 %v2926_v8, %v2925_v9  ;;  %v8836_v9 = vpop.f32.mrb[94].mxu1 }
 0x260   : > { %v3029_v53 = vsel %vm415_vm0, %v3027_v17, %v3028_v44  ;;  %v3141_v48 = vsel %vm528_vm1, %v3139_v36, %v3140_v7  ;;  %3214 = vst [vmem:[#allocation2 + $0x178] sm:$0x7f] %v3140_v7  ;;  %v7008_v28 = vadd.f32 %v7007_v42, %v8757_v30  ;;  %v7017_v52 = vadd.f32 %v8636_v56, %v6175_v33 }
 0x261   : > { %3102 = vst [vmem:[#allocation2 + $0x168] sm:$0xff] %v3029_v53  ;;  %3213 = vst [vmem:[#allocation2 + $0x160] sm:$0xff] %v3141_v48  ;;  %v3350_v59 = vpack.c.bf16 %v8824_v51, %v3138_v43  ;;  %3651 = vmatmul.mubr.bf16.gmra.mrb[184].mxu0 %v3348_v23  ;;  %v8838_v43 = vpop.f32.mrb[95].mxu1 }
 0x262   : > { %v2927_v6 = vmax.f32 %v7008_v28, 0.0  ;;  %v7018_v41 = vadd.f32 %v7017_v52, %v8762_v27  ;;  %v6176_v14 = vpop.f32.mrb[128].mxu0  ;;  %3658 = vmatprep.mubr.bf16.mxu0 %v3352_v10 }
 0x263   : > { %v6177_v54 = vpop.f32.mrb[129].mxu0  ;;  %6828 = vmatprep.mubr.bf16.mxu1 %v3350_v59 }
 0x264   : > { %2959 = vst [vmem:[#allocation2 + $0x188] sm:$0xff] %v2927_v6  ;;  %v3030_v47 = vrot.slane %v2927_v6, 7  ;;  %v2928_v30 = vmax.f32 %v7018_v41, 0.0  ;;  %v6178_v56 = vadd.f32 %v6177_v54, %v6176_v14  ;;  %v6179_v63 = vpop.f32.mrb[130].mxu0  ;;  %v3142_v50 = vrot.slane %v2927_v6, 1 }
 0x265   : > { %v6180_v15 = vpop.f32.mrb[131].mxu0  ;;  %v3276_v17 = vld [vmem:[#allocation2 + $0x150] sm:$0xff] }
 0x266   : > { %3103 = vst [vmem:[#allocation2 + $0x180] sm:$0xfe] %v3030_v47  ;;  %2960 = vst [vmem:[#allocation2 + $0x1a0] sm:$0xff] %v2928_v30  ;;  %v3031_v27 = vrot.slane %v2928_v30, 7  ;;  %v3143_v8 = vrot.slane %v2928_v30, 1  ;;  %v7032_v38 = vadd.f32 %v8654_v24, %v6178_v56  ;;  %v6181_v2 = vadd.f32 %v6180_v15, %v6179_v63 }
 0x267   : > { %v3351_v36 = vpack.c.bf16 %v3029_v53, %v3276_v17  ;;  %v8841_v61 = vld [vmem:[#allocation2 + $0x178] sm:$0xff]  ;;  %v3355_v13 = vpack.c.bf16 %v2928_v30, %v2927_v6 }
 0x268   : > { %v3032_v44 = vsel %vm415_vm0, %v3030_v47, %v3031_v27  ;;  %v3144_v7 = vsel %vm528_vm1, %v3142_v50, %v3143_v8  ;;  %3216 = vst [vmem:[#allocation2 + $0x1a8] sm:$0x7f] %v3143_v8  ;;  %v7033_v42 = vadd.f32 %v7032_v38, %v8778_v31  ;;  %v7042_v33 = vadd.f32 %v8660_v1, %v6181_v2 }
 0x269   : > { %3104 = vst [vmem:[#allocation2 + $0x198] sm:$0xff] %v3032_v44  ;;  %3215 = vst [vmem:[#allocation2 + $0x190] sm:$0xff] %v3144_v7  ;;  %v3353_v23 = vpack.c.bf16 %v8841_v61, %v3141_v48  ;;  %3659 = vmatmul.mubr.bf16.gmra.mrb[188].mxu0 %v3351_v36 }
 0x26a   : > { %v2929_v10 = vmax.f32 %v7033_v42, 0.0  ;;  %v7043_v24 = vadd.f32 %v7042_v33, %v8782_v26  ;;  %v6182_v53 = vpop.f32.mrb[132].mxu0  ;;  %3666 = vmatprep.mubr.bf16.mxu0 %v3355_v13 }
 0x26b   : > { %v6183_v28 = vpop.f32.mrb[133].mxu0  ;;  %6829 = vmatmul.mubr.bf16.gmra.mrb[108].mxu1 %v3353_v23 }
 0x26c   : > { %2961 = vst [vmem:[#allocation2 + $0x1b8] sm:$0xff] %v2929_v10  ;;  %v3033_v52 = vrot.slane %v2929_v10, 7  ;;  %v2930_v59 = vmax.f32 %v7043_v24, 0.0  ;;  %v6184_v6 = vadd.f32 %v6183_v28, %v6182_v53  ;;  %v6185_v41 = vpop.f32.mrb[134].mxu0  ;;  %v3145_v14 = vrot.slane %v2929_v10, 1 }
 0x26d   : > { %v6186_v31 = vpop.f32.mrb[135].mxu0  ;;  %v8849_v1 = vld [vmem:[#allocation2 + $0x180] sm:$0xff] }
 0x26e   : > { %3105 = vst [vmem:[#allocation2 + $0x1b0] sm:$0xfe] %v3033_v52  ;;  %2962 = vst [vmem:[#allocation2 + $0x1d0] sm:$0xff] %v2930_v59  ;;  %v3034_v48 = vrot.slane %v2930_v59, 7  ;;  %v3146_v54 = vrot.slane %v2930_v59, 1  ;;  %v7027_v26 = vadd.f32 %v8651_v25, %v6184_v6  ;;  %v6187_v47 = vadd.f32 %v6186_v31, %v6185_v41 }
 0x26f   : > { %v3354_v30 = vpack.c.bf16 %v3032_v44, %v8849_v1  ;;  %v3287_v56 = vld [vmem:[#allocation2 + $0x1a8] sm:$0xff]  ;;  %v3358_v63 = vpack.c.bf16 %v2930_v59, %v2929_v10 }
 0x270   : > { %v3035_v50 = vsel %vm415_vm0, %v3033_v52, %v3034_v48  ;;  %v3147_v15 = vsel %vm528_vm1, %v3145_v14, %v3146_v54  ;;  %3218 = vst [vmem:[#allocation2 + $0x1d8] sm:$0x7f] %v3146_v54  ;;  %v7028_v17 = vadd.f32 %v7027_v26, %v8775_v3  ;;  %v7037_v27 = vadd.f32 %v8657_v45, %v6187_v47 }
 0x271   : > { %3106 = vst [vmem:[#allocation2 + $0x1c8] sm:$0xff] %v3035_v50  ;;  %3217 = vst [vmem:[#allocation2 + $0x1c0] sm:$0xff] %v3147_v15  ;;  %v8857_v8 = vpack.c.bf16 %v3287_v56, %v3144_v7  ;;  %3667 = vmatmul.mubr.bf16.gmra.mrb[192].mxu0 %v3354_v30 }
 0x272   : > { %v2931_v38 = vmax.f32 %v7028_v17, 0.0  ;;  %v7038_v25 = vadd.f32 %v7037_v27, %v8780_v4  ;;  %v6188_v2 = vpop.f32.mrb[136].mxu0  ;;  %3674 = vmatprep.mubr.bf16.mxu0 %v3358_v63 }
 0x273   : > { %v6189_v36 = vpop.f32.mrb[137].mxu0  ;;  %6832 = vmatprep.mubr.bf16.mxu1 %v8857_v8 }
 0x274   : > { %2963 = vst [vmem:[#allocation2 + $0x1e8] sm:$0xff] %v2931_v38  ;;  %v3036_v13 = vrot.slane %v2931_v38, 7  ;;  %v2932_v44 = vmax.f32 %v7038_v25, 0.0  ;;  %v6190_v42 = vadd.f32 %v6189_v36, %v6188_v2  ;;  %v6191_v33 = vpop.f32.mrb[138].mxu0  ;;  %v3148_v3 = vrot.slane %v2931_v38, 1 }
 0x275   : > { %v6192_v23 = vpop.f32.mrb[139].mxu0  ;;  %v8861_v45 = vld [vmem:[#allocation2 + $0x1b0] sm:$0xff] }
 0x276   : > { %3107 = vst [vmem:[#allocation2 + $0x1e0] sm:$0xfe] %v3036_v13  ;;  %2964 = vst [vmem:[#allocation2 + $0x200] sm:$0xff] %v2932_v44  ;;  %v3037_v7 = vrot.slane %v2932_v44, 7  ;;  %v3149_v10 = vrot.slane %v2932_v44, 1  ;;  %v7052_v4 = vadd.f32 %v8674_v58, %v6190_v42  ;;  %v6193_v24 = vadd.f32 %v6192_v23, %v6191_v33 }
 0x277   : > { %v3357_v53 = vpack.c.bf16 %v3035_v50, %v8861_v45  ;;  %v3293_v28 = vld [vmem:[#allocation2 + $0x1d8] sm:$0xff]  ;;  %v3361_v52 = vpack.c.bf16 %v2932_v44, %v2931_v38 }
 0x278   : > { %v3038_v59 = vsel %vm415_vm0, %v3036_v13, %v3037_v7  ;;  %v3150_v6 = vsel %vm528_vm1, %v3148_v3, %v3149_v10  ;;  %3220 = vst [vmem:[#allocation2 + $0x208] sm:$0x7f] %v3149_v10  ;;  %v7053_v41 = vadd.f32 %v7052_v4, %v8799_v32  ;;  %v7062_v14 = vadd.f32 %v8680_v46, %v6193_v24 }
 0x279   : > { %3108 = vst [vmem:[#allocation2 + $0x1f8] sm:$0xff] %v3038_v59  ;;  %3219 = vst [vmem:[#allocation2 + $0x1f0] sm:$0xff] %v3150_v6  ;;  %v8869_v31 = vpack.c.bf16 %v3293_v28, %v3147_v15  ;;  %3675 = vmatmul.mubr.bf16.gmra.mrb[196].mxu0 %v3357_v53 }
 0x27a   : > { %v2933_v48 = vmax.f32 %v7053_v41, 0.0  ;;  %v7063_v58 = vadd.f32 %v7062_v14, %v8803_v37  ;;  %v6194_v54 = vpop.f32.mrb[140].mxu0  ;;  %3682 = vmatprep.mubr.bf16.mxu0 %v3361_v52 }
 0x27b   : > { %v6195_v26 = vpop.f32.mrb[141].mxu0  ;;  %6833 = vmatmul.mubr.bf16.gmra.mrb[112].mxu1 %v8869_v31 }
 0x27c   : > { %2965 = vst [vmem:[#allocation2 + $0x218] sm:$0xff] %v2933_v48  ;;  %v3039_v47 = vrot.slane %v2933_v48, 7  ;;  %v2934_v30 = vmax.f32 %v7063_v58, 0.0  ;;  %v6196_v56 = vadd.f32 %v6195_v26, %v6194_v54  ;;  %v6197_v63 = vpop.f32.mrb[142].mxu0  ;;  %v3151_v32 = vrot.slane %v2933_v48, 1 }
 0x27d   : > { %v6198_v50 = vpop.f32.mrb[143].mxu0  ;;  %v8873_v46 = vld [vmem:[#allocation2 + $0x1e0] sm:$0xff] }
 0x27e   : > { %3109 = vst [vmem:[#allocation2 + $0x210] sm:$0xfe] %v3039_v47  ;;  %2966 = vst [vmem:[#allocation2 + $0x230] sm:$0xff] %v2934_v30  ;;  %v3040_v15 = vrot.slane %v2934_v30, 7  ;;  %v3152_v17 = vrot.slane %v2934_v30, 1  ;;  %v7047_v37 = vadd.f32 %v8671_v19, %v6196_v56  ;;  %v6199_v27 = vadd.f32 %v6198_v50, %v6197_v63 }
 0x27f   : > { %v3360_v38 = vpack.c.bf16 %v3038_v59, %v8873_v46  ;;  %v3299_v25 = vld [vmem:[#allocation2 + $0x208] sm:$0xff]  ;;  %v3364_v2 = vpack.c.bf16 %v2934_v30, %v2933_v48 }
 0x280   : > { %v3041_v36 = vsel %vm415_vm0, %v3039_v47, %v3040_v15  ;;  %v3153_v13 = vsel %vm528_vm1, %v3151_v32, %v3152_v17  ;;  %3222 = vst [vmem:[#allocation2 + $0x238] sm:$0x7f] %v3152_v17  ;;  %v7048_v44 = vadd.f32 %v7047_v37, %v8796_v60  ;;  %v7057_v42 = vadd.f32 %v8677_v35, %v6199_v27 }
 0x281   : > { %3110 = vst [vmem:[#allocation2 + $0x228] sm:$0xff] %v3041_v36  ;;  %3221 = vst [vmem:[#allocation2 + $0x220] sm:$0xff] %v3153_v13  ;;  %v8881_v33 = vpack.c.bf16 %v3299_v25, %v3150_v6  ;;  %3683 = vmatmul.mubr.bf16.gmra.mrb[200].mxu0 %v3360_v38 }
 0x282   : > { %v2935_v3 = vmax.f32 %v7048_v44, 0.0  ;;  %v7058_v19 = vadd.f32 %v7057_v42, %v8801_v57  ;;  %v6200_v23 = vpop.f32.mrb[144].mxu0  ;;  %3690 = vmatprep.mubr.bf16.mxu0 %v3364_v2 }
 0x283   : > { %v6201_v7 = vpop.f32.mrb[145].mxu0  ;;  %6836 = vmatprep.mubr.bf16.mxu1 %v8881_v33 }
 0x284   : > { %2967 = vst [vmem:[#allocation2 + $0x248] sm:$0xff] %v2935_v3  ;;  %v3042_v10 = vrot.slane %v2935_v3, 7  ;;  %v2936_v4 = vmax.f32 %v7058_v19, 0.0  ;;  %v6202_v24 = vadd.f32 %v6201_v7, %v6200_v23  ;;  %v6203_v53 = vpop.f32.mrb[146].mxu0  ;;  %v3154_v60 = vrot.slane %v2935_v3, 1 }
 0x285   : > { %v6204_v28 = vpop.f32.mrb[147].mxu0  ;;  %v8885_v35 = vld [vmem:[#allocation2 + $0x210] sm:$0xff] }
 0x286   : > { %3111 = vst [vmem:[#allocation2 + $0x240] sm:$0xfe] %v3042_v10  ;;  %2968 = vst [vmem:[#allocation2 + $0x260] sm:$0xff] %v2936_v4  ;;  %v3043_v52 = vrot.slane %v2936_v4, 7  ;;  %v3155_v59 = vrot.slane %v2936_v4, 1  ;;  %v7072_v57 = vadd.f32 %v8694_v29, %v6202_v24  ;;  %v6205_v6 = vadd.f32 %v6204_v28, %v6203_v53 }
 0x287   : > { %v3363_v41 = vpack.c.bf16 %v3041_v36, %v8885_v35  ;;  %v3305_v14 = vld [vmem:[#allocation2 + $0x238] sm:$0xff]  ;;  %v3367_v48 = vpack.c.bf16 %v2936_v4, %v2935_v3 }
 0x288   : > { %v3044_v58 = vsel %vm415_vm0, %v3042_v10, %v3043_v52  ;;  %v3156_v54 = vsel %vm528_vm1, %v3154_v60, %v3155_v59  ;;  %3224 = vst [vmem:[#allocation2 + $0x268] sm:$0x7f] %v3155_v59  ;;  %v7073_v26 = vadd.f32 %v7072_v57, %v8817_v49  ;;  %v7082_v47 = vadd.f32 %v8700_v62, %v6205_v6 }
 0x289   : > { %3112 = vst [vmem:[#allocation2 + $0x258] sm:$0xff] %v3044_v58  ;;  %3223 = vst [vmem:[#allocation2 + $0x250] sm:$0xff] %v3156_v54  ;;  %v8893_v30 = vpack.c.bf16 %v3305_v14, %v3153_v13  ;;  %3691 = vmatmul.mubr.bf16.gmra.mrb[204].mxu0 %v3363_v41 }
 0x28a   : > { %v2937_v56 = vmax.f32 %v7073_v26, 0.0  ;;  %v7083_v29 = vadd.f32 %v7082_v47, %v8821_v18  ;;  %v6206_v63 = vpop.f32.mrb[148].mxu0  ;;  %3698 = vmatprep.mubr.bf16.mxu0 %v3367_v48 }
 0x28b   : > { %v6207_v32 = vpop.f32.mrb[149].mxu0  ;;  %6837 = vmatmul.mubr.bf16.gmra.mrb[116].mxu1 %v8893_v30 }
 0x28c   : > { %2969 = vst [vmem:[#allocation2 + $0x278] sm:$0xff] %v2937_v56  ;;  %v3045_v50 = vrot.slane %v2937_v56, 7  ;;  %v8897_v15 = vmax.f32 %v7083_v29, 0.0  ;;  %v6208_v17 = vadd.f32 %v6207_v32, %v6206_v63  ;;  %v6209_v49 = vpop.f32.mrb[150].mxu0  ;;  %v3157_v37 = vrot.slane %v2937_v56, 1 }
 0x28d   : > { %v6210_v62 = vpop.f32.mrb[151].mxu0  ;;  %v8899_v27 = vld [vmem:[#allocation2 + $0x240] sm:$0xff] }
 0x28e   : > { %3113 = vst [vmem:[#allocation2 + $0x270] sm:$0xfe] %v3045_v50  ;;  %2970 = vst [vmem:[#allocation2 + $0x290] sm:$0xff] %v8897_v15  ;;  %v3046_v18 = vrot.slane %v8897_v15, 7  ;;  %v3158_v38 = vrot.slane %v8897_v15, 1  ;;  %v7067_v25 = vadd.f32 %v8691_v22, %v6208_v17  ;;  %v6211_v2 = vadd.f32 %v6210_v62, %v6209_v49 }
 0x28f   : > { %v3366_v36 = vpack.c.bf16 %v3044_v58, %v8899_v27  ;;  %v3311_v13 = vld [vmem:[#allocation2 + $0x268] sm:$0xff]  ;;  %v3370_v44 = vpack.c.bf16 %v8897_v15, %v2937_v56 }
 0x290   : > { %v3047_v42 = vsel %vm415_vm0, %v3045_v50, %v3046_v18  ;;  %v3159_v3 = vsel %vm528_vm1, %v3157_v37, %v3158_v38  ;;  %3226 = vst [vmem:[#allocation2 + $0x298] sm:$0x7f] %v3158_v38  ;;  %v7068_v19 = vadd.f32 %v7067_v25, %v8814_v34  ;;  %v7077_v23 = vadd.f32 %v8697_v5, %v6211_v2 }
 0x291   : > { %3114 = vst [vmem:[#allocation2 + $0x288] sm:$0xff] %v3047_v42  ;;  %3225 = vst [vmem:[#allocation2 + $0x280] sm:$0xff] %v3159_v3  ;;  %v8911_v7 = vpack.c.bf16 %v3311_v13, %v3156_v54  ;;  %3699 = vmatmul.mubr.bf16.gmra.mrb[208].mxu0 %v3366_v36 }
 0x292   : > { %v2939_v22 = vmax.f32 %v7068_v19, 0.0  ;;  %v7078_v10 = vadd.f32 %v7077_v23, %v8819_v0  ;;  %v6212_v4 = vpop.f32.mrb[152].mxu0  ;;  %3706 = vmatprep.mubr.bf16.mxu0 %v3370_v44 }
 0x293   : > { %v6213_v24 = vpop.f32.mrb[153].mxu0  ;;  %6840 = vmatprep.mubr.bf16.mxu1 %v8911_v7 }
 0x294   : > { %2971 = vst [vmem:[#allocation2 + $0x2a8] sm:$0xff] %v2939_v22  ;;  %v3048_v53 = vrot.slane %v2939_v22, 7  ;;  %v8915_v60 = vmax.f32 %v7078_v10, 0.0  ;;  %v6214_v28 = vadd.f32 %v6213_v24, %v6212_v4  ;;  %v6215_v34 = vpop.f32.mrb[154].mxu0  ;;  %v3160_v52 = vrot.slane %v2939_v22, 1 }
 0x295   : > { %v6216_v5 = vpop.f32.mrb[155].mxu0  ;;  %v8917_v59 = vld [vmem:[#allocation2 + $0x270] sm:$0xff] }
 0x296   : > { %3115 = vst [vmem:[#allocation2 + $0x2a0] sm:$0xfe] %v3048_v53  ;;  %2972 = vst [vmem:[#allocation2 + $0x2c0] sm:$0xff] %v8915_v60  ;;  %v3049_v0 = vrot.slane %v8915_v60, 7  ;;  %v3161_v57 = vrot.slane %v8915_v60, 1  ;;  %v7092_v6 = vadd.f32 %v8714_v55, %v6214_v28  ;;  %v6217_v41 = vadd.f32 %v6216_v5, %v6215_v34 }
 0x297   : > { %v3369_v14 = vpack.c.bf16 %v3047_v42, %v8917_v59  ;;  %v3317_v48 = vld [vmem:[#allocation2 + $0x298] sm:$0xff]  ;;  %v3373_v58 = vpack.c.bf16 %v8915_v60, %v2939_v22 }
 0x298   : > { %v3050_v54 = vsel %vm415_vm0, %v3048_v53, %v3049_v0  ;;  %v3162_v26 = vsel %vm528_vm1, %v3160_v52, %v3161_v57  ;;  %3228 = vst [vmem:[#allocation2 + $0x2c8] sm:$0x7f] %v3161_v57  ;;  %v7093_v47 = vadd.f32 %v7092_v6, %v8834_v12  ;;  %v7102_v56 = vadd.f32 %v8720_v11, %v6217_v41  ;;  %v3996_v57 = vld [vmem:[#allocation2 + $0x40] sm:$0xff]  ;;  %v3999_v6 = vld [vmem:[#allocation2 + $0x58] sm:$0xff] }
 0x299   : > { %3116 = vst [vmem:[#allocation2 + $0x2b8] sm:$0xff] %v3050_v54  ;;  %3227 = vst [vmem:[#allocation2 + $0x2b0] sm:$0xff] %v3162_v26  ;;  %v8929_v29 = vpack.c.bf16 %v3317_v48, %v3159_v3  ;;  %3707 = vmatmul.mubr.bf16.gmra.mrb[212].mxu0 %v3369_v14 }
 0x29a   : > { %v2941_v55 = vmax.f32 %v7093_v47, 0.0  ;;  %v7103_v63 = vadd.f32 %v7102_v56, %v8838_v43  ;;  %v6218_v32 = vpop.f32.mrb[156].mxu0  ;;  %3714 = vmatprep.mubr.bf16.mxu0 %v3373_v58  ;;  %v3998_v56 = vld [vmem:[#allocation2 + $0x50] sm:$0xff] }
 0x29b   : > { %v6219_v50 = vpop.f32.mrb[157].mxu0  ;;  %6841 = vmatmul.mubr.bf16.gmra.mrb[120].mxu1 %v8929_v29 }
 0x29c   : > { %2973 = vst [vmem:[#allocation2 + $0x2d8] sm:$0xff] %v2941_v55  ;;  %v3051_v17 = vrot.slane %v2941_v55, 7  ;;  %v2942_v49 = vmax.f32 %v7103_v63, 0.0  ;;  %v6220_v37 = vadd.f32 %v6219_v50, %v6218_v32  ;;  %v6221_v62 = vpop.f32.mrb[158].mxu0  ;;  %v3163_v12 = vrot.slane %v2941_v55, 1  ;;  %v3995_v63 = vld [vmem:[#allocation2 + $0x38] sm:$0xff] }
 0x29d   : > { %v6222_v18 = vpop.f32.mrb[159].mxu0  ;;  %v3318_v11 = vld [vmem:[#allocation2 + $0x2a0] sm:$0xff]  ;;  %v4091_v32 = vpack.c.bf16 %v3998_v56, %v3995_v63  ;;  %v4002_v50 = vld [vmem:[#allocation2 + $0x70] sm:$0xff] }
 0x29e   : > { %3117 = vst [vmem:[#allocation2 + $0x2d0] sm:$0xfe] %v3051_v17  ;;  %2974 = vst [vmem:[#allocation2 + $0x2f0] sm:$0xff] %v2942_v49  ;;  %v3052_v38 = vrot.slane %v2942_v49, 7  ;;  %v3164_v25 = vrot.slane %v2942_v49, 1  ;;  %v7087_v43 = vadd.f32 %v8711_v40, %v6220_v37  ;;  %v6223_v2 = vadd.f32 %v6222_v18, %v6221_v62  ;;  %v4011_v37 = vld [vmem:[#allocation2 + $0xb8] sm:$0xff] }
 0x29f   : > { %v8934_v36 = vpack.c.bf16 %v3050_v54, %v3318_v11  ;;  %v3323_v13 = vld [vmem:[#allocation2 + $0x2c8] sm:$0xff]  ;;  %v8936_v44 = vpack.c.bf16 %v2942_v49, %v2941_v55  ;;  %v4092_v55 = vpack.c.bf16 %v3999_v6, %v3996_v57  ;;  %v4008_v49 = vld [vmem:[#allocation2 + $0xa0] sm:$0xff]  ;;  %v7529_v6 = vld [vmem:[#allocation9 + $0x198] sm:$0xff]  }
 0x2a0   : > { %v3053_v42 = vsel %vm415_vm0, %v3051_v17, %v3052_v38  ;;  %v3165_v3 = vsel %vm528_vm1, %v3163_v12, %v3164_v25  ;;  %3230 = vst [vmem:[#allocation2 + $0x2f8] sm:$0x7f] %v3164_v25  ;;  %v7088_v19 = vadd.f32 %v7087_v43, %v8831_v21  ;;  %v7097_v23 = vadd.f32 %v8717_v16, %v6223_v2  ;;  %v4005_v17 = vld [vmem:[#allocation2 + $0x88] sm:$0xff]  ;;  %v7523_v12 = vld [vmem:[#allocation9 + $0x180] sm:$0xff]   ;;  %v3994_v25 = vld [vmem:[#allocation2 + $0x30] sm:$0xff] }
 0x2a1   : > { %3118 = vst [vmem:[#allocation2 + $0x2e8] sm:$0xff] %v3053_v42  ;;  %3229 = vst [vmem:[#allocation2 + $0x2e0] sm:$0xff] %v3165_v3  ;;  %v8942_v22 = vpack.c.bf16 %v3323_v13, %v3162_v26  ;;  %3715 = vmatmul.mubr.bf16.gmra.mrb[216].mxu0 %v8934_v36  ;;  %v3997_v62 = vld [vmem:[#allocation2 + $0x48] sm:$0xff]  ;;  %v4095_v18 = vpack.c.bf16 %v4005_v17, %v4002_v50  ;;  %v4004_v11 = vld [vmem:[#allocation2 + $0x80] sm:$0xff]  ;;  %v4098_v43 = vpack.c.bf16 %v4011_v37, %v4008_v49 }
 0x2a2   : > { %v8944_v40 = vmax.f32 %v7088_v19, 0.0  ;;  %v7098_v10 = vadd.f32 %v7097_v23, %v8836_v9  ;;  %v6264_v4 = vpop.f32.mrb[160].mxu0  ;;  %3722 = vmatprep.mubr.bf16.mxu0 %v8936_v44  ;;  %v7524_v38 = vld [vmem:[#allocation9 + $0x1c8] sm:$0xff]   ;;  %v4090_v2 = vpack.c.bf16 %v3997_v62, %v3994_v25  ;;  %v7526_v19 = vld [vmem:[#allocation9 + $0x1d0] sm:$0xff]   ;;  %v8997_v56 = vld [vmem:[#allocation2 + $0x160] sm:$0xff] }
 0x2a3   : > { %6844 = vmatprep.mubr.bf16.mxu1 %v8942_v22  ;;  %v6265_v24 = vpop.f32.mrb[161].mxu0  ;;  %v4001_v13 = vld [vmem:[#allocation2 + $0x68] sm:$0xff]  ;;  %v8981_v23 = vld [vmem:[#allocation2 + $0xd0] sm:$0xff]  ;;  %v4110_v49 = vpack.c.bf16 %v8841_v61, %v8997_v56  ;;  %v7536_v61 = vld [vmem:[#allocation9 + $0x1f8] sm:$0xff]  }
 0x2a4   : > { %2975 = vst [vmem:[#allocation2 + $0x308] sm:$0xff] %v8944_v40  ;;  %v3054_v53 = vrot.slane %v8944_v40, 7  ;;  %v8950_v28 = vmax.f32 %v7098_v10, 0.0  ;;  %v8953_v16 = vadd.f32 %v6265_v24, %v6264_v4  ;;  %v6267_v21 = vpop.f32.mrb[162].mxu0  ;;  %v3166_v9 = vrot.slane %v8944_v40, 1  ;;  %v8983_v10 = vld [vmem:[#allocation2 + $0x100] sm:$0xff] }
 0x2a5   : > { %v3324_v34 = vld [vmem:[#allocation2 + $0x2d0] sm:$0xff]  ;;  %v6268_v52 = vpop.f32.mrb[163].mxu0  ;;  %v4003_v4 = vld [vmem:[#allocation2 + $0x78] sm:$0xff]  ;;  %v7532_v50 = vld [vmem:[#allocation9 + $0x1e8] sm:$0xff]  }
 0x2a6   : > { %3119 = vst [vmem:[#allocation2 + $0x300] sm:$0xfe] %v3054_v53  ;;  %2976 = vst [vmem:[#allocation2 + $0x320] sm:$0xff] %v8950_v28  ;;  %v3055_v5 = vrot.slane %v8950_v28, 7  ;;  %v3167_v0 = vrot.slane %v8950_v28, 1  ;;  %v8960_v14 = vadd.f32 %v6268_v52, %v6267_v21  ;;  %v4136_v48 = vpack.c.bf16 %v8950_v28, %v8944_v40  ;;  %v7527_v24 = vld [vmem:[#allocation9 + $0x190] sm:$0xff]  }
 0x2a7   : > { %v3329_v41 = vld [vmem:[#allocation2 + $0x2f8] sm:$0xff]  ;;  %v8970_v26 = vpack.c.bf16 %v3053_v42, %v3324_v34  ;;  %v8978_v42 = vpack.c.bf16 %v4004_v11, %v4001_v13  ;;  %v4010_v21 = vld [vmem:[#allocation2 + $0xb0] sm:$0xff]  ;;  %v4000_v52 = vld [vmem:[#allocation2 + $0x60] sm:$0xff] }
 0x2a8   : > { %v8965_v58 = vsel %vm415_vm0, %v3054_v53, %v3055_v5  ;;  %v8968_v54 = vsel %vm528_vm1, %v3166_v9, %v3167_v0  ;;  %3232 = vst [vmem:[#allocation2 + $0x328] sm:$0x7f] %v3167_v0  ;;  %v8972_v47 = vpack.c.bf16 %v3329_v41, %v3165_v3  ;;  %v7525_v3 = vld [vmem:[#allocation9 + $0x188] sm:$0xff]   ;;  %v4101_v53 = vpack.c.bf16 %v8786_v20, %v8981_v23  ;;  %v7528_v34 = vld [vmem:[#allocation9 + $0x1d8] sm:$0xff]   ;;  %v7530_v20 = vld [vmem:[#allocation9 + $0x1e0] sm:$0xff]  }
 0x2a9   : > { %3120 = vst [vmem:[#allocation2 + $0x318] sm:$0xff] %v8965_v58  ;;  %3231 = vst [vmem:[#allocation2 + $0x310] sm:$0xff] %v8968_v54  ;;  %3723 = vmatmul.mubr.bf16.gmra.mrb[220].mxu0 %v8970_v26  ;;  %v4104_v9 = vpack.c.bf16 %v8807_v39, %v8983_v10  ;;  %v8989_v5 = vpack.c.bf16 %v4003_v4, %v4000_v52  ;;  %v4007_v0 = vld [vmem:[#allocation2 + $0x98] sm:$0xff]  ;;  %v8995_v41 = vld [vmem:[#allocation2 + $0x130] sm:$0xff] }
 0x2aa   : > { %6845 = vmatmul.mubr.bf16.gmra.mrb[124].mxu1 %v8972_v47  ;;  %4363 = vmatprep.mubr.bf16.mxu0 %v4091_v32  ;;  %v8991_v57 = vpack.c.bf16 %v4010_v21, %v4007_v0  ;;  %v4009_v39 = vld [vmem:[#allocation2 + $0xa8] sm:$0xff]  ;;  %v4107_v63 = vpack.c.bf16 %v8824_v51, %v8995_v41  ;;  %v4016_v32 = vld [vmem:[#allocation2 + $0xe0] sm:$0xff]  ;;  %v4006_v17 = vld [vmem:[#allocation2 + $0x90] sm:$0xff] }
 0x2ab   : > { %6864 = vmatprep.mubr.bf16.mxu1 %v4092_v55  ;;  %v7531_v55 = vld [vmem:[#allocation9 + $0x1a0] sm:$0xff]   ;;  %v9003_v37 = vpack.c.bf16 %v4009_v39, %v4006_v17  ;;  %v4013_v62 = vld [vmem:[#allocation2 + $0xc8] sm:$0xff]  ;;  %v7534_v51 = vld [vmem:[#allocation9 + $0x1f0] sm:$0xff]  }
 0x2ac   : > { %v4015_v11 = vld [vmem:[#allocation2 + $0xd8] sm:$0xff]  ;;  %v4022_v25 = vld [vmem:[#allocation2 + $0x110] sm:$0xff]  ;;  %v7538_v4 = vld [vmem:[#allocation9 + $0x200] sm:$0xff]  }
 0x2ad   : > { %v4019_v13 = vld [vmem:[#allocation2 + $0xf8] sm:$0xff]  ;;  %v4018_v21 = vld [vmem:[#allocation2 + $0xf0] sm:$0xff]  ;;  %v4024_v0 = vld [vmem:[#allocation2 + $0x120] sm:$0xff] }
 0x2ae   : > { %v4797_v28 = vld [vmem:[#allocation2 + $0x1e0] sm:$0xff] }
 0x2b1   : > { %4364 = vmatmul.mubr.bf16.vlgmr.msra.gmra.mrb[224].mxu0 %v4090_v2 }
 0x2b2   : > { %6865 = vmatmul.mubr.bf16.vlgmr.msra.gmra.mrb[96].mxu1 %v4095_v18  ;;  %4371 = vmatprep.mubr.bf16.mxu0 %v8978_v42  ;;  %v7533_v18 = vld [vmem:[#allocation9 + $0x1a8] sm:$0xff]  }
 0x2b3   : > { %6868 = vmatprep.mubr.bf16.mxu1 %v4098_v43  ;;  %6521 = vmatpush3.bf16.msra.mxu1 %v7523_v12  ;;  %v9005_v12 = vpack.c.bf16 %v4016_v32, %v4013_v62  ;;  %v4012_v43 = vld [vmem:[#allocation2 + $0xc0] sm:$0xff]  ;;  %v4037_v32 = vld [vmem:[#allocation2 + $0x188] sm:$0xff]  ;;  %v4043_v62 = vld [vmem:[#allocation2 + $0x1b8] sm:$0xff] }
 0x2b4   : > { %6522 = vmatprep.subr.bf16.mxu1 %v7524_v38  ;;  %v7535_v38 = vld [vmem:[#allocation9 + $0x1b0] sm:$0xff]   ;;  %v9009_v2 = vpack.c.bf16 %v4015_v11, %v4012_v43  ;;  %v7539_v11 = vld [vmem:[#allocation9 + $0x208] sm:$0xff]   ;;  %v7541_v43 = vld [vmem:[#allocation9 + $0x218] sm:$0xff]  }
 0x2b7   : > { %6523 = vmatpush3.bf16.msra.mxu1 %v7525_v3  ;;  %v9012_v3 = vpack.c.bf16 %v4022_v25, %v4019_v13  ;;  %v9062_v25 = vld [vmem:[#allocation2 + $0x1f8] sm:$0xff] }
 0x2b8   : > { %6524 = vmatprep.subr.bf16.mxu1 %v7526_v19  ;;  %v7537_v19 = vld [vmem:[#allocation9 + $0x1b8] sm:$0xff]  }
 0x2b9   : > { %4372 = vmatmul.mubr.bf16.gmra.mrb[228].mxu0 %v8989_v5 }
 0x2ba   : > { %6869 = vmatmul.mubr.bf16.gmra.mrb[100].mxu1 %v4101_v53  ;;  %4379 = vmatprep.mubr.bf16.mxu0 %v8991_v57  ;;  %v4028_v53 = vld [vmem:[#allocation2 + $0x140] sm:$0xff] }
 0x2bb   : > { %6872 = vmatprep.mubr.bf16.mxu1 %v4104_v9  ;;  %6525 = vmatpush3.bf16.msra.mxu1 %v7527_v24  ;;  %v4021_v24 = vld [vmem:[#allocation2 + $0x108] sm:$0xff]  ;;  %v4034_v9 = vld [vmem:[#allocation2 + $0x170] sm:$0xff] }
 0x2bc   : > { %6526 = vmatprep.subr.bf16.mxu1 %v7528_v34  ;;  %v9017_v34 = vpack.c.bf16 %v4021_v24, %v4018_v21  ;;  %v7543_v24 = vld [vmem:[#allocation9 + $0x228] sm:$0xff]   ;;  %v9080_v21 = vld [vmem:[#allocation2 + $0x258] sm:$0xff] }
 0x2bf   : > { %6527 = vmatpush3.bf16.msra.mxu1 %v7529_v6 }
 0x2c0   : > { %6528 = vmatprep.subr.bf16.mxu1 %v7530_v20  ;;  %v4031_v20 = vld [vmem:[#allocation2 + $0x158] sm:$0xff] }
 0x2c1   : > { %4380 = vmatmul.mubr.bf16.gmra.mrb[232].mxu0 %v9003_v37  ;;  %v9028_v39 = vpack.c.bf16 %v4034_v9, %v4031_v20  ;;  %v9090_v9 = vld [vmem:[#allocation2 + $0x288] sm:$0xff] }
 0x2c2   : > { %6873 = vmatmul.mubr.bf16.gmra.mrb[104].mxu1 %v4107_v63  ;;  %4387 = vmatprep.mubr.bf16.mxu0 %v9005_v12  ;;  %v9092_v20 = vld [vmem:[#allocation2 + $0x2a8] sm:$0xff] }
 0x2c3   : > { %6876 = vmatprep.mubr.bf16.mxu1 %v4110_v49  ;;  %6529 = vmatpush3.bf16.msra.mxu1 %v7531_v55  ;;  %v4030_v55 = vld [vmem:[#allocation2 + $0x150] sm:$0xff] }
 0x2c4   : > { %6530 = vmatprep.subr.bf16.mxu1 %v7532_v50  ;;  %v4046_v49 = vld [vmem:[#allocation2 + $0x1d0] sm:$0xff] }
 0x2c7   : > { %6531 = vmatpush3.bf16.msra.mxu1 %v7533_v18  ;;  %v9049_v18 = vpack.c.bf16 %v4046_v49, %v4043_v62 }
 0x2c8   : > { %6532 = vmatprep.subr.bf16.mxu1 %v7534_v51  ;;  %v4052_v51 = vld [vmem:[#allocation2 + $0x200] sm:$0xff] }
 0x2c9   : > { %4388 = vmatmul.mubr.bf16.gmra.mrb[236].mxu0 %v9009_v2 }
 0x2ca   : > { %6877 = vmatmul.mubr.bf16.gmra.mrb[108].mxu1 %v8857_v8  ;;  %4395 = vmatprep.mubr.bf16.mxu0 %v9012_v3  ;;  %v4025_v8 = vld [vmem:[#allocation2 + $0x128] sm:$0xff] }
 0x2cb   : > { %6880 = vmatprep.mubr.bf16.mxu1 %v8869_v31  ;;  %6533 = vmatpush3.bf16.msra.mxu1 %v7535_v38  ;;  %v9020_v52 = vpack.c.bf16 %v4028_v53, %v4025_v8  ;;  %v4027_v31 = vld [vmem:[#allocation2 + $0x138] sm:$0xff]  ;;  %v4049_v38 = vld [vmem:[#allocation2 + $0x1e8] sm:$0xff] }
 0x2cc   : > { %6534 = vmatprep.subr.bf16.mxu1 %v7536_v61  ;;  %v9025_v6 = vpack.c.bf16 %v4027_v31, %v4024_v0  ;;  %v4058_v61 = vld [vmem:[#allocation2 + $0x230] sm:$0xff]  ;;  %v9082_v8 = vld [vmem:[#allocation2 + $0x278] sm:$0xff] }
 0x2cf   : > { %6535 = vmatpush3.bf16.msra.mxu1 %v7537_v19  ;;  %v9071_v19 = vld [vmem:[#allocation2 + $0x228] sm:$0xff] }
 0x2d0   : > { %6896 = vmatprep.subr.bf16.mxu1 %v7538_v4 }
 0x2d1   : > { %4396 = vmatmul.mubr.bf16.gmra.mrb[240].mxu0 %v9017_v34 }
 0x2d2   : > { %6881 = vmatmul.mubr.bf16.gmra.mrb[112].mxu1 %v8881_v33  ;;  %4403 = vmatprep.mubr.bf16.mxu0 %v9020_v52  ;;  %v4033_v33 = vld [vmem:[#allocation2 + $0x168] sm:$0xff] }
 0x2d3   : > { %6884 = vmatprep.mubr.bf16.mxu1 %v8893_v30  ;;  %v4040_v30 = vld [vmem:[#allocation2 + $0x1a0] sm:$0xff]  ;;  %v9033_v63 = vpack.c.bf16 %v4033_v33, %v4030_v55 }
 0x2d4   : > { %v9036_v50 = vpack.c.bf16 %v4040_v30, %v4037_v32  ;;  %v4130_v30 = vpack.c.bf16 %v8915_v60, %v9092_v20 }
 0x2d9   : > { %4404 = vmatmul.mubr.bf16.gmra.mrb[244].mxu0 %v9025_v6 }
 0x2da   : > { %6885 = vmatmul.mubr.bf16.gmra.mrb[116].mxu1 %v8911_v7  ;;  %4411 = vmatprep.mubr.bf16.mxu0 %v9028_v39  ;;  %v9041_v7 = vld [vmem:[#allocation2 + $0x328] sm:$0xff] }
 0x2db   : > { %6888 = vmatprep.mubr.bf16.mxu1 %v8929_v29  ;;  %v9043_v29 = vld [vmem:[#allocation2 + $0x198] sm:$0xff]  ;;  %v4137_v17 = vpack.c.bf16 %v9041_v7, %v8968_v54 }
 0x2e1   : > { %4412 = vmatmul.mubr.bf16.gmra.mrb[248].mxu0 %v9033_v63 }
 0x2e2   : > { %6889 = vmatmul.mubr.bf16.gmra.mrb[120].mxu1 %v8942_v22  ;;  %4419 = vmatprep.mubr.bf16.mxu0 %v9036_v50  ;;  %v4111_v22 = vpack.c.bf16 %v9043_v29, %v8849_v1  ;;  %v9058_v1 = vpack.c.bf16 %v4052_v51, %v4049_v38 }
 0x2e3   : > { %6892 = vmatprep.mubr.bf16.mxu1 %v8972_v47  ;;  %v9053_v47 = vld [vmem:[#allocation2 + $0x1c8] sm:$0xff] }
 0x2e4   : > { %v4114_v54 = vpack.c.bf16 %v9053_v47, %v8861_v45  ;;  %v4117_v45 = vpack.c.bf16 %v9062_v25, %v8873_v46  ;;  %v4120_v46 = vpack.c.bf16 %v9071_v19, %v8885_v35  ;;  %v7545_v35 = vld [vmem:[#allocation9 + $0x238] sm:$0xff]  }
 0x2e9   : > { %4420 = vmatmul.mubr.bf16.gmra.mrb[252].mxu0 %v4111_v22 }
 0x2ea   : > { %6893 = vmatmul.mubr.bf16.gmra.mrb[124].mxu1 %v4137_v17  ;;  %4427 = vmatprep.mubr.bf16.mxu0 %v9049_v18 }
 0x2eb   : > { %5118 = vmatprep.mubr.bf16.mxu1 %v8978_v42  ;;  %v7540_v42 = vld [vmem:[#allocation9 + $0x210] sm:$0xff]  }
 0x2f1   : > { %4428 = vmatmul.mubr.bf16.gmra.mrb[0].mxu0 %v4114_v54 }
 0x2f2   : > { %5119 = vmatmul.mubr.bf16.vlgmr.msra.gmra.mrb[128].mxu1 %v8989_v5  ;;  %4435 = vmatprep.mubr.bf16.mxu0 %v9058_v1  ;;  %v4055_v5 = vld [vmem:[#allocation2 + $0x218] sm:$0xff] }
 0x2f3   : > { %5126 = vmatprep.mubr.bf16.mxu1 %v8991_v57  ;;  %6897 = vmatpush3.bf16.msra.mxu1 %v7538_v4  ;;  %v9067_v13 = vpack.c.bf16 %v4058_v61, %v4055_v5  ;;  %v7542_v57 = vld [vmem:[#allocation9 + $0x220] sm:$0xff]  }
 0x2f4   : > { %6898 = vmatprep.subr.bf16.mxu1 %v7539_v11  ;;  %v4064_v4 = vld [vmem:[#allocation2 + $0x260] sm:$0xff] }
 0x2f7   : > { %6899 = vmatpush3.bf16.msra.mxu1 %v7539_v11 }
 0x2f8   : > { %6900 = vmatprep.subr.bf16.mxu1 %v7540_v42 }
 0x2f9   : > { %4436 = vmatmul.mubr.bf16.gmra.mrb[4].mxu0 %v4117_v45  ;;  %v4869_v45 = vpack.c.bf16 %v9062_v25, %v4797_v28  ;;  %v4837_v28 = vld [vmem:[#allocation2 + $0x320] sm:$0xff] }
 0x2fa   : > { %5127 = vmatmul.mubr.bf16.gmra.mrb[132].mxu1 %v9003_v37  ;;  %4443 = vmatprep.mubr.bf16.mxu0 %v9067_v13  ;;  %v4061_v37 = vld [vmem:[#allocation2 + $0x248] sm:$0xff] }
 0x2fb   : > { %5134 = vmatprep.mubr.bf16.mxu1 %v9005_v12  ;;  %6901 = vmatpush3.bf16.msra.mxu1 %v7540_v42  ;;  %v9076_v53 = vpack.c.bf16 %v4064_v4, %v4061_v37  ;;  %v7544_v12 = vld [vmem:[#allocation9 + $0x230] sm:$0xff]  }
 0x2fc   : > { %6902 = vmatprep.subr.bf16.mxu1 %v7541_v43 }
 0x2ff   : > { %6903 = vmatpush3.bf16.msra.mxu1 %v7541_v43 }
 0x300   : > { %6904 = vmatprep.subr.bf16.mxu1 %v7542_v57 }
 0x301   : > { %4444 = vmatmul.mubr.bf16.gmra.mrb[8].mxu0 %v4120_v46 }
 0x302   : > { %5135 = vmatmul.mubr.bf16.gmra.mrb[136].mxu1 %v9009_v2  ;;  %4451 = vmatprep.mubr.bf16.mxu0 %v9076_v53  ;;  %v4123_v2 = vpack.c.bf16 %v9080_v21, %v8899_v27 }
 0x303   : > { %5142 = vmatprep.mubr.bf16.mxu1 %v9012_v3  ;;  %6905 = vmatpush3.bf16.msra.mxu1 %v7542_v57  ;;  %v4127_v3 = vpack.c.bf16 %v8897_v15, %v9082_v8  ;;  %v4126_v15 = vpack.c.bf16 %v9090_v9, %v8917_v59 }
 0x304   : > { %6906 = vmatprep.subr.bf16.mxu1 %v7543_v24 }
 0x307   : > { %6907 = vmatpush3.bf16.msra.mxu1 %v7543_v24  ;;  %v4803_v24 = vld [vmem:[#allocation2 + $0x210] sm:$0xff] }
 0x308   : > { %6908 = vmatprep.subr.bf16.mxu1 %v7544_v12 }
 0x309   : > { %4452 = vmatmul.mubr.bf16.gmra.mrb[12].mxu0 %v4123_v2  ;;  %v4819_v2 = vld [vmem:[#allocation2 + $0x290] sm:$0xff] }
 0x30a   : > { %5143 = vmatmul.mubr.bf16.gmra.mrb[140].mxu1 %v9017_v34  ;;  %4459 = vmatprep.mubr.bf16.mxu0 %v4127_v3 }
 0x30b   : > { %5150 = vmatprep.mubr.bf16.mxu1 %v9020_v52  ;;  %6909 = vmatpush3.bf16.msra.mxu1 %v7544_v12 }
 0x30c   : > { %6910 = vmatprep.subr.bf16.mxu1 %v7545_v35  ;;  %v6270_v31 = vpop.f32.mrb[164].mxu0 }
 0x30d   : > { %v6271_v0 = vpop.f32.mrb[165].mxu0 }
 0x30e   : > { %v9094_v33 = vadd.f32 %v6271_v0, %v6270_v31  ;;  %v6273_v27 = vpop.f32.mrb[166].mxu0  ;;  %v4809_v31 = vld [vmem:[#allocation2 + $0x240] sm:$0xff] }
 0x30f   : > { %6911 = vmatpush3.bf16.msra.mxu1 %v7545_v35  ;;  %v6274_v34 = vpop.f32.mrb[167].mxu0 }
 0x310   : > { %v9099_v52 = vadd.f32 %v6274_v34, %v6273_v27 }
 0x311   : > { %4460 = vmatmul.mubr.bf16.gmra.mrb[16].mxu0 %v4126_v15 }
 0x312   : > { %5151 = vmatmul.mubr.bf16.gmra.mrb[144].mxu1 %v9025_v6  ;;  %4467 = vmatprep.mubr.bf16.mxu0 %v4130_v30  ;;  %v4785_v6 = vld [vmem:[#allocation2 + $0x180] sm:$0xff] }
 0x313   : > { %5158 = vmatprep.mubr.bf16.mxu1 %v9028_v39  ;;  %v4863_v62 = vpack.c.bf16 %v9043_v29, %v4785_v6 }
 0x314   : > { %v6276_v55 = vpop.f32.mrb[168].mxu0 }
 0x315   : > { %v6277_v32 = vpop.f32.mrb[169].mxu0 }
 0x316   : > { %v9104_v17 = vadd.f32 %v6277_v32, %v6276_v55  ;;  %v6279_v49 = vpop.f32.mrb[170].mxu0  ;;  %v4825_v55 = vld [vmem:[#allocation2 + $0x2c0] sm:$0xff] }
 0x317   : > { %v6280_v22 = vpop.f32.mrb[171].mxu0 }
 0x318   : > { %v9107_v59 = vadd.f32 %v6280_v22, %v6279_v49  ;;  %v4815_v49 = vld [vmem:[#allocation2 + $0x270] sm:$0xff] }
 0x319   : > { %4468 = vmatmul.mubr.bf16.gmra.mrb[20].mxu0 %v8934_v36  ;;  %v4878_v22 = vpack.c.bf16 %v9090_v9, %v4815_v49  ;;  %v4751_v49 = vld [vmem:[#allocation2 + $0x70] sm:$0xff] }
 0x31a   : > { %5159 = vmatmul.mubr.bf16.gmra.mrb[148].mxu1 %v9033_v63  ;;  %4475 = vmatprep.mubr.bf16.mxu0 %v8936_v44  ;;  %v9122_v44 = vld [vmem:[#allocation2 + $0x300] sm:$0xff]  ;;  %v4791_v63 = vld [vmem:[#allocation2 + $0x1b0] sm:$0xff] }
 0x31b   : > { %5166 = vmatprep.mubr.bf16.mxu1 %v9036_v50  ;;  %v4866_v29 = vpack.c.bf16 %v9053_v47, %v4791_v63 }
 0x31c   : > { %v6282_v60 = vpop.f32.mrb[172].mxu0 }
 0x31d   : > { %v6283_v39 = vpop.f32.mrb[173].mxu0 }
 0x31e   : > { %v9113_v51 = vadd.f32 %v6283_v39, %v6282_v60  ;;  %v6285_v11 = vpop.f32.mrb[174].mxu0 }
 0x31f   : > { %v6286_v54 = vpop.f32.mrb[175].mxu0 }
 0x320   : > { %v9115_v38 = vadd.f32 %v6286_v54, %v6285_v11  ;;  %v4831_v11 = vld [vmem:[#allocation2 + $0x2f0] sm:$0xff] }
 0x321   : > { %4476 = vmatmul.mubr.bf16.gmra.mrb[24].mxu0 %v8970_v26 }
 0x322   : > { %5167 = vmatmul.mubr.bf16.gmra.mrb[152].mxu1 %v4863_v62  ;;  %4483 = vmatprep.mubr.bf16.mxu0 %v4136_v48 }
 0x323   : > { %5174 = vmatprep.mubr.bf16.mxu1 %v9049_v18  ;;  %v4135_v18 = vpack.c.bf16 %v8965_v58, %v9122_v44 }
 0x324   : > { %v6288_v36 = vpop.f32.mrb[176].mxu0 }
 0x325   : > { %v6289_v50 = vpop.f32.mrb[177].mxu0 }
 0x326   : > { %v9125_v42 = vadd.f32 %v6289_v50, %v6288_v36  ;;  %v6291_v61 = vpop.f32.mrb[178].mxu0  ;;  %v4821_v36 = vld [vmem:[#allocation2 + $0x2a0] sm:$0xff] }
 0x327   : > { %v6292_v43 = vpop.f32.mrb[179].mxu0 }
 0x328   : > { %v9129_v26 = vadd.f32 %v6292_v43, %v6291_v61 }
 0x329   : > { %4484 = vmatmul.mubr.bf16.gmra.mrb[28].mxu0 %v4135_v18 }
 0x32a   : > { %5175 = vmatmul.mubr.bf16.gmra.mrb[156].mxu1 %v4866_v29  ;;  %v4828_v29 = vld [vmem:[#allocation2 + $0x2d8] sm:$0xff] }
 0x32b   : > { %5182 = vmatprep.mubr.bf16.mxu1 %v9058_v1  ;;  %v4872_v1 = vpack.c.bf16 %v9071_v19, %v4803_v24  ;;  %v4879_v19 = vpack.c.bf16 %v4819_v2, %v9082_v8  ;;  %v4824_v8 = vld [vmem:[#allocation2 + $0x2b8] sm:$0xff]  ;;  %v4885_v43 = vpack.c.bf16 %v4831_v11, %v4828_v29 }
 0x32c   : > { %v6294_v40 = vpop.f32.mrb[180].mxu0  ;;  %v4881_v50 = vpack.c.bf16 %v4824_v8, %v4821_v36  ;;  %v4836_v2 = vld [vmem:[#allocation2 + $0x318] sm:$0xff] }
 0x32d   : > { %v6295_v48 = vpop.f32.mrb[181].mxu0  ;;  %v4760_v36 = vld [vmem:[#allocation2 + $0xb8] sm:$0xff] }
 0x32e   : > { %v9133_v5 = vadd.f32 %v6295_v48, %v6294_v40  ;;  %v6297_v47 = vpop.f32.mrb[182].mxu0 }
 0x32f   : > { %v6298_v57 = vpop.f32.mrb[183].mxu0 }
 0x330   : > { %v9135_v4 = vadd.f32 %v6298_v57, %v6297_v47 }
 0x332   : > { %5183 = vmatmul.mubr.bf16.gmra.mrb[160].mxu1 %v4869_v45  ;;  %v4827_v45 = vld [vmem:[#allocation2 + $0x2d0] sm:$0xff] }
 0x333   : > { %5190 = vmatprep.mubr.bf16.mxu1 %v9067_v13  ;;  %v4875_v13 = vpack.c.bf16 %v9080_v21, %v4809_v31  ;;  %v4882_v21 = vpack.c.bf16 %v4825_v55, %v9092_v20  ;;  %v4830_v20 = vld [vmem:[#allocation2 + $0x2e8] sm:$0xff] }
 0x334   : > { %v6300_v58 = vpop.f32.mrb[184].mxu0  ;;  %v4884_v57 = vpack.c.bf16 %v4830_v20, %v4827_v45  ;;  %v7547_v31 = vld [vmem:[#allocation2 + $0x8] sm:$0xff]  ;;  %v4772_v45 = vld [vmem:[#allocation2 + $0x118] sm:$0xff] }
 0x335   : > { %v6301_v46 = vpop.f32.mrb[185].mxu0 }
 0x336   : > { %v9139_v37 = vadd.f32 %v6301_v46, %v6300_v58  ;;  %v6303_v12 = vpop.f32.mrb[186].mxu0  ;;  %v4834_v58 = vld [vmem:[#allocation2 + $0x308] sm:$0xff] }
 0x337   : > { %v6304_v35 = vpop.f32.mrb[187].mxu0 }
 0x338   : > { %v9141_v25 = vadd.f32 %v6304_v35, %v6303_v12 }
 0x33a   : > { %5191 = vmatmul.mubr.bf16.gmra.mrb[164].mxu1 %v4872_v1  ;;  %v4888_v1 = vpack.c.bf16 %v4837_v28, %v4834_v58 }
 0x33b   : > { %5198 = vmatprep.mubr.bf16.mxu1 %v9076_v53 }
 0x33c   : > { %v6306_v3 = vpop.f32.mrb[188].mxu0 }
 0x33d   : > { %v6307_v0 = vpop.f32.mrb[189].mxu0 }
 0x33e   : > { %v9145_v27 = vadd.f32 %v6307_v0, %v6306_v3  ;;  %v6309_v34 = vpop.f32.mrb[190].mxu0  ;;  %v9164_v0 = vpack.c.bf16 %v7547_v31, %v7547_v31 }
 0x33f   : > { %v6310_v15 = vpop.f32.mrb[191].mxu0 }
 0x340   : > { %v9148_v30 = vadd.f32 %v6310_v15, %v6309_v34  ;;  %v4887_v34 = vpack.c.bf16 %v4836_v2, %v9122_v44 }
 0x342   : > { %5199 = vmatmul.mubr.bf16.gmra.mrb[168].mxu1 %v4875_v13 }
 0x343   : > { %5206 = vmatprep.mubr.bf16.mxu1 %v4879_v19 }
 0x344   : > { %v6312_v32 = vpop.f32.mrb[192].mxu0 }
 0x345   : > { %v6313_v53 = vpop.f32.mrb[193].mxu0 }
 0x346   : > { %v9151_v60 = vadd.f32 %v6313_v53, %v6312_v32  ;;  %v6315_v6 = vpop.f32.mrb[194].mxu0  ;;  %v4754_v53 = vld [vmem:[#allocation2 + $0x88] sm:$0xff] }
 0x347   : > { %v6316_v39 = vpop.f32.mrb[195].mxu0  ;;  %v4847_v8 = vpack.c.bf16 %v4754_v53, %v4751_v49 }
 0x348   : > { %v9154_v62 = vadd.f32 %v6316_v39, %v6315_v6 }
 0x34a   : > { %5207 = vmatmul.mubr.bf16.gmra.mrb[172].mxu1 %v4878_v22 }
 0x34b   : > { %5214 = vmatprep.mubr.bf16.mxu1 %v4882_v21 }
 0x34c   : > { %v6318_v54 = vpop.f32.mrb[196].mxu0 }
 0x34d   : > { %v6319_v63 = vpop.f32.mrb[197].mxu0 }
 0x34e   : > { %v9156_v61 = vadd.f32 %v6319_v63, %v6318_v54  ;;  %v6321_v9 = vpop.f32.mrb[198].mxu0  ;;  %v4757_v54 = vld [vmem:[#allocation2 + $0xa0] sm:$0xff]  ;;  %v4766_v63 = vld [vmem:[#allocation2 + $0xe8] sm:$0xff] }
 0x34f   : > { %v6322_v18 = vpop.f32.mrb[199].mxu0  ;;  %v4853_v20 = vpack.c.bf16 %v4766_v63, %v8981_v23  ;;  %v4784_v23 = vld [vmem:[#allocation2 + $0x178] sm:$0xff]  ;;  %v9196_v63 = vld [vmem:[%s9547_s4] ss:$0 sm:$0xff] }
 0x350   : > { %v9158_v40 = vadd.f32 %v6322_v18, %v6321_v9  ;;  %v4850_v9 = vpack.c.bf16 %v4760_v36, %v4757_v54  ;;  %v4862_v49 = vpack.c.bf16 %v4784_v23, %v8997_v56  ;;  %v4802_v54 = vld [vmem:[#allocation2 + $0x208] sm:$0xff] }
 0x352   : > { %5215 = vmatmul.mubr.bf16.gmra.mrb[176].mxu1 %v4881_v50 }
 0x353   : > { %5222 = vmatprep.mubr.bf16.mxu1 %v4885_v43 }
 0x354   : > { %v6324_v48 = vpop.f32.mrb[200].mxu0 }
 0x355   : > { %v6325_v47 = vpop.f32.mrb[201].mxu0 }
 0x356   : > { %v9160_v24 = vadd.f32 %v6325_v47, %v6324_v48  ;;  %v6327_v46 = vpop.f32.mrb[202].mxu0  ;;  %v4778_v47 = vld [vmem:[#allocation2 + $0x148] sm:$0xff] }
 0x357   : > { %v6328_v12 = vpop.f32.mrb[203].mxu0  ;;  %v4859_v2 = vpack.c.bf16 %v4778_v47, %v8995_v41  ;;  %v4793_v41 = vld [vmem:[#allocation2 + $0x1c0] sm:$0xff] }
 0x358   : > { %v9162_v35 = vadd.f32 %v6328_v12, %v6327_v46  ;;  %v4856_v46 = vpack.c.bf16 %v4772_v45, %v8983_v10  ;;  %v7116_v45 = vadd.f32 %v8960_v14, %v9196_v63 }
 0x35a   : > { %5223 = vmatmul.mubr.bf16.gmra.mrb[180].mxu1 %v4884_v57 }
 0x35b   : > { %5230 = vmatprep.mubr.bf16.mxu1 %v4888_v1 }
 0x35c   : > { %v6330_v3 = vpop.f32.mrb[204].mxu0 }
 0x35d   : > { %v6331_v13 = vpop.f32.mrb[205].mxu0 }
 0x35e   : > { %v9167_v19 = vadd.f32 %v6331_v13, %v6330_v3  ;;  %v6333_v15 = vpop.f32.mrb[206].mxu0  ;;  %v4787_v13 = vld [vmem:[#allocation2 + $0x190] sm:$0xff] }
 0x35f   : > { %v6334_v55 = vpop.f32.mrb[207].mxu0 }
 0x360   : > { %v9169_v32 = vadd.f32 %v6334_v55, %v6333_v15 }
 0x362   : > { %5231 = vmatmul.mubr.bf16.gmra.mrb[184].mxu1 %v4887_v34  ;;  %v4790_v34 = vld [vmem:[#allocation2 + $0x1a8] sm:$0xff] }
 0x363   : > { %5238 = vmatprep.mubr.bf16.mxu1 %v9164_v0 }
 0x364   : > { %v6336_v22 = vpop.f32.mrb[208].mxu0 }
 0x365   : > { %v6337_v6 = vpop.f32.mrb[209].mxu0 }
 0x366   : > { %v9172_v21 = vadd.f32 %v6337_v6, %v6336_v22  ;;  %v6339_v39 = vpop.f32.mrb[210].mxu0  ;;  %v4865_v22 = vpack.c.bf16 %v4790_v34, %v4787_v13  ;;  %v7104_v34 = vadd.f32 %v9094_v33, %v9196_v63 }
 0x367   : > { %v6340_v11 = vpop.f32.mrb[211].mxu0 }
 0x368   : > { %v9175_v44 = vadd.f32 %v6340_v11, %v6339_v39  ;;  %v4799_v11 = vld [vmem:[#allocation2 + $0x1f0] sm:$0xff] }
 0x36a   : > { %5239 = vmatmul.mubr.bf16.gmra.mrb[188].mxu1 %v9164_v0 }
 0x36b   : > { %6912 = vmatprep.mubr.bf16.mxu1 %v4847_v8  ;;  %v4796_v8 = vld [vmem:[#allocation2 + $0x1d8] sm:$0xff] }
 0x36c   : > { %v6342_v50 = vpop.f32.mrb[212].mxu0 }
 0x36d   : > { %v6343_v29 = vpop.f32.mrb[213].mxu0 }
 0x36e   : > { %v9177_v43 = vadd.f32 %v6343_v29, %v6342_v50  ;;  %v6345_v18 = vpop.f32.mrb[214].mxu0  ;;  %v4868_v50 = vpack.c.bf16 %v4796_v8, %v4793_v41  ;;  %v7108_v29 = vadd.f32 %v8953_v16, %v9196_v63  ;;  %v4817_v8 = vld [vmem:[#allocation2 + $0x280] sm:$0xff] }
 0x36f   : > { %v6346_v28 = vpop.f32.mrb[215].mxu0 }
 0x370   : > { %v9180_v48 = vadd.f32 %v6346_v28, %v6345_v18 }
 0x372   : > { %6913 = vmatmul.mubr.bf16.vlgmr.msra.gmra.mrb[96].mxu1 %v4850_v9 }
 0x373   : > { %6916 = vmatprep.mubr.bf16.mxu1 %v4853_v20  ;;  %v4871_v20 = vpack.c.bf16 %v4802_v54, %v4799_v11  ;;  %v4820_v11 = vld [vmem:[#allocation2 + $0x298] sm:$0xff]  ;;  %v4823_v54 = vld [vmem:[#allocation2 + $0x2b0] sm:$0xff] }
 0x374   : > { %v6348_v57 = vpop.f32.mrb[216].mxu0 }
 0x375   : > { %v6349_v58 = vpop.f32.mrb[217].mxu0 }
 0x376   : > { %v9183_v1 = vadd.f32 %v6349_v58, %v6348_v57  ;;  %v6351_v12 = vpop.f32.mrb[218].mxu0 }
 0x377   : > { %v6352_v3 = vpop.f32.mrb[219].mxu0 }
 0x378   : > { %v9186_v31 = vadd.f32 %v6352_v3, %v6351_v12  ;;  %v4808_v12 = vld [vmem:[#allocation2 + $0x238] sm:$0xff]  ;;  %v4814_v3 = vld [vmem:[#allocation2 + $0x268] sm:$0xff] }
 0x37a   : > { %6917 = vmatmul.mubr.bf16.gmra.mrb[100].mxu1 %v4856_v46  ;;  %v4805_v46 = vld [vmem:[#allocation2 + $0x220] sm:$0xff] }
 0x37b   : > { %6920 = vmatprep.mubr.bf16.mxu1 %v4859_v2  ;;  %v4811_v2 = vld [vmem:[#allocation2 + $0x250] sm:$0xff]  ;;  %v4874_v13 = vpack.c.bf16 %v4808_v12, %v4805_v46  ;;  %v4829_v12 = vld [vmem:[#allocation2 + $0x2e0] sm:$0xff] }
 0x37c   : > { %v6354_v15 = vpop.f32.mrb[220].mxu0 }
 0x37d   : > { %v6355_v55 = vpop.f32.mrb[221].mxu0 }
 0x37e   : > { %v9189_v53 = vadd.f32 %v6355_v55, %v6354_v15  ;;  %v6357_v10 = vpop.f32.mrb[222].mxu0 }
 0x37f   : > { %v6358_v6 = vpop.f32.mrb[223].mxu0 }
 0x380   : > { %v9191_v39 = vadd.f32 %v6358_v6, %v6357_v10  ;;  %v7112_v10 = vadd.f32 %v9099_v52, %v9196_v63 }
 0x382   : > { %6921 = vmatmul.mubr.bf16.gmra.mrb[104].mxu1 %v4862_v49  ;;  %v4877_v49 = vpack.c.bf16 %v4814_v3, %v4811_v2  ;;  %v4832_v2 = vld [vmem:[#allocation2 + $0x2f8] sm:$0xff]  ;;  %v4835_v3 = vld [vmem:[#allocation2 + $0x310] sm:$0xff] }
 0x383   : > { %6924 = vmatprep.mubr.bf16.mxu1 %v4865_v22 }
 0x384   : > { %v6400_v36 = vpop.f32.mrb[224].mxu0 }
 0x385   : > { %v6401_v56 = vpop.f32.mrb[225].mxu0 }
 0x386   : > { %v6402_v9 = vadd.f32 %v6401_v56, %v6400_v36  ;;  %v6403_v18 = vpop.f32.mrb[226].mxu0  ;;  %v4826_v36 = vld [vmem:[#allocation2 + $0x2c8] sm:$0xff] }
 0x387   : > { %v6404_v28 = vpop.f32.mrb[227].mxu0 }
 0x388   : > { %v9202_v47 = vadd.f32 %v7108_v29, %v6402_v9  ;;  %v6405_v57 = vadd.f32 %v6404_v28, %v6403_v18  ;;  %v7124_v29 = vadd.f32 %v9104_v17, %v9196_v63  ;;  %v7132_v28 = vadd.f32 %v9107_v59, %v9196_v63 }
 0x389   : > { %v4886_v17 = vpack.c.bf16 %v4832_v2, %v4829_v12 }
 0x38a   : > { %6925 = vmatmul.mubr.bf16.gmra.mrb[108].mxu1 %v4868_v50  ;;  %v9204_v58 = vadd.f32 %v7116_v45, %v6405_v57  ;;  %v4880_v50 = vpack.c.bf16 %v4820_v11, %v4817_v8 }
 0x38b   : > { %6928 = vmatprep.mubr.bf16.mxu1 %v4871_v20  ;;  %v4883_v20 = vpack.c.bf16 %v4826_v36, %v4823_v54 }
 0x38c   : > { %v6406_v23 = vpop.f32.mrb[228].mxu0 }
 0x38d   : > { %v6407_v16 = vpop.f32.mrb[229].mxu0 }
 0x38e   : > { %v6408_v15 = vadd.f32 %v6407_v16, %v6406_v23  ;;  %v6409_v55 = vpop.f32.mrb[230].mxu0 }
 0x38f   : > { %v6410_v14 = vpop.f32.mrb[231].mxu0 }
 0x390   : > { %v9210_v22 = vadd.f32 %v7104_v34, %v6408_v15  ;;  %v6411_v6 = vadd.f32 %v6410_v14, %v6409_v55  ;;  %v4889_v55 = vpack.c.bf16 %v9041_v7, %v4835_v3  ;;  %v7148_v7 = vadd.f32 %v9129_v26, %v9196_v63 }
 0x391   : > { %v7156_v3 = vadd.f32 %v9139_v37, %v9196_v63  ;;  %v7160_v37 = vadd.f32 %v9148_v30, %v9196_v63 }
 0x392   : > { %6929 = vmatmul.mubr.bf16.gmra.mrb[112].mxu1 %v4874_v13  ;;  %v9212_v41 = vadd.f32 %v7112_v10, %v6411_v6  ;;  %v7120_v13 = vadd.f32 %v9113_v51, %v9196_v63  ;;  %v7140_v51 = vadd.f32 %v9125_v42, %v9196_v63 }
 0x393   : > { %6932 = vmatprep.mubr.bf16.mxu1 %v4877_v49  ;;  %v7128_v49 = vadd.f32 %v9115_v38, %v9196_v63 }
 0x394   : > { %v6412_v56 = vpop.f32.mrb[232].mxu0 }
 0x395   : > { %v6413_v33 = vpop.f32.mrb[233].mxu0 }
 0x396   : > { %v6414_v9 = vadd.f32 %v6413_v33, %v6412_v56  ;;  %v6415_v18 = vpop.f32.mrb[234].mxu0 }
 0x397   : > { %v6416_v52 = vpop.f32.mrb[235].mxu0 }
 0x398   : > { %v9218_v45 = vadd.f32 %v7124_v29, %v6414_v9  ;;  %v6417_v57 = vadd.f32 %v6416_v52, %v6415_v18  ;;  %v7136_v18 = vadd.f32 %v9133_v5, %v9196_v63  ;;  %v7164_v5 = vadd.f32 %v9141_v25, %v9196_v63 }
 0x39a   : > { %6933 = vmatmul.mubr.bf16.gmra.mrb[116].mxu1 %v4880_v50  ;;  %v9220_v46 = vadd.f32 %v7132_v28, %v6417_v57  ;;  %v7144_v28 = vadd.f32 %v9135_v4, %v9196_v63 }
 0x39b   : > { %6936 = vmatprep.mubr.bf16.mxu1 %v4883_v20 }
 0x39c   : > { %v6418_v23 = vpop.f32.mrb[236].mxu0 }
 0x39d   : > { %v6419_v16 = vpop.f32.mrb[237].mxu0 }
 0x39e   : > { %v6420_v34 = vadd.f32 %v6419_v16, %v6418_v23  ;;  %v6421_v15 = vpop.f32.mrb[238].mxu0 }
 0x39f   : > { %v6422_v59 = vpop.f32.mrb[239].mxu0 }
 0x3a0   : > { %v9227_v14 = vadd.f32 %v7120_v13, %v6420_v34  ;;  %v6423_v10 = vadd.f32 %v6422_v59, %v6421_v15  ;;  %v7152_v59 = vadd.f32 %v9145_v27, %v9196_v63  ;;  %v7172_v27 = vadd.f32 %v9151_v60, %v9196_v63 }
 0x3a2   : > { %6937 = vmatmul.mubr.bf16.gmra.mrb[120].mxu1 %v4886_v17  ;;  %v9229_v6 = vadd.f32 %v7128_v49, %v6423_v10 }
 0x3a3   : > { %6940 = vmatprep.mubr.bf16.mxu1 %v4889_v55 }
 0x3a4   : > { %v6424_v8 = vpop.f32.mrb[240].mxu0 }
 0x3a5   : > { %v6425_v11 = vpop.f32.mrb[241].mxu0 }
 0x3a6   : > { %v6426_v54 = vadd.f32 %v6425_v11, %v6424_v8  ;;  %v6427_v36 = vpop.f32.mrb[242].mxu0 }
 0x3a7   : > { %v6428_v56 = vpop.f32.mrb[243].mxu0 }
 0x3a8   : > { %v9236_v38 = vadd.f32 %v7140_v51, %v6426_v54  ;;  %v6429_v33 = vadd.f32 %v6428_v56, %v6427_v36 }
 0x3aa   : > { %6941 = vmatmul.mubr.bf16.gmra.mrb[124].mxu1 %v9164_v0  ;;  %v9238_v50 = vadd.f32 %v7148_v7, %v6429_v33 }
 0x3ac   : > { %v6430_v29 = vpop.f32.mrb[244].mxu0 }
 0x3ad   : > { %v6431_v9 = vpop.f32.mrb[245].mxu0 }
 0x3ae   : > { %v6432_v20 = vadd.f32 %v6431_v9, %v6430_v29  ;;  %v6433_v42 = vpop.f32.mrb[246].mxu0 }
 0x3af   : > { %v6434_v52 = vpop.f32.mrb[247].mxu0 }
 0x3b0   : > { %v9244_v0 = vadd.f32 %v7136_v18, %v6432_v20  ;;  %v6435_v57 = vadd.f32 %v6434_v52, %v6433_v42 }
 0x3b2   : > { %v9246_v26 = vadd.f32 %v7144_v28, %v6435_v57  ;;  %v7180_v28 = vadd.f32 %v9154_v62, %v9196_v63 }
 0x3b4   : > { %v6436_v12 = vpop.f32.mrb[248].mxu0 }
 0x3b5   : > { %v6437_v2 = vpop.f32.mrb[249].mxu0 }
 0x3b6   : > { %v6438_v23 = vadd.f32 %v6437_v2, %v6436_v12  ;;  %v6439_v16 = vpop.f32.mrb[250].mxu0 }
 0x3b7   : > { %v6440_v17 = vpop.f32.mrb[251].mxu0 }
 0x3b8   : > { %v9252_v13 = vadd.f32 %v7156_v3, %v6438_v23  ;;  %v6441_v34 = vadd.f32 %v6440_v17, %v6439_v16 }
 0x3ba   : > { %v9254_v4 = vadd.f32 %v7164_v5, %v6441_v34 }
 0x3bc   : > { %v6442_v15 = vpop.f32.mrb[252].mxu0 }
 0x3bd   : > { %v6443_v55 = vpop.f32.mrb[253].mxu0 }
 0x3be   : > { %v6444_v49 = vadd.f32 %v6443_v55, %v6442_v15  ;;  %v6445_v10 = vpop.f32.mrb[254].mxu0  ;;  %v7168_v15 = vadd.f32 %v9156_v61, %v9196_v63 }
 0x3bf   : > { %v6446_v8 = vpop.f32.mrb[255].mxu0 }
 0x3c0   : > { %v9260_v11 = vadd.f32 %v7152_v59, %v6444_v49  ;;  %v6447_v51 = vadd.f32 %v6446_v8, %v6445_v10  ;;  %v7176_v10 = vadd.f32 %v9158_v40, %v9196_v63 }
 0x3c2   : > { %v9262_v25 = vadd.f32 %v7160_v37, %v6447_v51 }
 0x3c4   : > { %v6448_v56 = vpop.f32.mrb[0].mxu0 }
 0x3c5   : > { %v6536_v54 = vpop.f32.mrb[128].mxu1  ;;  %v6449_v29 = vpop.f32.mrb[1].mxu0 }
 0x3c6   : > { %v6537_v36 = vpop.f32.mrb[129].mxu1  ;;  %v6450_v18 = vadd.f32 %v6449_v29, %v6448_v56  ;;  %v6451_v20 = vpop.f32.mrb[2].mxu0 }
 0x3c7   : > { %v6538_v7 = vadd.f32 %v6537_v36, %v6536_v54  ;;  %v6539_v33 = vpop.f32.mrb[130].mxu1  ;;  %v6452_v52 = vpop.f32.mrb[3].mxu0 }
 0x3c8   : > { %v6540_v9 = vpop.f32.mrb[131].mxu1  ;;  %v9271_v57 = vadd.f32 %v7172_v27, %v6450_v18  ;;  %v6453_v12 = vadd.f32 %v6452_v52, %v6451_v20 }
 0x3c9   : > { %v6541_v42 = vadd.f32 %v6540_v9, %v6539_v33  ;;  %v9267_v30 = vadd.f32 %v9202_v47, %v6538_v7  ;;  %v7188_v9 = vadd.f32 %v9160_v24, %v9196_v63 }
 0x3ca   : > { %v9276_v3 = vadd.f32 %v7180_v28, %v6453_v12 }
 0x3cb   : > { %v9274_v2 = vadd.f32 %v9204_v58, %v6541_v42  ;;  %v7196_v42 = vadd.f32 %v9162_v35, %v9196_v63 }
 0x3cc   : > { %v6454_v16 = vpop.f32.mrb[4].mxu0 }
 0x3cd   : > { %v6542_v23 = vpop.f32.mrb[132].mxu1  ;;  %v6455_v34 = vpop.f32.mrb[5].mxu0 }
 0x3ce   : > { %v6543_v60 = vpop.f32.mrb[133].mxu1  ;;  %v6456_v55 = vadd.f32 %v6455_v34, %v6454_v16  ;;  %v6457_v62 = vpop.f32.mrb[6].mxu0 }
 0x3cf   : > { %v6544_v17 = vadd.f32 %v6543_v60, %v6542_v23  ;;  %v6545_v5 = vpop.f32.mrb[134].mxu1  ;;  %v6458_v58 = vpop.f32.mrb[7].mxu0 }
 0x3d0   : > { %v6546_v47 = vpop.f32.mrb[135].mxu1  ;;  %v9285_v8 = vadd.f32 %v7168_v15, %v6456_v55  ;;  %v6459_v37 = vadd.f32 %v6458_v58, %v6457_v62 }
 0x3d1   : > { %v6547_v59 = vadd.f32 %v6546_v47, %v6545_v5  ;;  %v9281_v49 = vadd.f32 %v9210_v22, %v6544_v17  ;;  %v7184_v47 = vadd.f32 %v9167_v19, %v9196_v63 }
 0x3d2   : > { %v9290_v54 = vadd.f32 %v7176_v10, %v6459_v37 }
 0x3d3   : > { %v9288_v51 = vadd.f32 %v9212_v41, %v6547_v59  ;;  %v7192_v59 = vadd.f32 %v9169_v32, %v9196_v63 }
 0x3d4   : > { %v6460_v56 = vpop.f32.mrb[8].mxu0 }
 0x3d5   : > { %v6548_v36 = vpop.f32.mrb[136].mxu1  ;;  %v6461_v29 = vpop.f32.mrb[9].mxu0 }
 0x3d6   : > { %v6549_v61 = vpop.f32.mrb[137].mxu1  ;;  %v6462_v27 = vadd.f32 %v6461_v29, %v6460_v56  ;;  %v6463_v40 = vpop.f32.mrb[10].mxu0 }
 0x3d7   : > { %v6550_v7 = vadd.f32 %v6549_v61, %v6548_v36  ;;  %v6551_v33 = vpop.f32.mrb[138].mxu1  ;;  %v6464_v41 = vpop.f32.mrb[11].mxu0 }
 0x3d8   : > { %v6552_v22 = vpop.f32.mrb[139].mxu1  ;;  %v9299_v52 = vadd.f32 %v7188_v9, %v6462_v27  ;;  %v6465_v28 = vadd.f32 %v6464_v41, %v6463_v40 }
 0x3d9   : > { %v6553_v18 = vadd.f32 %v6552_v22, %v6551_v33  ;;  %v9295_v20 = vadd.f32 %v9218_v45, %v6550_v7  ;;  %v7204_v22 = vadd.f32 %v9172_v21, %v9196_v63 }
 0x3da   : > { %v9304_v23 = vadd.f32 %v7196_v42, %v6465_v28 }
 0x3db   : > { %v9302_v12 = vadd.f32 %v9220_v46, %v6553_v18  ;;  %v7212_v18 = vadd.f32 %v9175_v44, %v9196_v63 }
 0x3dc   : > { %v6466_v16 = vpop.f32.mrb[12].mxu0 }
 0x3dd   : > { %v6554_v60 = vpop.f32.mrb[140].mxu1  ;;  %v6467_v34 = vpop.f32.mrb[13].mxu0 }
 0x3de   : > { %v6555_v24 = vpop.f32.mrb[141].mxu1  ;;  %v6468_v15 = vadd.f32 %v6467_v34, %v6466_v16  ;;  %v6469_v35 = vpop.f32.mrb[14].mxu0 }
 0x3df   : > { %v6556_v17 = vadd.f32 %v6555_v24, %v6554_v60  ;;  %v6557_v5 = vpop.f32.mrb[142].mxu1  ;;  %v6470_v46 = vpop.f32.mrb[15].mxu0 }
 0x3e0   : > { %v6558_v45 = vpop.f32.mrb[143].mxu1  ;;  %v9313_v58 = vadd.f32 %v7184_v47, %v6468_v15  ;;  %v6471_v10 = vadd.f32 %v6470_v46, %v6469_v35 }
 0x3e1   : > { %v6559_v55 = vadd.f32 %v6558_v45, %v6557_v5  ;;  %v9309_v62 = vadd.f32 %v9227_v14, %v6556_v17  ;;  %v7200_v45 = vadd.f32 %v9177_v43, %v9196_v63 }
 0x3e2   : > { %v9318_v36 = vadd.f32 %v7192_v59, %v6471_v10 }
 0x3e3   : > { %v9316_v37 = vadd.f32 %v9229_v6, %v6559_v55  ;;  %v7208_v55 = vadd.f32 %v9180_v48, %v9196_v63 }
 0x3e4   : > { %v6472_v56 = vpop.f32.mrb[16].mxu0 }
 0x3e5   : > { %v6560_v61 = vpop.f32.mrb[144].mxu1  ;;  %v6473_v29 = vpop.f32.mrb[17].mxu0 }
 0x3e6   : > { %v6561_v19 = vpop.f32.mrb[145].mxu1  ;;  %v6474_v9 = vadd.f32 %v6473_v29, %v6472_v56  ;;  %v6475_v32 = vpop.f32.mrb[18].mxu0 }
 0x3e7   : > { %v6562_v7 = vadd.f32 %v6561_v19, %v6560_v61  ;;  %v6563_v33 = vpop.f32.mrb[146].mxu1  ;;  %v6476_v6 = vpop.f32.mrb[19].mxu0 }
 0x3e8   : > { %v6564_v14 = vpop.f32.mrb[147].mxu1  ;;  %v9327_v41 = vadd.f32 %v7204_v22, %v6474_v9  ;;  %v6477_v42 = vadd.f32 %v6476_v6, %v6475_v32 }
 0x3e9   : > { %v6565_v27 = vadd.f32 %v6564_v14, %v6563_v33  ;;  %v9323_v40 = vadd.f32 %v9236_v38, %v6562_v7  ;;  %v7220_v14 = vadd.f32 %v9183_v1, %v9196_v63 }
 0x3ea   : > { %v9332_v60 = vadd.f32 %v7212_v18, %v6477_v42 }
 0x3eb   : > { %v9330_v28 = vadd.f32 %v9238_v50, %v6565_v27  ;;  %v7228_v27 = vadd.f32 %v9186_v31, %v9196_v63 }
 0x3ec   : > { %v6478_v16 = vpop.f32.mrb[20].mxu0 }
 0x3ed   : > { %v6566_v24 = vpop.f32.mrb[148].mxu1  ;;  %v6479_v34 = vpop.f32.mrb[21].mxu0 }
 0x3ee   : > { %v6567_v21 = vpop.f32.mrb[149].mxu1  ;;  %v6480_v47 = vadd.f32 %v6479_v34, %v6478_v16  ;;  %v6481_v44 = vpop.f32.mrb[22].mxu0 }
 0x3ef   : > { %v6568_v17 = vadd.f32 %v6567_v21, %v6566_v24  ;;  %v6569_v5 = vpop.f32.mrb[150].mxu1  ;;  %v6482_v50 = vpop.f32.mrb[23].mxu0 }
 0x3f0   : > { %v6570_v38 = vpop.f32.mrb[151].mxu1  ;;  %v9341_v46 = vadd.f32 %v7200_v45, %v6480_v47  ;;  %v6483_v59 = vadd.f32 %v6482_v50, %v6481_v44 }
 0x3f1   : > { %v6571_v15 = vadd.f32 %v6570_v38, %v6569_v5  ;;  %v9337_v35 = vadd.f32 %v9244_v0, %v6568_v17  ;;  %v7216_v38 = vadd.f32 %v9189_v53, %v9196_v63 }
 0x3f2   : > { %v9346_v61 = vadd.f32 %v7208_v55, %v6483_v59 }
 0x3f3   : > { %v9344_v10 = vadd.f32 %v9246_v26, %v6571_v15  ;;  %v7224_v15 = vadd.f32 %v9191_v39, %v9196_v63 }
 0x3f4   : > { %v6484_v56 = vpop.f32.mrb[24].mxu0 }
 0x3f5   : > { %v6572_v19 = vpop.f32.mrb[152].mxu1  ;;  %v6485_v29 = vpop.f32.mrb[25].mxu0 }
 0x3f6   : > { %v6573_v43 = vpop.f32.mrb[153].mxu1  ;;  %v6486_v22 = vadd.f32 %v6485_v29, %v6484_v56  ;;  %v6487_v48 = vpop.f32.mrb[26].mxu0 }
 0x3f7   : > { %v6574_v7 = vadd.f32 %v6573_v43, %v6572_v19  ;;  %v6575_v33 = vpop.f32.mrb[154].mxu1  ;;  %v6488_v26 = vpop.f32.mrb[27].mxu0 }
 0x3f8   : > { %v6576_v0 = vpop.f32.mrb[155].mxu1  ;;  %v9355_v6 = vadd.f32 %v7220_v14, %v6486_v22  ;;  %v6489_v18 = vadd.f32 %v6488_v26, %v6487_v48 }
 0x3f9   : > { %v6577_v9 = vadd.f32 %v6576_v0, %v6575_v33  ;;  %v9351_v32 = vadd.f32 %v9252_v13, %v6574_v7 }
 0x3fa   : > { %v9360_v24 = vadd.f32 %v7228_v27, %v6489_v18 }
 0x3fb   : > { %v9358_v42 = vadd.f32 %v9254_v4, %v6577_v9 }
 0x3fc   : > { %v6490_v16 = vpop.f32.mrb[28].mxu0 }
 0x3fd   : > { %v6578_v21 = vpop.f32.mrb[156].mxu1  ;;  %v6491_v34 = vpop.f32.mrb[29].mxu0 }
 0x3fe   : > { %v6579_v1 = vpop.f32.mrb[157].mxu1  ;;  %v6492_v45 = vadd.f32 %v6491_v34, %v6490_v16  ;;  %v6493_v31 = vpop.f32.mrb[30].mxu0 }
 0x3ff   : > { %v6580_v17 = vadd.f32 %v6579_v1, %v6578_v21  ;;  %v6581_v5 = vpop.f32.mrb[158].mxu1  ;;  %v6494_v4 = vpop.f32.mrb[31].mxu0 }
 0x400   : > { %v6582_v13 = vpop.f32.mrb[159].mxu1  ;;  %v9369_v50 = vadd.f32 %v7216_v38, %v6492_v45  ;;  %v6495_v55 = vadd.f32 %v6494_v4, %v6493_v31 }
 0x401   : > { %v6583_v47 = vadd.f32 %v6582_v13, %v6581_v5  ;;  %v9365_v44 = vadd.f32 %v9260_v11, %v6580_v17 }
 0x402   : > { %v9374_v19 = vadd.f32 %v7224_v15, %v6495_v55 }
 0x403   : > { %v9372_v59 = vadd.f32 %v9262_v25, %v6583_v47 }
 0x405   : > { %v6584_v43 = vpop.f32.mrb[160].mxu1 }
 0x406   : > { %v6585_v53 = vpop.f32.mrb[161].mxu1 }
 0x407   : > { %v6586_v56 = vadd.f32 %v6585_v53, %v6584_v43  ;;  %v6587_v7 = vpop.f32.mrb[162].mxu1 }
 0x408   : > { %v6588_v33 = vpop.f32.mrb[163].mxu1 }
 0x409   : > { %v6589_v29 = vadd.f32 %v6588_v33, %v6587_v7  ;;  %v9377_v11 = vadd.f32 %v9271_v57, %v6586_v56 }
 0x40b   : > { %v9380_v0 = vadd.f32 %v9276_v3, %v6589_v29 }
 0x40d   : > { %v6590_v39 = vpop.f32.mrb[164].mxu1 }
 0x40e   : > { %v6591_v63 = vpop.f32.mrb[165].mxu1 }
 0x40f   : > { %v6592_v14 = vadd.f32 %v6591_v63, %v6590_v39  ;;  %v6593_v22 = vpop.f32.mrb[166].mxu1 }
 0x410   : > { %v6594_v25 = vpop.f32.mrb[167].mxu1 }
 0x411   : > { %v6595_v48 = vadd.f32 %v6594_v25, %v6593_v22  ;;  %v9383_v9 = vadd.f32 %v9285_v8, %v6592_v14 }
 0x413   : > { %v9386_v26 = vadd.f32 %v9290_v54, %v6595_v48 }
 0x415   : > { %v6596_v27 = vpop.f32.mrb[168].mxu1 }
 0x416   : > { %v6597_v18 = vpop.f32.mrb[169].mxu1 }
 0x417   : > { %v6598_v21 = vadd.f32 %v6597_v18, %v6596_v27  ;;  %v6599_v57 = vpop.f32.mrb[170].mxu1 }
 0x418   : > { %v6600_v1 = vpop.f32.mrb[171].mxu1 }
 0x419   : > { %v6601_v16 = vadd.f32 %v6600_v1, %v6599_v57  ;;  %v9389_v3 = vadd.f32 %v9299_v52, %v6598_v21 }
 0x41b   : > { %v9392_v17 = vadd.f32 %v9304_v23, %v6601_v16 }
 0x41d   : > { %v6602_v5 = vpop.f32.mrb[172].mxu1 }
 0x41e   : > { %v6603_v34 = vpop.f32.mrb[173].mxu1 }
 0x41f   : > { %v6604_v13 = vadd.f32 %v6603_v34, %v6602_v5  ;;  %v6605_v8 = vpop.f32.mrb[174].mxu1 }
 0x420   : > { %v6606_v38 = vpop.f32.mrb[175].mxu1 }
 0x421   : > { %v6607_v45 = vadd.f32 %v6606_v38, %v6605_v8  ;;  %v9395_v54 = vadd.f32 %v9313_v58, %v6604_v13 }
 0x423   : > { %v9398_v31 = vadd.f32 %v9318_v36, %v6607_v45 }
 0x425   : > { %v6608_v47 = vpop.f32.mrb[176].mxu1 }
 0x426   : > { %v6609_v4 = vpop.f32.mrb[177].mxu1 }
 0x427   : > { %v6610_v15 = vadd.f32 %v6609_v4, %v6608_v47  ;;  %v6611_v52 = vpop.f32.mrb[178].mxu1 }
 0x428   : > { %v6612_v55 = vpop.f32.mrb[179].mxu1 }
 0x429   : > { %v6613_v43 = vadd.f32 %v6612_v55, %v6611_v52  ;;  %v9401_v23 = vadd.f32 %v9327_v41, %v6610_v15 }
 0x42b   : > { %v9404_v53 = vadd.f32 %v9332_v60, %v6613_v43 }
 0x42d   : > { %v6614_v56 = vpop.f32.mrb[180].mxu1 }
 0x42e   : > { %v6615_v7 = vpop.f32.mrb[181].mxu1 }
 0x42f   : > { %v6616_v33 = vadd.f32 %v6615_v7, %v6614_v56  ;;  %v6617_v58 = vpop.f32.mrb[182].mxu1 }
 0x430   : > { %v6618_v29 = vpop.f32.mrb[183].mxu1 }
 0x431   : > { %v6619_v39 = vadd.f32 %v6618_v29, %v6617_v58  ;;  %v9407_v36 = vadd.f32 %v9341_v46, %v6616_v33 }
 0x433   : > { %v9410_v63 = vadd.f32 %v9346_v61, %v6619_v39 }
 0x435   : > { %v6620_v14 = vpop.f32.mrb[184].mxu1 }
 0x436   : > { %v6621_v22 = vpop.f32.mrb[185].mxu1 }
 0x437   : > { %v6622_v25 = vadd.f32 %v6621_v22, %v6620_v14  ;;  %v6623_v41 = vpop.f32.mrb[186].mxu1 }
 0x438   : > { %v6624_v48 = vpop.f32.mrb[187].mxu1 }
 0x439   : > { %v6625_v27 = vadd.f32 %v6624_v48, %v6623_v41  ;;  %v9413_v60 = vadd.f32 %v9355_v6, %v6622_v25 }
 0x43b   : > { %v9416_v18 = vadd.f32 %v9360_v24, %v6625_v27 }
 0x43d   : > { %v6626_v21 = vpop.f32.mrb[188].mxu1 }
 0x43e   : > { %v6627_v57 = vpop.f32.mrb[189].mxu1 }
 0x43f   : > { %v6628_v1 = vadd.f32 %v6627_v57, %v6626_v21  ;;  %v6629_v46 = vpop.f32.mrb[190].mxu1 }
 0x440   : > { %v6630_v16 = vpop.f32.mrb[191].mxu1 }
 0x441   : > { %v6631_v61 = vadd.f32 %v6630_v16, %v6629_v46  ;;  %v9419_v5 = vadd.f32 %v9369_v50, %v6628_v1 }
 0x443   : > { %v9422_v34 = vadd.f32 %v9374_v19, %v6631_v61 }
 0x445   : > { %v6914_v13 = vpop.f32.mrb[96].mxu1 }
 0x446   : > { %v7107_v6 = vadd.f32 %v9281_v49, %v6914_v13  ;;  %v5281_v8 = vpop.f32.mrb[97].mxu1 }
 0x447   : > { %v7111_v24 = vadd.f32 %v9267_v30, %v5281_v8  ;;  %v6915_v38 = vpop.f32.mrb[98].mxu1 }
 0x448   : > { %v5506_v45 = vmax.f32 %v7107_v6, 0.0  ;;  %v7115_v47 = vadd.f32 %v9288_v51, %v6915_v38  ;;  %v5284_v4 = vpop.f32.mrb[99].mxu1 }
 0x449   : > { %v5504_v15 = vmax.f32 %v7111_v24, 0.0  ;;  %v7119_v52 = vadd.f32 %v9274_v2, %v5284_v4 }
 0x44a   : > { %5538 = vst [vmem:[%s9430_s11 + $0x10] sm:$0xff] %v5506_v45  ;;  %v5507_v49 = vmax.f32 %v7115_v47, 0.0 }
 0x44b   : > { %5536 = vst [vmem:[%s9430_s11] sm:$0xff] %v5504_v15  ;;  %v5505_v30 = vmax.f32 %v7119_v52, 0.0 }
 0x44c   : > { %5539 = vst [vmem:[%s9430_s11 + $0x18] sm:$0xff] %v5507_v49 }
 0x44d   : > { %5537 = vst [vmem:[%s9430_s11 + $0x8] sm:$0xff] %v5505_v30  ;;  %v6918_v51 = vpop.f32.mrb[100].mxu1 }
 0x44e   : > { %v7123_v2 = vadd.f32 %v9309_v62, %v6918_v51  ;;  %v5297_v50 = vpop.f32.mrb[101].mxu1 }
 0x44f   : > { %v7127_v19 = vadd.f32 %v9295_v20, %v5297_v50  ;;  %v6919_v55 = vpop.f32.mrb[102].mxu1 }
 0x450   : > { %v5510_v43 = vmax.f32 %v7123_v2, 0.0  ;;  %v7131_v56 = vadd.f32 %v9316_v37, %v6919_v55  ;;  %v5300_v7 = vpop.f32.mrb[103].mxu1 }
 0x451   : > { %v5508_v33 = vmax.f32 %v7127_v19, 0.0  ;;  %v7135_v58 = vadd.f32 %v9302_v12, %v5300_v7 }
 0x452   : > { %5542 = vst [vmem:[%s9430_s11 + $0x30] sm:$0xff] %v5510_v43  ;;  %v5511_v29 = vmax.f32 %v7131_v56, 0.0 }
 0x453   : > { %5540 = vst [vmem:[%s9430_s11 + $0x20] sm:$0xff] %v5508_v33  ;;  %v5509_v39 = vmax.f32 %v7135_v58, 0.0 }
 0x454   : > { %5543 = vst [vmem:[%s9430_s11 + $0x38] sm:$0xff] %v5511_v29 }
 0x455   : > { %5541 = vst [vmem:[%s9430_s11 + $0x28] sm:$0xff] %v5509_v39  ;;  %v6922_v62 = vpop.f32.mrb[104].mxu1 }
 0x456   : > { %v7139_v20 = vadd.f32 %v9337_v35, %v6922_v62  ;;  %v5313_v14 = vpop.f32.mrb[105].mxu1 }
 0x457   : > { %v7143_v37 = vadd.f32 %v9323_v40, %v5313_v14  ;;  %v6923_v22 = vpop.f32.mrb[106].mxu1 }
 0x458   : > { %v5514_v25 = vmax.f32 %v7139_v20, 0.0  ;;  %v7147_v12 = vadd.f32 %v9344_v10, %v6923_v22  ;;  %v5316_v41 = vpop.f32.mrb[107].mxu1 }
 0x459   : > { %v5512_v48 = vmax.f32 %v7143_v37, 0.0  ;;  %v7151_v27 = vadd.f32 %v9330_v28, %v5316_v41 }
 0x45a   : > { %5546 = vst [vmem:[%s9430_s11 + $0x50] sm:$0xff] %v5514_v25  ;;  %v5515_v21 = vmax.f32 %v7147_v12, 0.0 }
 0x45b   : > { %5544 = vst [vmem:[%s9430_s11 + $0x40] sm:$0xff] %v5512_v48  ;;  %v5513_v57 = vmax.f32 %v7151_v27, 0.0 }
 0x45c   : > { %5547 = vst [vmem:[%s9430_s11 + $0x58] sm:$0xff] %v5515_v21 }
 0x45d   : > { %5545 = vst [vmem:[%s9430_s11 + $0x48] sm:$0xff] %v5513_v57  ;;  %v6926_v35 = vpop.f32.mrb[108].mxu1 }
 0x45e   : > { %v7155_v40 = vadd.f32 %v9365_v44, %v6926_v35  ;;  %v5329_v1 = vpop.f32.mrb[109].mxu1 }
 0x45f   : > { %v7159_v10 = vadd.f32 %v9351_v32, %v5329_v1  ;;  %v6927_v46 = vpop.f32.mrb[110].mxu1 }
 0x460   : > { %v5518_v16 = vmax.f32 %v7155_v40, 0.0  ;;  %v7163_v28 = vadd.f32 %v9372_v59, %v6927_v46  ;;  %v5332_v61 = vpop.f32.mrb[111].mxu1 }
 0x461   : > { %v5516_v13 = vmax.f32 %v7159_v10, 0.0  ;;  %v7167_v6 = vadd.f32 %v9358_v42, %v5332_v61 }
 0x462   : > { %5550 = vst [vmem:[%s9430_s11 + $0x70] sm:$0xff] %v5518_v16  ;;  %v5519_v8 = vmax.f32 %v7163_v28, 0.0 }
 0x463   : > { %5548 = vst [vmem:[%s9430_s11 + $0x60] sm:$0xff] %v5516_v13  ;;  %v5517_v24 = vmax.f32 %v7167_v6, 0.0 }
 0x464   : > { %5551 = vst [vmem:[%s9430_s11 + $0x78] sm:$0xff] %v5519_v8 }
 0x465   : > { %5549 = vst [vmem:[%s9430_s11 + $0x68] sm:$0xff] %v5517_v24  ;;  %v6930_v44 = vpop.f32.mrb[112].mxu1 }
 0x466   : > { %v7171_v32 = vadd.f32 %v9383_v9, %v6930_v44  ;;  %v5345_v38 = vpop.f32.mrb[113].mxu1 }
 0x467   : > { %v7175_v59 = vadd.f32 %v9377_v11, %v5345_v38  ;;  %v6931_v45 = vpop.f32.mrb[114].mxu1 }
 0x468   : > { %v5522_v47 = vmax.f32 %v7171_v32, 0.0  ;;  %v7179_v42 = vadd.f32 %v9386_v26, %v6931_v45  ;;  %v5348_v4 = vpop.f32.mrb[115].mxu1 }
 0x469   : > { %v5520_v15 = vmax.f32 %v7175_v59, 0.0  ;;  %v7183_v52 = vadd.f32 %v9380_v0, %v5348_v4 }
 0x46a   : > { %5554 = vst [vmem:[%s9430_s11 + $0x90] sm:$0xff] %v5522_v47  ;;  %v5523_v49 = vmax.f32 %v7179_v42, 0.0 }
 0x46b   : > { %5552 = vst [vmem:[%s9430_s11 + $0x80] sm:$0xff] %v5520_v15  ;;  %v5521_v30 = vmax.f32 %v7183_v52, 0.0 }
 0x46c   : > { %5555 = vst [vmem:[%s9430_s11 + $0x98] sm:$0xff] %v5523_v49 }
 0x46d   : > { %5553 = vst [vmem:[%s9430_s11 + $0x88] sm:$0xff] %v5521_v30  ;;  %v6934_v9 = vpop.f32.mrb[116].mxu1 }
 0x46e   : > { %v7187_v11 = vadd.f32 %v9395_v54, %v6934_v9  ;;  %v5361_v51 = vpop.f32.mrb[117].mxu1 }
 0x46f   : > { %v7191_v26 = vadd.f32 %v9389_v3, %v5361_v51  ;;  %v6935_v2 = vpop.f32.mrb[118].mxu1 }
 0x470   : > { %v5526_v50 = vmax.f32 %v7187_v11, 0.0  ;;  %v7195_v0 = vadd.f32 %v9398_v31, %v6935_v2  ;;  %v5364_v19 = vpop.f32.mrb[119].mxu1 }
 0x471   : > { %v5524_v55 = vmax.f32 %v7191_v26, 0.0  ;;  %v7199_v43 = vadd.f32 %v9392_v17, %v5364_v19 }
 0x472   : > { %5558 = vst [vmem:[%s9430_s11 + $0xb0] sm:$0xff] %v5526_v50  ;;  %v5527_v56 = vmax.f32 %v7195_v0, 0.0 }
 0x473   : > { %5556 = vst [vmem:[%s9430_s11 + $0xa0] sm:$0xff] %v5524_v55  ;;  %v5525_v7 = vmax.f32 %v7199_v43, 0.0 }
 0x474   : > { %5559 = vst [vmem:[%s9430_s11 + $0xb8] sm:$0xff] %v5527_v56 }
 0x475   : > { %5557 = vst [vmem:[%s9430_s11 + $0xa8] sm:$0xff] %v5525_v7  ;;  %v6938_v54 = vpop.f32.mrb[120].mxu1 }
 0x476   : > { %v7203_v3 = vadd.f32 %v9407_v36, %v6938_v54  ;;  %v5377_v33 = vpop.f32.mrb[121].mxu1 }
 0x477   : > { %v7207_v31 = vadd.f32 %v9401_v23, %v5377_v33  ;;  %v6939_v58 = vpop.f32.mrb[122].mxu1 }
 0x478   : > { %v5530_v29 = vmax.f32 %v7203_v3, 0.0  ;;  %v7211_v17 = vadd.f32 %v9410_v63, %v6939_v58  ;;  %v5380_v39 = vpop.f32.mrb[123].mxu1 }
 0x479   : > { %v5528_v62 = vmax.f32 %v7207_v31, 0.0  ;;  %v7215_v20 = vadd.f32 %v9404_v53, %v5380_v39 }
 0x47a   : > { %5562 = vst [vmem:[%s9430_s11 + $0xd0] sm:$0xff] %v5530_v29  ;;  %v5531_v14 = vmax.f32 %v7211_v17, 0.0 }
 0x47b   : > { %5560 = vst [vmem:[%s9430_s11 + $0xc0] sm:$0xff] %v5528_v62  ;;  %v5529_v37 = vmax.f32 %v7215_v20, 0.0 }
 0x47c   : > { %5563 = vst [vmem:[%s9430_s11 + $0xd8] sm:$0xff] %v5531_v14 }
 0x47d   : > { %5561 = vst [vmem:[%s9430_s11 + $0xc8] sm:$0xff] %v5529_v37  ;;  %v6942_v36 = vpop.f32.mrb[124].mxu1 }
 0x47e   : > { %v7219_v23 = vadd.f32 %v9419_v5, %v6942_v36  ;;  %v5393_v22 = vpop.f32.mrb[125].mxu1 }
 0x47f   : > { %v7223_v63 = vadd.f32 %v9413_v60, %v5393_v22  ;;  %v6943_v25 = vpop.f32.mrb[126].mxu1 }
 0x480   : > { %v5534_v53 = vmax.f32 %v7219_v23, 0.0  ;;  %v7227_v12 = vadd.f32 %v9422_v34, %v6943_v25  ;;  %v5396_v41 = vpop.f32.mrb[127].mxu1 }
 0x481   : > { %v5532_v48 = vmax.f32 %v7223_v63, 0.0  ;;  %v7231_v27 = vadd.f32 %v9416_v18, %v5396_v41 }
 0x482   : > { %5566 = vst [vmem:[%s9430_s11 + $0xf0] sm:$0xff] %v5534_v53  ;;  %v5535_v21 = vmax.f32 %v7227_v12, 0.0 }
 0x483   : > { %5564 = vst [vmem:[%s9430_s11 + $0xe0] sm:$0xff] %v5532_v48  ;;  %v5533_v60 = vmax.f32 %v7231_v27, 0.0 }
 0x484   : > { %5567 = vst [vmem:[%s9430_s11 + $0xf8] sm:$0xff] %v5535_v21 }
 0x485   : > { %5565 = vst [vmem:[%s9430_s11 + $0xe8] sm:$0xff] %v5533_v60 }
 0x486   : > { %7647 = shalt.err (!%p7644_p2)
}
 0x487   : > { %s7648_s6 = scalar_lea.hbm %s9494_s9, 4096  ;;  %s7652_s8 = scalar_lea.hbm %s9548_s5, 8192 }
 0x488   : > { %p7649_p13 = scmp.ne.s32.totalorder %s9494_s9, %s7648_s6  ;;  %p7653_p4 = scmp.lt.u32.totalorder %s9494_s9, %s9548_s5 }
 0x489   : > { %p7654_p5 = scmp.lt.u32.totalorder %s7652_s8, %s7648_s6  ;;  %p7656_p11 = scmp.lt.u32.totalorder %s7648_s6, %s9494_s9 }
 0x48a   : > { %p7650_p6 = pnand %p7649_p13, %p9590_p0 }
 0x48b   : > { %p7655_p8 = por %p7654_p5, %p7653_p4 }
 0x48c   : > { %p7651_p10 = pneg %p7650_p6 }
 0x48d   : > { %p7657_p1 = por %p7656_p11, %p7655_p8 }
 0x48f   : > { %p7658_p3 = pnand %p7657_p1, %p7651_p10 }
 0x491   : > { %7661 = shalt.err (!%p7658_p3)
}
 0x492   : > { %s7716_s28 = smov 128   ;;  %s7717_s15 = smov 8  }
 0x493   : > { %7338 = dma.vmem_to_hbm [thread:$0]  (%p9590_p0), %s9496_s30, 4096, %s9494_s9, %s5569_s22, %s7716_s28, %s7716_s28, %s7717_s15  }
 0x494 PF: > { %s5597_s16 = sand.u32 1, %s7692_s18   ;;  %p9591_p7 = scmp.ne.s32.totalorder %s9553_s25, 0 }
 0x495   : > { %p9592_p9 = scmp.ge.s32.totalorder %s7704_s21, 2  ;;  %s5598_s12 = scalar_lea.sflag [#allocation6], %s5597_s16 }
 0x497   : > { %p7352_p12 = pnand %p9592_p9, %p9591_p7 }
 0x499   : > { %7687 = dma.done.wait (!%p7352_p12), %s5598_s12, 4096  }
 0x49a   : > { %7689 = vsyncadd (!%p7352_p12), %s5598_s12, 4294963200  ;;  %p19_p2 = scmp.ge.s32.totalorder %s7858_s14, 4   ;;  %s9593_s18 = smov %s7696_s19 }
 0x49b   : > { %s9594_s19 = smov %s7700_s20  ;;  %s9595_s20 = smov %s7874_s27 }
 0x49c   : > { %s9596_s21 = smov %s7858_s14  ;;  %21 = sbr.rel (!%p19_p2) target bundleno = 6 (0x6), region = 100 }
 0x4a3   :  { %5603 = vsyncpa [#allocation5], 1 }
 0x4a4   :  { %5605 = vsyncpa [#allocation5 + $0x1], 1 }
 0x4a5   :  { %5606 = vsyncpa [#allocation8], 1 }
 0x4a6   :  { %5607 = vsyncpa [#allocation6], 1 }
 0x4a7   :  { %5609 = vsyncpa [#allocation6 + $0x1], 1 }

</bundles_post_ra>
